<compile_context>
chip_gen: v6e
topology: v6e:2x2x1
jax: 0.10.0
libtpu: 0.0.40
codegen_flags: <defaults>
</compile_context>

<pallas_src>
import functools

import numpy as np
import jax
import jax.numpy as jnp
from jax.experimental import pallas as pl
from jax.experimental.pallas import tpu as pltpu

EPS = 1e-5  # nn.BatchNorm2d default eps


# ------------------------------ Pallas kernel -------------------------------

def _bn(y, gamma, beta, *, relu):
    """Training-mode BatchNorm over rows: two-pass stats + folded scale/shift."""
    inv_m = 1.0 / y.shape[0]
    mean = jnp.sum(y, axis=0, keepdims=True) * inv_m          # (1, C)
    cen = y - mean
    var = jnp.sum(cen * cen, axis=0, keepdims=True) * inv_m   # (1, C), two-pass
    scale = gamma * jax.lax.rsqrt(var + EPS)                  # rsqrt -> EUP slot
    out = cen * scale + beta                                  # 2 VALU ops / elem
    return jnp.maximum(out, 0.0) if relu else out


def _bottleneck_kernel(*refs, n, h, w, ho, wo, stride, has_ds):
    it = iter(refs)
    x_ref = next(it)                                           # (M0, Cin)
    w1_ref, g1_ref, b1_ref = next(it), next(it), next(it)      # (Cin, width)
    w2_ref, g2_ref, b2_ref = next(it), next(it), next(it)      # (9, width, width)
    w3_ref, g3_ref, b3_ref = next(it), next(it), next(it)      # (width, Cout)
    wd_ref = gd_ref = bd_ref = None
    if has_ds:
        wd_ref, gd_ref, bd_ref = next(it), next(it), next(it)  # (Cin, Cout)
    xs_ref = next(it) if stride > 1 else None                  # (M1, Cin) bf16
    o_ref = next(it)                                           # (M1, Cout) f32
    pad_ref = next(it)                                         # VMEM scratch

    bf = jnp.bfloat16
    pdt = pad_ref.dtype
    width = w1_ref.shape[1]
    m1 = n * ho * wo

    # ---- conv1 (1x1) + BN1 + ReLU ------------------------------------------
    y1 = jnp.dot(x_ref[...].astype(bf), w1_ref[...],
                 preferred_element_type=jnp.float32)           # (M0, width)
    t1 = _bn(y1, g1_ref[...], b1_ref[...], relu=True)

    # ---- padded tile for the 3x3 conv: halo-only zero + interior write -----
    pad_ref[:, 0:1, :, :] = jnp.zeros((n, 1, w + 2, width), pdt)
    pad_ref[:, h + 1:h + 2, :, :] = jnp.zeros((n, 1, w + 2, width), pdt)
    pad_ref[:, :, 0:1, :] = jnp.zeros((n, h + 2, 1, width), pdt)
    pad_ref[:, :, w + 1:w + 2, :] = jnp.zeros((n, h + 2, 1, width), pdt)
    pad_ref[:, 1:h + 1, 1:w + 1, :] = t1.astype(pdt).reshape(n, h, w, width)

    # ---- conv2 (3x3, pad=1, stride): 9 accumulated matmuls over taps -------
    # stride>1: taps are read directly at the strided output positions, so
    # rows that would be discarded are never computed (no selection matmul).
    acc = None
    for dh in range(3):
        for dw in range(3):
            if stride == 1:
                tap = pad_ref[:, dh:dh + h, dw:dw + w, :]
            else:
                tap = pad_ref[:, pl.ds(dh, ho, stride), pl.ds(dw, wo, stride), :]
            tap2 = tap.reshape(m1, width).astype(bf)
            part = jnp.dot(tap2, w2_ref[dh * 3 + dw],
                           preferred_element_type=jnp.float32)  # (M1, width)
            acc = part if acc is None else acc + part
    t2 = _bn(acc, g2_ref[...], b2_ref[...], relu=True)

    # ---- conv3 (1x1) + BN3 (no ReLU before residual add) -------------------
    y3 = jnp.dot(t2.astype(bf), w3_ref[...],
                 preferred_element_type=jnp.float32)            # (M1, Cout)
    out = _bn(y3, g3_ref[...], b3_ref[...], relu=False)

    # ---- identity / downsample (shortcut never leaves VMEM) ----------------
    if has_ds:
        xs = xs_ref[...] if stride > 1 else x_ref[...]
        yd = jnp.dot(xs.astype(bf), wd_ref[...],
                     preferred_element_type=jnp.float32)
        identity = _bn(yd, gd_ref[...], bd_ref[...], relu=False)
    else:
        identity = x_ref[...]                                   # f32, Cin == Cout

    o_ref[...] = jnp.maximum(out + identity, 0.0)


# ------------------------------ wrapper glue --------------------------------

def _full_spec(shape):
    zeros = (0,) * len(shape)
    return pl.BlockSpec(shape, lambda i, _z=zeros: _z)


def bottleneck_forward(p, x_nchw, *, stride):
    n, cin, h, w = x_nchw.shape
    width = p["conv1_w"].shape[0]
    cout = p["conv3_w"].shape[0]
    has_ds = "ds_w" in p
    assert has_ds or (stride == 1 and cin == cout)

    ho = (h - 1) // stride + 1
    wo = (w - 1) // stride + 1
    m0, m1 = n * h * w, n * ho * wo

    bf = jnp.bfloat16
    # NCHW -> NHWC rows (channels in the lane dim).
    # TODO(synk): fold this layout change (and the inverse on the output) into
    # the kernel / BlockSpec so activations make a single HBM round trip.
    x_nhwc = jnp.transpose(x_nchw, (0, 2, 3, 1))
    # With a downsample conv, x only feeds bf16 MXU matmuls -> ship it as bf16.
    x2d = x_nhwc.reshape(m0, cin).astype(bf if has_ds else jnp.float32)

    w1 = jnp.transpose(p["conv1_w"][:, :, 0, 0], (1, 0)).astype(bf)       # (Cin, width)
    w2 = jnp.stack([jnp.transpose(p["conv2_w"][:, :, dh, dw], (1, 0))
                    for dh in range(3) for dw in range(3)]).astype(bf)    # (9, width, width)
    w3 = jnp.transpose(p["conv3_w"][:, :, 0, 0], (1, 0)).astype(bf)       # (width, Cout)

    def v(a):
        return a.reshape(1, -1).astype(jnp.float32)

    args = [x2d,
            w1, v(p["bn1_g"]), v(p["bn1_b"]),
            w2, v(p["bn2_g"]), v(p["bn2_b"]),
            w3, v(p["bn3_g"]), v(p["bn3_b"])]
    if has_ds:
        wd = jnp.transpose(p["ds_w"][:, :, 0, 0], (1, 0)).astype(bf)      # (Cin, Cout)
        args += [wd, v(p["ds_g"]), v(p["ds_b"])]
    if stride > 1:
        # Shortcut input at the strided output positions: a cheap XLA slice,
        # replacing the old dense (M1, M0) selection matmul.
        xs2d = x_nhwc[:, ::stride, ::stride, :].reshape(m1, cin).astype(bf)
        args.append(xs2d)

    flops = 2 * (m0 * cin * width + 9 * m1 * width * width + m1 * width * cout
                 + (m1 * cin * cout if has_ds else 0))
    bytes_accessed = int(sum(int(np.prod(a.shape)) * a.dtype.itemsize for a in args)
                         + m1 * cout * 4)
    transcendentals = 2 * width + (2 * cout if has_ds else cout)  # rsqrt per BN chan

    kern = functools.partial(_bottleneck_kernel, n=n, h=h, w=w, ho=ho, wo=wo,
                             stride=stride, has_ds=has_ds)

    # bf16 scratch for the common stride==1 blocks; f32 when taps are read with
    # a strided sublane access (keeps the strided load on the 32-bit path).
    pad_dtype = jnp.bfloat16 if stride == 1 else jnp.float32

    out2d = pl.pallas_call(
        kern,
        out_shape=jax.ShapeDtypeStruct((m1, cout), jnp.float32),
        grid=(1,),
        in_specs=[_full_spec(a.shape) for a in args],
        out_specs=_full_spec((m1, cout)),
        scratch_shapes=[pltpu.VMEM((n, h + 2, w + 2, width), pad_dtype)],
        compiler_params=pltpu.CompilerParams(
            dimension_semantics=("arbitrary",),
            vmem_limit_bytes=48 * 1024 * 1024),
        cost_estimate=pl.CostEstimate(flops=int(flops),
                                      transcendentals=int(transcendentals),
                                      bytes_accessed=bytes_accessed),
    )(*args)

    return jnp.transpose(out2d.reshape(n, ho, wo, cout), (0, 3, 1, 2))


# ------------------------ pure-JAX reference (check) ------------------------

def bottleneck_reference(p, x_nchw, *, stride):
    x = jnp.transpose(x_nchw, (0, 2, 3, 1))  # NHWC

    def conv(inp, w_oihw, s, pad):
        return jax.lax.conv_general_dilated(
            inp, jnp.transpose(w_oihw, (2, 3, 1, 0)), (s, s),
            [(pad, pad), (pad, pad)],
            dimension_numbers=("NHWC", "HWIO", "NHWC"))

    def bn(y, g, b):
        mean = jnp.mean(y, axis=(0, 1, 2), keepdims=True)
        var = jnp.mean(jnp.square(y - mean), axis=(0, 1, 2), keepdims=True)
        return (y - mean) * jax.lax.rsqrt(var + EPS) * g + b

    out = jax.nn.relu(bn(conv(x, p["conv1_w"], 1, 0), p["bn1_g"], p["bn1_b"]))
    out = jax.nn.relu(bn(conv(out, p["conv2_w"], stride, 1), p["bn2_g"], p["bn2_b"]))
    out = bn(conv(out, p["conv3_w"], 1, 0), p["bn3_g"], p["bn3_b"])
    if "ds_w" in p:
        identity = bn(conv(x, p["ds_w"], stride, 0), p["ds_g"], p["ds_b"])
    else:
        identity = x
    return jnp.transpose(jax.nn.relu(out + identity), (0, 3, 1, 2))


# ------------------------------- param init ---------------------------------

def init_bottleneck_params(key, *, inplanes, planes, stride,
                           base_width=64, groups=1):
    width = int(planes * (base_width / 64.0)) * groups
    cout = planes * 4  # Bottleneck.expansion = 4
    ks = iter(jax.random.split(key, 16))

    def conv(shape):
        fan_in = shape[1] * shape[2] * shape[3]
        return jax.random.normal(next(ks), shape, jnp.float32) / np.sqrt(fan_in)

    def gamma(c):
        return 1.0 + 0.1 * jax.random.normal(next(ks), (c,), jnp.float32)

    def beta(c):
        return 0.05 * jax.random.normal(next(ks), (c,), jnp.float32)

    p = {
        "conv1_w": conv((width, inplanes, 1, 1)),
        "bn1_g": gamma(width), "bn1_b": beta(width),
        "conv2_w": conv((width, width, 3, 3)),
        "bn2_g": gamma(width), "bn2_b": beta(width),
        "conv3_w": conv((cout, width, 1, 1)),
        "bn3_g": gamma(cout), "bn3_b": beta(cout),
    }
    if stride != 1 or inplanes != cout:
        p["ds_w"] = conv((cout, inplanes, 1, 1))
        p["ds_g"] = gamma(cout)
        p["ds_b"] = beta(cout)
    return p


# ----------------------------------- main ------------------------------------

if __name__ == "__main__":
    key = jax.random.PRNGKey(0)
    k1, k2, k3, kx1, kx2, kx3 = jax.random.split(key, 6)

    def check(p, x, stride, expect_shape):
        out = jax.block_until_ready(bottleneck_forward(p, x, stride=stride))
        ref = bottleneck_reference(p, x, stride=stride)
        assert out.shape == expect_shape, out.shape
        assert bool(jnp.all(jnp.isfinite(out)))
        # bf16 MXU operands -> small numerical drift vs the f32 reference.
        assert bool(jnp.allclose(out, ref, rtol=1e-1, atol=1e-1)), \
            float(jnp.max(jnp.abs(out - ref)))

    # Case 1: stride=2 with conv1x1+BN downsample (16 -> 32 ch, 16x16 -> 8x8)
    p1 = init_bottleneck_params(k1, inplanes=16, planes=8, stride=2)
    x1 = jax.random.normal(kx1, (2, 16, 16, 16), jnp.float32)
    check(p1, x1, 2, (2, 32, 8, 8))

    # Case 2: stride=1, identity shortcut (inplanes == planes*expansion == 32)
    p2 = init_bottleneck_params(k2, inplanes=32, planes=8, stride=1)
    x2 = jax.random.normal(kx2, (2, 32, 16, 16), jnp.float32)
    check(p2, x2, 1, (2, 32, 16, 16))

    # Case 3: stride=1 with channel-expanding downsample (16 -> 32 ch)
    p3 = init_bottleneck_params(k3, inplanes=16, planes=8, stride=1)
    x3 = jax.random.normal(kx3, (2, 16, 16, 16), jnp.float32)
    check(p3, x3, 1, (2, 32, 16, 16))

    print("KERNEL_OK")
</pallas_src>

<mosaic_0001>
module attributes {stable_mosaic.version = 11 : i64} {
  func.func @_bottleneck_kernel(%arg0: i32, %arg1: memref<512x16xbf16, #tpu.memory_space<vmem>>, %arg2: memref<16x8xbf16, #tpu.memory_space<vmem>>, %arg3: memref<1x8xf32, #tpu.memory_space<vmem>>, %arg4: memref<1x8xf32, #tpu.memory_space<vmem>>, %arg5: memref<9x8x8xbf16, #tpu.memory_space<vmem>>, %arg6: memref<1x8xf32, #tpu.memory_space<vmem>>, %arg7: memref<1x8xf32, #tpu.memory_space<vmem>>, %arg8: memref<8x32xbf16, #tpu.memory_space<vmem>>, %arg9: memref<1x32xf32, #tpu.memory_space<vmem>>, %arg10: memref<1x32xf32, #tpu.memory_space<vmem>>, %arg11: memref<16x32xbf16, #tpu.memory_space<vmem>>, %arg12: memref<1x32xf32, #tpu.memory_space<vmem>>, %arg13: memref<1x32xf32, #tpu.memory_space<vmem>>, %arg14: memref<128x16xbf16, #tpu.memory_space<vmem>>, %arg15: memref<128x32xf32, #tpu.memory_space<vmem>>, %arg16: memref<2x18x18x8xf32, #tpu.memory_space<vmem>>) attributes {dimension_semantics = [#tpu.dimension_semantics<arbitrary>], iteration_bounds = array<i64: 1>, scalar_prefetch = 0 : i64, scratch_operands = 1 : i64, tpu.core_type = #tpu.core_type<tc>, window_params = [{pipeline_mode = #tpu.pipeline_mode<synchronous>, transform_indices = @transform_0, window_bounds = array<i64: 512, 16>}, {pipeline_mode = #tpu.pipeline_mode<synchronous>, transform_indices = @transform_1, window_bounds = array<i64: 16, 8>}, {pipeline_mode = #tpu.pipeline_mode<synchronous>, transform_indices = @transform_2, window_bounds = array<i64: 1, 8>}, {pipeline_mode = #tpu.pipeline_mode<synchronous>, transform_indices = @transform_3, window_bounds = array<i64: 1, 8>}, {pipeline_mode = #tpu.pipeline_mode<synchronous>, transform_indices = @transform_4, window_bounds = array<i64: 9, 8, 8>}, {pipeline_mode = #tpu.pipeline_mode<synchronous>, transform_indices = @transform_5, window_bounds = array<i64: 1, 8>}, {pipeline_mode = #tpu.pipeline_mode<synchronous>, transform_indices = @transform_6, window_bounds = array<i64: 1, 8>}, {pipeline_mode = #tpu.pipeline_mode<synchronous>, transform_indices = @transform_7, window_bounds = array<i64: 8, 32>}, {pipeline_mode = #tpu.pipeline_mode<synchronous>, transform_indices = @transform_8, window_bounds = array<i64: 1, 32>}, {pipeline_mode = #tpu.pipeline_mode<synchronous>, transform_indices = @transform_9, window_bounds = array<i64: 1, 32>}, {pipeline_mode = #tpu.pipeline_mode<synchronous>, transform_indices = @transform_10, window_bounds = array<i64: 16, 32>}, {pipeline_mode = #tpu.pipeline_mode<synchronous>, transform_indices = @transform_11, window_bounds = array<i64: 1, 32>}, {pipeline_mode = #tpu.pipeline_mode<synchronous>, transform_indices = @transform_12, window_bounds = array<i64: 1, 32>}, {pipeline_mode = #tpu.pipeline_mode<synchronous>, transform_indices = @transform_13, window_bounds = array<i64: 128, 16>}, {pipeline_mode = #tpu.pipeline_mode<synchronous>, transform_indices = @transform_14, window_bounds = array<i64: 128, 32>}]} {
    %c0 = arith.constant 0 : index
    %c0_0 = arith.constant 0 : index
    %0 = vector.load %arg1[%c0, %c0_0] : memref<512x16xbf16, #tpu.memory_space<vmem>>, vector<512x16xbf16>
    %c0_1 = arith.constant 0 : index
    %c0_2 = arith.constant 0 : index
    %1 = vector.load %arg2[%c0_1, %c0_2] : memref<16x8xbf16, #tpu.memory_space<vmem>>, vector<16x8xbf16>
    %cst = arith.constant dense<0.000000e+00> : vector<512x8xf32>
    %2 = tpu.matmul %0, %1, %cst {dimension_numbers = #tpu.dot_dimension_numbers<[1], [0], [0], [1], [0, 0, 1, 1], [], []>} : vector<512x16xbf16>, vector<16x8xbf16>, vector<512x8xf32> -> vector<512x8xf32>
    %c0_3 = arith.constant 0 : index
    %c0_4 = arith.constant 0 : index
    %3 = vector.load %arg3[%c0_3, %c0_4] : memref<1x8xf32, #tpu.memory_space<vmem>>, vector<1x8xf32>
    %c0_5 = arith.constant 0 : index
    %c0_6 = arith.constant 0 : index
    %4 = vector.load %arg4[%c0_5, %c0_6] : memref<1x8xf32, #tpu.memory_space<vmem>>, vector<1x8xf32>
    %cst_7 = arith.constant dense<0.000000e+00> : vector<8xf32>
    %5 = vector.multi_reduction <add>, %2, %cst_7 [0] : vector<512x8xf32> to vector<8xf32>
    %6 = vector.shape_cast %5 : vector<8xf32> to vector<1x8xf32>
    %cst_8 = arith.constant 0.001953125 : f32
    %7 = vector.broadcast %cst_8 : f32 to vector<1x8xf32>
    %8 = arith.mulf %6, %7 : vector<1x8xf32>
    %9 = vector.broadcast %8 : vector<1x8xf32> to vector<512x8xf32>
    %10 = arith.subf %2, %9 : vector<512x8xf32>
    %11 = arith.mulf %10, %10 : vector<512x8xf32>
    %cst_9 = arith.constant dense<0.000000e+00> : vector<8xf32>
    %12 = vector.multi_reduction <add>, %11, %cst_9 [0] : vector<512x8xf32> to vector<8xf32>
    %13 = vector.shape_cast %12 : vector<8xf32> to vector<1x8xf32>
    %cst_10 = arith.constant 0.001953125 : f32
    %14 = vector.broadcast %cst_10 : f32 to vector<1x8xf32>
    %15 = arith.mulf %13, %14 : vector<1x8xf32>
    %cst_11 = arith.constant 9.99999974E-6 : f32
    %16 = vector.broadcast %cst_11 : f32 to vector<1x8xf32>
    %17 = arith.addf %15, %16 : vector<1x8xf32>
    %18 = math.rsqrt %17 : vector<1x8xf32>
    %19 = arith.mulf %3, %18 : vector<1x8xf32>
    %20 = vector.broadcast %19 : vector<1x8xf32> to vector<512x8xf32>
    %21 = arith.mulf %10, %20 : vector<512x8xf32>
    %22 = vector.broadcast %4 : vector<1x8xf32> to vector<512x8xf32>
    %23 = arith.addf %21, %22 : vector<512x8xf32>
    %cst_12 = arith.constant 0.000000e+00 : f32
    %24 = vector.broadcast %cst_12 : f32 to vector<512x8xf32>
    %25 = arith.maximumf %23, %24 : vector<512x8xf32>
    %cst_13 = arith.constant 0.000000e+00 : f32
    %26 = vector.broadcast %cst_13 : f32 to vector<2x1x18x8xf32>
    %c0_14 = arith.constant 0 : index
    %c0_15 = arith.constant 0 : index
    %c0_16 = arith.constant 0 : index
    %c0_17 = arith.constant 0 : index
    %27 = vector.load %arg16[%c0_14, %c0_15, %c0_16, %c0_17] : memref<2x18x18x8xf32, #tpu.memory_space<vmem>>, vector<2x1x18x8xf32>
    tpu.vector_store %arg16[%c0_14, %c0_15, %c0_16, %c0_17], %26 {strides = array<i32>} : memref<2x18x18x8xf32, #tpu.memory_space<vmem>>, vector<2x1x18x8xf32>,
    %cst_18 = arith.constant 0.000000e+00 : f32
    %28 = vector.broadcast %cst_18 : f32 to vector<2x1x18x8xf32>
    %c0_19 = arith.constant 0 : index
    %c17 = arith.constant 17 : index
    %c0_20 = arith.constant 0 : index
    %c0_21 = arith.constant 0 : index
    %29 = vector.load %arg16[%c0_19, %c17, %c0_20, %c0_21] : memref<2x18x18x8xf32, #tpu.memory_space<vmem>>, vector<2x1x18x8xf32>
    tpu.vector_store %arg16[%c0_19, %c17, %c0_20, %c0_21], %28 {strides = array<i32>} : memref<2x18x18x8xf32, #tpu.memory_space<vmem>>, vector<2x1x18x8xf32>,
    %cst_22 = arith.constant 0.000000e+00 : f32
    %30 = vector.broadcast %cst_22 : f32 to vector<2x18x1x8xf32>
    %c0_23 = arith.constant 0 : index
    %c0_24 = arith.constant 0 : index
    %c0_25 = arith.constant 0 : index
    %c0_26 = arith.constant 0 : index
    %31 = vector.load %arg16[%c0_23, %c0_24, %c0_25, %c0_26] : memref<2x18x18x8xf32, #tpu.memory_space<vmem>>, vector<2x18x1x8xf32>
    tpu.vector_store %arg16[%c0_23, %c0_24, %c0_25, %c0_26], %30 {strides = array<i32>} : memref<2x18x18x8xf32, #tpu.memory_space<vmem>>, vector<2x18x1x8xf32>,
    %cst_27 = arith.constant 0.000000e+00 : f32
    %32 = vector.broadcast %cst_27 : f32 to vector<2x18x1x8xf32>
    %c0_28 = arith.constant 0 : index
    %c0_29 = arith.constant 0 : index
    %c17_30 = arith.constant 17 : index
    %c0_31 = arith.constant 0 : index
    %33 = vector.load %arg16[%c0_28, %c0_29, %c17_30, %c0_31] : memref<2x18x18x8xf32, #tpu.memory_space<vmem>>, vector<2x18x1x8xf32>
    tpu.vector_store %arg16[%c0_28, %c0_29, %c17_30, %c0_31], %32 {strides = array<i32>} : memref<2x18x18x8xf32, #tpu.memory_space<vmem>>, vector<2x18x1x8xf32>,
    %34 = vector.shape_cast %25 : vector<512x8xf32> to vector<2x16x16x8xf32>
    %c0_32 = arith.constant 0 : index
    %c1 = arith.constant 1 : index
    %c1_33 = arith.constant 1 : index
    %c0_34 = arith.constant 0 : index
    %35 = vector.load %arg16[%c0_32, %c1, %c1_33, %c0_34] : memref<2x18x18x8xf32, #tpu.memory_space<vmem>>, vector<2x16x16x8xf32>
    tpu.vector_store %arg16[%c0_32, %c1, %c1_33, %c0_34], %34 {strides = array<i32>} : memref<2x18x18x8xf32, #tpu.memory_space<vmem>>, vector<2x16x16x8xf32>,
    %c0_35 = arith.constant 0 : index
    %c0_36 = arith.constant 0 : index
    %c0_37 = arith.constant 0 : index
    %c0_38 = arith.constant 0 : index
    %36 = tpu.strided_load %arg16[%c0_35, %c0_36, %c0_37, %c0_38] {strides = array<i32: 1, 2, 2, 1>} : memref<2x18x18x8xf32, #tpu.memory_space<vmem>>, vector<2x8x8x8xf32>
    %37 = vector.shape_cast %36 : vector<2x8x8x8xf32> to vector<128x8xf32>
    %38 = arith.truncf %37 : vector<128x8xf32> to vector<128x8xbf16>
    %c0_39 = arith.constant 0 : index
    %c0_40 = arith.constant 0 : index
    %c0_41 = arith.constant 0 : index
    %39 = vector.load %arg5[%c0_39, %c0_40, %c0_41] : memref<9x8x8xbf16, #tpu.memory_space<vmem>>, vector<1x8x8xbf16>
    %40 = vector.shape_cast %39 : vector<1x8x8xbf16> to vector<8x8xbf16>
    %cst_42 = arith.constant dense<0.000000e+00> : vector<128x8xf32>
    %41 = tpu.matmul %38, %40, %cst_42 {dimension_numbers = #tpu.dot_dimension_numbers<[1], [0], [0], [1], [0, 0, 1, 1], [], []>} : vector<128x8xbf16>, vector<8x8xbf16>, vector<128x8xf32> -> vector<128x8xf32>
    %c0_43 = arith.constant 0 : index
    %c0_44 = arith.constant 0 : index
    %c1_45 = arith.constant 1 : index
    %c0_46 = arith.constant 0 : index
    %42 = tpu.strided_load %arg16[%c0_43, %c0_44, %c1_45, %c0_46] {strides = array<i32: 1, 2, 2, 1>} : memref<2x18x18x8xf32, #tpu.memory_space<vmem>>, vector<2x8x8x8xf32>
    %43 = vector.shape_cast %42 : vector<2x8x8x8xf32> to vector<128x8xf32>
    %44 = arith.truncf %43 : vector<128x8xf32> to vector<128x8xbf16>
    %c1_47 = arith.constant 1 : index
    %c0_48 = arith.constant 0 : index
    %c0_49 = arith.constant 0 : index
    %45 = vector.load %arg5[%c1_47, %c0_48, %c0_49] : memref<9x8x8xbf16, #tpu.memory_space<vmem>>, vector<1x8x8xbf16>
    %46 = vector.shape_cast %45 : vector<1x8x8xbf16> to vector<8x8xbf16>
    %cst_50 = arith.constant dense<0.000000e+00> : vector<128x8xf32>
    %47 = tpu.matmul %44, %46, %cst_50 {dimension_numbers = #tpu.dot_dimension_numbers<[1], [0], [0], [1], [0, 0, 1, 1], [], []>} : vector<128x8xbf16>, vector<8x8xbf16>, vector<128x8xf32> -> vector<128x8xf32>
    %48 = arith.addf %41, %47 : vector<128x8xf32>
    %c0_51 = arith.constant 0 : index
    %c0_52 = arith.constant 0 : index
    %c2 = arith.constant 2 : index
    %c0_53 = arith.constant 0 : index
    %49 = tpu.strided_load %arg16[%c0_51, %c0_52, %c2, %c0_53] {strides = array<i32: 1, 2, 2, 1>} : memref<2x18x18x8xf32, #tpu.memory_space<vmem>>, vector<2x8x8x8xf32>
    %50 = vector.shape_cast %49 : vector<2x8x8x8xf32> to vector<128x8xf32>
    %51 = arith.truncf %50 : vector<128x8xf32> to vector<128x8xbf16>
    %c2_54 = arith.constant 2 : index
    %c0_55 = arith.constant 0 : index
    %c0_56 = arith.constant 0 : index
    %52 = vector.load %arg5[%c2_54, %c0_55, %c0_56] : memref<9x8x8xbf16, #tpu.memory_space<vmem>>, vector<1x8x8xbf16>
    %53 = vector.shape_cast %52 : vector<1x8x8xbf16> to vector<8x8xbf16>
    %cst_57 = arith.constant dense<0.000000e+00> : vector<128x8xf32>
    %54 = tpu.matmul %51, %53, %cst_57 {dimension_numbers = #tpu.dot_dimension_numbers<[1], [0], [0], [1], [0, 0, 1, 1], [], []>} : vector<128x8xbf16>, vector<8x8xbf16>, vector<128x8xf32> -> vector<128x8xf32>
    %55 = arith.addf %48, %54 : vector<128x8xf32>
    %c0_58 = arith.constant 0 : index
    %c1_59 = arith.constant 1 : index
    %c0_60 = arith.constant 0 : index
    %c0_61 = arith.constant 0 : index
    %56 = tpu.strided_load %arg16[%c0_58, %c1_59, %c0_60, %c0_61] {strides = array<i32: 1, 2, 2, 1>} : memref<2x18x18x8xf32, #tpu.memory_space<vmem>>, vector<2x8x8x8xf32>
    %57 = vector.shape_cast %56 : vector<2x8x8x8xf32> to vector<128x8xf32>
    %58 = arith.truncf %57 : vector<128x8xf32> to vector<128x8xbf16>
    %c3 = arith.constant 3 : index
    %c0_62 = arith.constant 0 : index
    %c0_63 = arith.constant 0 : index
    %59 = vector.load %arg5[%c3, %c0_62, %c0_63] : memref<9x8x8xbf16, #tpu.memory_space<vmem>>, vector<1x8x8xbf16>
    %60 = vector.shape_cast %59 : vector<1x8x8xbf16> to vector<8x8xbf16>
    %cst_64 = arith.constant dense<0.000000e+00> : vector<128x8xf32>
    %61 = tpu.matmul %58, %60, %cst_64 {dimension_numbers = #tpu.dot_dimension_numbers<[1], [0], [0], [1], [0, 0, 1, 1], [], []>} : vector<128x8xbf16>, vector<8x8xbf16>, vector<128x8xf32> -> vector<128x8xf32>
    %62 = arith.addf %55, %61 : vector<128x8xf32>
    %c0_65 = arith.constant 0 : index
    %c1_66 = arith.constant 1 : index
    %c1_67 = arith.constant 1 : index
    %c0_68 = arith.constant 0 : index
    %63 = tpu.strided_load %arg16[%c0_65, %c1_66, %c1_67, %c0_68] {strides = array<i32: 1, 2, 2, 1>} : memref<2x18x18x8xf32, #tpu.memory_space<vmem>>, vector<2x8x8x8xf32>
    %64 = vector.shape_cast %63 : vector<2x8x8x8xf32> to vector<128x8xf32>
    %65 = arith.truncf %64 : vector<128x8xf32> to vector<128x8xbf16>
    %c4 = arith.constant 4 : index
    %c0_69 = arith.constant 0 : index
    %c0_70 = arith.constant 0 : index
    %66 = vector.load %arg5[%c4, %c0_69, %c0_70] : memref<9x8x8xbf16, #tpu.memory_space<vmem>>, vector<1x8x8xbf16>
    %67 = vector.shape_cast %66 : vector<1x8x8xbf16> to vector<8x8xbf16>
    %cst_71 = arith.constant dense<0.000000e+00> : vector<128x8xf32>
    %68 = tpu.matmul %65, %67, %cst_71 {dimension_numbers = #tpu.dot_dimension_numbers<[1], [0], [0], [1], [0, 0, 1, 1], [], []>} : vector<128x8xbf16>, vector<8x8xbf16>, vector<128x8xf32> -> vector<128x8xf32>
    %69 = arith.addf %62, %68 : vector<128x8xf32>
    %c0_72 = arith.constant 0 : index
    %c1_73 = arith.constant 1 : index
    %c2_74 = arith.constant 2 : index
    %c0_75 = arith.constant 0 : index
    %70 = tpu.strided_load %arg16[%c0_72, %c1_73, %c2_74, %c0_75] {strides = array<i32: 1, 2, 2, 1>} : memref<2x18x18x8xf32, #tpu.memory_space<vmem>>, vector<2x8x8x8xf32>
    %71 = vector.shape_cast %70 : vector<2x8x8x8xf32> to vector<128x8xf32>
    %72 = arith.truncf %71 : vector<128x8xf32> to vector<128x8xbf16>
    %c5 = arith.constant 5 : index
    %c0_76 = arith.constant 0 : index
    %c0_77 = arith.constant 0 : index
    %73 = vector.load %arg5[%c5, %c0_76, %c0_77] : memref<9x8x8xbf16, #tpu.memory_space<vmem>>, vector<1x8x8xbf16>
    %74 = vector.shape_cast %73 : vector<1x8x8xbf16> to vector<8x8xbf16>
    %cst_78 = arith.constant dense<0.000000e+00> : vector<128x8xf32>
    %75 = tpu.matmul %72, %74, %cst_78 {dimension_numbers = #tpu.dot_dimension_numbers<[1], [0], [0], [1], [0, 0, 1, 1], [], []>} : vector<128x8xbf16>, vector<8x8xbf16>, vector<128x8xf32> -> vector<128x8xf32>
    %76 = arith.addf %69, %75 : vector<128x8xf32>
    %c0_79 = arith.constant 0 : index
    %c2_80 = arith.constant 2 : index
    %c0_81 = arith.constant 0 : index
    %c0_82 = arith.constant 0 : index
    %77 = tpu.strided_load %arg16[%c0_79, %c2_80, %c0_81, %c0_82] {strides = array<i32: 1, 2, 2, 1>} : memref<2x18x18x8xf32, #tpu.memory_space<vmem>>, vector<2x8x8x8xf32>
    %78 = vector.shape_cast %77 : vector<2x8x8x8xf32> to vector<128x8xf32>
    %79 = arith.truncf %78 : vector<128x8xf32> to vector<128x8xbf16>
    %c6 = arith.constant 6 : index
    %c0_83 = arith.constant 0 : index
    %c0_84 = arith.constant 0 : index
    %80 = vector.load %arg5[%c6, %c0_83, %c0_84] : memref<9x8x8xbf16, #tpu.memory_space<vmem>>, vector<1x8x8xbf16>
    %81 = vector.shape_cast %80 : vector<1x8x8xbf16> to vector<8x8xbf16>
    %cst_85 = arith.constant dense<0.000000e+00> : vector<128x8xf32>
    %82 = tpu.matmul %79, %81, %cst_85 {dimension_numbers = #tpu.dot_dimension_numbers<[1], [0], [0], [1], [0, 0, 1, 1], [], []>} : vector<128x8xbf16>, vector<8x8xbf16>, vector<128x8xf32> -> vector<128x8xf32>
    %83 = arith.addf %76, %82 : vector<128x8xf32>
    %c0_86 = arith.constant 0 : index
    %c2_87 = arith.constant 2 : index
    %c1_88 = arith.constant 1 : index
    %c0_89 = arith.constant 0 : index
    %84 = tpu.strided_load %arg16[%c0_86, %c2_87, %c1_88, %c0_89] {strides = array<i32: 1, 2, 2, 1>} : memref<2x18x18x8xf32, #tpu.memory_space<vmem>>, vector<2x8x8x8xf32>
    %85 = vector.shape_cast %84 : vector<2x8x8x8xf32> to vector<128x8xf32>
    %86 = arith.truncf %85 : vector<128x8xf32> to vector<128x8xbf16>
    %c7 = arith.constant 7 : index
    %c0_90 = arith.constant 0 : index
    %c0_91 = arith.constant 0 : index
    %87 = vector.load %arg5[%c7, %c0_90, %c0_91] : memref<9x8x8xbf16, #tpu.memory_space<vmem>>, vector<1x8x8xbf16>
    %88 = vector.shape_cast %87 : vector<1x8x8xbf16> to vector<8x8xbf16>
    %cst_92 = arith.constant dense<0.000000e+00> : vector<128x8xf32>
    %89 = tpu.matmul %86, %88, %cst_92 {dimension_numbers = #tpu.dot_dimension_numbers<[1], [0], [0], [1], [0, 0, 1, 1], [], []>} : vector<128x8xbf16>, vector<8x8xbf16>, vector<128x8xf32> -> vector<128x8xf32>
    %90 = arith.addf %83, %89 : vector<128x8xf32>
    %c0_93 = arith.constant 0 : index
    %c2_94 = arith.constant 2 : index
    %c2_95 = arith.constant 2 : index
    %c0_96 = arith.constant 0 : index
    %91 = tpu.strided_load %arg16[%c0_93, %c2_94, %c2_95, %c0_96] {strides = array<i32: 1, 2, 2, 1>} : memref<2x18x18x8xf32, #tpu.memory_space<vmem>>, vector<2x8x8x8xf32>
    %92 = vector.shape_cast %91 : vector<2x8x8x8xf32> to vector<128x8xf32>
    %93 = arith.truncf %92 : vector<128x8xf32> to vector<128x8xbf16>
    %c8 = arith.constant 8 : index
    %c0_97 = arith.constant 0 : index
    %c0_98 = arith.constant 0 : index
    %94 = vector.load %arg5[%c8, %c0_97, %c0_98] : memref<9x8x8xbf16, #tpu.memory_space<vmem>>, vector<1x8x8xbf16>
    %95 = vector.shape_cast %94 : vector<1x8x8xbf16> to vector<8x8xbf16>
    %cst_99 = arith.constant dense<0.000000e+00> : vector<128x8xf32>
    %96 = tpu.matmul %93, %95, %cst_99 {dimension_numbers = #tpu.dot_dimension_numbers<[1], [0], [0], [1], [0, 0, 1, 1], [], []>} : vector<128x8xbf16>, vector<8x8xbf16>, vector<128x8xf32> -> vector<128x8xf32>
    %97 = arith.addf %90, %96 : vector<128x8xf32>
    %c0_100 = arith.constant 0 : index
    %c0_101 = arith.constant 0 : index
    %98 = vector.load %arg6[%c0_100, %c0_101] : memref<1x8xf32, #tpu.memory_space<vmem>>, vector<1x8xf32>
    %c0_102 = arith.constant 0 : index
    %c0_103 = arith.constant 0 : index
    %99 = vector.load %arg7[%c0_102, %c0_103] : memref<1x8xf32, #tpu.memory_space<vmem>>, vector<1x8xf32>
    %cst_104 = arith.constant dense<0.000000e+00> : vector<8xf32>
    %100 = vector.multi_reduction <add>, %97, %cst_104 [0] : vector<128x8xf32> to vector<8xf32>
    %101 = vector.shape_cast %100 : vector<8xf32> to vector<1x8xf32>
    %cst_105 = arith.constant 7.812500e-03 : f32
    %102 = vector.broadcast %cst_105 : f32 to vector<1x8xf32>
    %103 = arith.mulf %101, %102 : vector<1x8xf32>
    %104 = vector.broadcast %103 : vector<1x8xf32> to vector<128x8xf32>
    %105 = arith.subf %97, %104 : vector<128x8xf32>
    %106 = arith.mulf %105, %105 : vector<128x8xf32>
    %cst_106 = arith.constant dense<0.000000e+00> : vector<8xf32>
    %107 = vector.multi_reduction <add>, %106, %cst_106 [0] : vector<128x8xf32> to vector<8xf32>
    %108 = vector.shape_cast %107 : vector<8xf32> to vector<1x8xf32>
    %cst_107 = arith.constant 7.812500e-03 : f32
    %109 = vector.broadcast %cst_107 : f32 to vector<1x8xf32>
    %110 = arith.mulf %108, %109 : vector<1x8xf32>
    %cst_108 = arith.constant 9.99999974E-6 : f32
    %111 = vector.broadcast %cst_108 : f32 to vector<1x8xf32>
    %112 = arith.addf %110, %111 : vector<1x8xf32>
    %113 = math.rsqrt %112 : vector<1x8xf32>
    %114 = arith.mulf %98, %113 : vector<1x8xf32>
    %115 = vector.broadcast %114 : vector<1x8xf32> to vector<128x8xf32>
    %116 = arith.mulf %105, %115 : vector<128x8xf32>
    %117 = vector.broadcast %99 : vector<1x8xf32> to vector<128x8xf32>
    %118 = arith.addf %116, %117 : vector<128x8xf32>
    %cst_109 = arith.constant 0.000000e+00 : f32
    %119 = vector.broadcast %cst_109 : f32 to vector<128x8xf32>
    %120 = arith.maximumf %118, %119 : vector<128x8xf32>
    %121 = arith.truncf %120 : vector<128x8xf32> to vector<128x8xbf16>
    %c0_110 = arith.constant 0 : index
    %c0_111 = arith.constant 0 : index
    %122 = vector.load %arg8[%c0_110, %c0_111] : memref<8x32xbf16, #tpu.memory_space<vmem>>, vector<8x32xbf16>
    %cst_112 = arith.constant dense<0.000000e+00> : vector<128x32xf32>
    %123 = tpu.matmul %121, %122, %cst_112 {dimension_numbers = #tpu.dot_dimension_numbers<[1], [0], [0], [1], [0, 0, 1, 1], [], []>} : vector<128x8xbf16>, vector<8x32xbf16>, vector<128x32xf32> -> vector<128x32xf32>
    %c0_113 = arith.constant 0 : index
    %c0_114 = arith.constant 0 : index
    %124 = vector.load %arg9[%c0_113, %c0_114] : memref<1x32xf32, #tpu.memory_space<vmem>>, vector<1x32xf32>
    %c0_115 = arith.constant 0 : index
    %c0_116 = arith.constant 0 : index
    %125 = vector.load %arg10[%c0_115, %c0_116] : memref<1x32xf32, #tpu.memory_space<vmem>>, vector<1x32xf32>
    %cst_117 = arith.constant dense<0.000000e+00> : vector<32xf32>
    %126 = vector.multi_reduction <add>, %123, %cst_117 [0] : vector<128x32xf32> to vector<32xf32>
    %127 = vector.shape_cast %126 : vector<32xf32> to vector<1x32xf32>
    %cst_118 = arith.constant 7.812500e-03 : f32
    %128 = vector.broadcast %cst_118 : f32 to vector<1x32xf32>
    %129 = arith.mulf %127, %128 : vector<1x32xf32>
    %130 = vector.broadcast %129 : vector<1x32xf32> to vector<128x32xf32>
    %131 = arith.subf %123, %130 : vector<128x32xf32>
    %132 = arith.mulf %131, %131 : vector<128x32xf32>
    %cst_119 = arith.constant dense<0.000000e+00> : vector<32xf32>
    %133 = vector.multi_reduction <add>, %132, %cst_119 [0] : vector<128x32xf32> to vector<32xf32>
    %134 = vector.shape_cast %133 : vector<32xf32> to vector<1x32xf32>
    %cst_120 = arith.constant 7.812500e-03 : f32
    %135 = vector.broadcast %cst_120 : f32 to vector<1x32xf32>
    %136 = arith.mulf %134, %135 : vector<1x32xf32>
    %cst_121 = arith.constant 9.99999974E-6 : f32
    %137 = vector.broadcast %cst_121 : f32 to vector<1x32xf32>
    %138 = arith.addf %136, %137 : vector<1x32xf32>
    %139 = math.rsqrt %138 : vector<1x32xf32>
    %140 = arith.mulf %124, %139 : vector<1x32xf32>
    %141 = vector.broadcast %140 : vector<1x32xf32> to vector<128x32xf32>
    %142 = arith.mulf %131, %141 : vector<128x32xf32>
    %143 = vector.broadcast %125 : vector<1x32xf32> to vector<128x32xf32>
    %144 = arith.addf %142, %143 : vector<128x32xf32>
    %c0_122 = arith.constant 0 : index
    %c0_123 = arith.constant 0 : index
    %145 = vector.load %arg14[%c0_122, %c0_123] : memref<128x16xbf16, #tpu.memory_space<vmem>>, vector<128x16xbf16>
    %c0_124 = arith.constant 0 : index
    %c0_125 = arith.constant 0 : index
    %146 = vector.load %arg11[%c0_124, %c0_125] : memref<16x32xbf16, #tpu.memory_space<vmem>>, vector<16x32xbf16>
    %cst_126 = arith.constant dense<0.000000e+00> : vector<128x32xf32>
    %147 = tpu.matmul %145, %146, %cst_126 {dimension_numbers = #tpu.dot_dimension_numbers<[1], [0], [0], [1], [0, 0, 1, 1], [], []>} : vector<128x16xbf16>, vector<16x32xbf16>, vector<128x32xf32> -> vector<128x32xf32>
    %c0_127 = arith.constant 0 : index
    %c0_128 = arith.constant 0 : index
    %148 = vector.load %arg12[%c0_127, %c0_128] : memref<1x32xf32, #tpu.memory_space<vmem>>, vector<1x32xf32>
    %c0_129 = arith.constant 0 : index
    %c0_130 = arith.constant 0 : index
    %149 = vector.load %arg13[%c0_129, %c0_130] : memref<1x32xf32, #tpu.memory_space<vmem>>, vector<1x32xf32>
    %cst_131 = arith.constant dense<0.000000e+00> : vector<32xf32>
    %150 = vector.multi_reduction <add>, %147, %cst_131 [0] : vector<128x32xf32> to vector<32xf32>
    %151 = vector.shape_cast %150 : vector<32xf32> to vector<1x32xf32>
    %cst_132 = arith.constant 7.812500e-03 : f32
    %152 = vector.broadcast %cst_132 : f32 to vector<1x32xf32>
    %153 = arith.mulf %151, %152 : vector<1x32xf32>
    %154 = vector.broadcast %153 : vector<1x32xf32> to vector<128x32xf32>
    %155 = arith.subf %147, %154 : vector<128x32xf32>
    %156 = arith.mulf %155, %155 : vector<128x32xf32>
    %cst_133 = arith.constant dense<0.000000e+00> : vector<32xf32>
    %157 = vector.multi_reduction <add>, %156, %cst_133 [0] : vector<128x32xf32> to vector<32xf32>
    %158 = vector.shape_cast %157 : vector<32xf32> to vector<1x32xf32>
    %cst_134 = arith.constant 7.812500e-03 : f32
    %159 = vector.broadcast %cst_134 : f32 to vector<1x32xf32>
    %160 = arith.mulf %158, %159 : vector<1x32xf32>
    %cst_135 = arith.constant 9.99999974E-6 : f32
    %161 = vector.broadcast %cst_135 : f32 to vector<1x32xf32>
    %162 = arith.addf %160, %161 : vector<1x32xf32>
    %163 = math.rsqrt %162 : vector<1x32xf32>
    %164 = arith.mulf %148, %163 : vector<1x32xf32>
    %165 = vector.broadcast %164 : vector<1x32xf32> to vector<128x32xf32>
    %166 = arith.mulf %155, %165 : vector<128x32xf32>
    %167 = vector.broadcast %149 : vector<1x32xf32> to vector<128x32xf32>
    %168 = arith.addf %166, %167 : vector<128x32xf32>
    %169 = arith.addf %144, %168 : vector<128x32xf32>
    %cst_136 = arith.constant 0.000000e+00 : f32
    %170 = vector.broadcast %cst_136 : f32 to vector<128x32xf32>
    %171 = arith.maximumf %169, %170 : vector<128x32xf32>
    %c0_137 = arith.constant 0 : index
    %c0_138 = arith.constant 0 : index
    %172 = vector.load %arg15[%c0_137, %c0_138] : memref<128x32xf32, #tpu.memory_space<vmem>>, vector<128x32xf32>
    tpu.vector_store %arg15[%c0_137, %c0_138], %171 {strides = array<i32>} : memref<128x32xf32, #tpu.memory_space<vmem>>, vector<128x32xf32>,
    return
  }
  func.func @transform_0(%arg0: i32) -> (i32, i32) {
    %c0_i32 = arith.constant 0 : i32
    %c0_i32_0 = arith.constant 0 : i32
    %c0_i32_1 = arith.constant 0 : i32
    return %c0_i32, %c0_i32_0 : i32, i32
  }
  func.func @transform_1(%arg0: i32) -> (i32, i32) {
    %c0_i32 = arith.constant 0 : i32
    %c0_i32_0 = arith.constant 0 : i32
    %c0_i32_1 = arith.constant 0 : i32
    return %c0_i32, %c0_i32_0 : i32, i32
  }
  func.func @transform_2(%arg0: i32) -> (i32, i32) {
    %c0_i32 = arith.constant 0 : i32
    %c0_i32_0 = arith.constant 0 : i32
    %c0_i32_1 = arith.constant 0 : i32
    return %c0_i32, %c0_i32_0 : i32, i32
  }
  func.func @transform_3(%arg0: i32) -> (i32, i32) {
    %c0_i32 = arith.constant 0 : i32
    %c0_i32_0 = arith.constant 0 : i32
    %c0_i32_1 = arith.constant 0 : i32
    return %c0_i32, %c0_i32_0 : i32, i32
  }
  func.func @transform_4(%arg0: i32) -> (i32, i32, i32) {
    %c0_i32 = arith.constant 0 : i32
    %c0_i32_0 = arith.constant 0 : i32
    %c0_i32_1 = arith.constant 0 : i32
    %c0_i32_2 = arith.constant 0 : i32
    return %c0_i32, %c0_i32_0, %c0_i32_1 : i32, i32, i32
  }
  func.func @transform_5(%arg0: i32) -> (i32, i32) {
    %c0_i32 = arith.constant 0 : i32
    %c0_i32_0 = arith.constant 0 : i32
    %c0_i32_1 = arith.constant 0 : i32
    return %c0_i32, %c0_i32_0 : i32, i32
  }
  func.func @transform_6(%arg0: i32) -> (i32, i32) {
    %c0_i32 = arith.constant 0 : i32
    %c0_i32_0 = arith.constant 0 : i32
    %c0_i32_1 = arith.constant 0 : i32
    return %c0_i32, %c0_i32_0 : i32, i32
  }
  func.func @transform_7(%arg0: i32) -> (i32, i32) {
    %c0_i32 = arith.constant 0 : i32
    %c0_i32_0 = arith.constant 0 : i32
    %c0_i32_1 = arith.constant 0 : i32
    return %c0_i32, %c0_i32_0 : i32, i32
  }
  func.func @transform_8(%arg0: i32) -> (i32, i32) {
    %c0_i32 = arith.constant 0 : i32
    %c0_i32_0 = arith.constant 0 : i32
    %c0_i32_1 = arith.constant 0 : i32
    return %c0_i32, %c0_i32_0 : i32, i32
  }
  func.func @transform_9(%arg0: i32) -> (i32, i32) {
    %c0_i32 = arith.constant 0 : i32
    %c0_i32_0 = arith.constant 0 : i32
    %c0_i32_1 = arith.constant 0 : i32
    return %c0_i32, %c0_i32_0 : i32, i32
  }
  func.func @transform_10(%arg0: i32) -> (i32, i32) {
    %c0_i32 = arith.constant 0 : i32
    %c0_i32_0 = arith.constant 0 : i32
    %c0_i32_1 = arith.constant 0 : i32
    return %c0_i32, %c0_i32_0 : i32, i32
  }
  func.func @transform_11(%arg0: i32) -> (i32, i32) {
    %c0_i32 = arith.constant 0 : i32
    %c0_i32_0 = arith.constant 0 : i32
    %c0_i32_1 = arith.constant 0 : i32
    return %c0_i32, %c0_i32_0 : i32, i32
  }
  func.func @transform_12(%arg0: i32) -> (i32, i32) {
    %c0_i32 = arith.constant 0 : i32
    %c0_i32_0 = arith.constant 0 : i32
    %c0_i32_1 = arith.constant 0 : i32
    return %c0_i32, %c0_i32_0 : i32, i32
  }
  func.func @transform_13(%arg0: i32) -> (i32, i32) {
    %c0_i32 = arith.constant 0 : i32
    %c0_i32_0 = arith.constant 0 : i32
    %c0_i32_1 = arith.constant 0 : i32
    return %c0_i32, %c0_i32_0 : i32, i32
  }
  func.func @transform_14(%arg0: i32) -> (i32, i32) {
    %c0_i32 = arith.constant 0 : i32
    %c0_i32_0 = arith.constant 0 : i32
    %c0_i32_1 = arith.constant 0 : i32
    return %c0_i32, %c0_i32_0 : i32, i32
  }
}

</mosaic_0001>

<bundles_post_ra>
// kernel: tpu_custom_call.1
= control target key start
LH: loop header
LB: loop body
LE: loop exit
PB: predicated region body
PF: predicated region fallthrough
CT: control target
= control target key end

     0   :  { %vm280_vm0 = vcmask 130048   ;;  %vm668_vm1 = vcmask 64512   ;;  %vm1286_vm2 = vcmask 57344   ;;  %vm1530_vm3 = vcmask 1043456   ;;  %s7188_s1 = inlined_call_operand.vmem [shape: bf16[16,8], index: 1, kind: input, shape index: {}]   ;;  %s7189_s0 = inlined_call_operand.vmem [shape: bf16[512,16], index: 0, kind: input, shape index: {}]   ;;  %s7190_s4 = inlined_call_operand.vmem [shape: bf16[9,8,8], index: 4, kind: input, shape index: {}]   ;;  %s7191_s2 = inlined_call_operand.vmem [shape: f32[1,8], index: 2, kind: input, shape index: {}]   ;;  %s7192_s3 = inlined_call_operand.vmem [shape: f32[1,8], index: 3, kind: input, shape index: {}]   ;;  %s7193_s10 = inlined_call_operand.vmem [shape: bf16[16,32], index: 10, kind: input, shape index: {}]   ;;  %s7194_s13 = inlined_call_operand.vmem [shape: bf16[128,16], index: 13, kind: input, shape index: {}]   ;;  %s7195_s7 = inlined_call_operand.vmem [shape: bf16[8,32], index: 7, kind: input, shape index: {}]   ;;  %s7196_s5 = inlined_call_operand.vmem [shape: f32[1,8], index: 5, kind: input, shape index: {}]   ;;  %s7197_s6 = inlined_call_operand.vmem [shape: f32[1,8], index: 6, kind: input, shape index: {}]   ;;  %s7198_s11 = inlined_call_operand.vmem [shape: f32[1,32], index: 11, kind: input, shape index: {}]   ;;  %s7199_s12 = inlined_call_operand.vmem [shape: f32[1,32], index: 12, kind: input, shape index: {}]   ;;  %s7200_s8 = inlined_call_operand.vmem [shape: f32[1,32], index: 8, kind: input, shape index: {}]   ;;  %s7201_s9 = inlined_call_operand.vmem [shape: f32[1,32], index: 9, kind: input, shape index: {}]   ;;  %s7202_s14 = inlined_call_operand.vmem [shape: f32[128,32], index: 14, kind: output, shape index: {}]  }
   0x1   :  { %v4563_v0 = vld [vmem:[%s7188_s1] sm:$0xff]   ;;  %v4565_v2 = vld [vmem:[%s7189_s0 + $0x8] sm:$0xff]   ;;  %v4566_v3 = vld [vmem:[%s7189_s0 + $0x10] sm:$0xff]   ;;  %vm1274_vm4 = vcmask 58368   ;;  %vm3336_vm5 = vcmask 261120  }
   0x2   :  { %v4564_v1 = vld [vmem:[%s7189_s0] sm:$0xff]   ;;  %4286 = vmatprep.subr.bf16.mxu0 %v4563_v0  ;;  %4550 = vmatprep.subr.bf16.mxu1 %v4563_v0  ;;  %v4567_v4 = vld [vmem:[%s7189_s0 + $0x18] sm:$0xff]   ;;  %v4569_v6 = vld [vmem:[%s7189_s0 + $0x28] sm:$0xff]  }
   0x3   :  { %4287 = vmatpush3.bf16.msra.mxu0 %v4563_v0  ;;  %4288 = vmatprep.mubr.msk.bf16.mxu0 %vm280_vm0, %v4564_v1  ;;  %v4568_v5 = vld [vmem:[%s7189_s0 + $0x20] sm:$0xff]   ;;  %v4570_v7 = vld [vmem:[%s7189_s0 + $0x30] sm:$0xff]   ;;  %v4571_v8 = vld [vmem:[%s7189_s0 + $0x38] sm:$0xff]  }
   0x4   :  { %4551 = vmatpush3.bf16.msra.mxu1 %v4563_v0  ;;  %v4572_v9 = vld [vmem:[%s7189_s0 + $0x40] sm:$0xff]   ;;  %v4593_v11 = vld [vmem:[%s7189_s0 + $0xe8] sm:$0xff]   ;;  %v4594_v12 = vld [vmem:[%s7189_s0 + $0xf0] sm:$0xff]  }
   0x5   :  { %v4592_v10 = vld [vmem:[%s7189_s0 + $0xe0] sm:$0xff]   ;;  %v4573_v13 = vld [vmem:[%s7189_s0 + $0x48] sm:$0xff]   ;;  %v4574_v14 = vld [vmem:[%s7189_s0 + $0x50] sm:$0xff]  }
   0x6   :  { %4289 = vmatmul.mubr.msk.bf16.vlgmr.msra.gmra.mxu0 %vm280_vm0, %v4565_v2  ;;  %4344 = vmatprep.mubr.msk.bf16.mxu1 %vm280_vm0, %v4592_v10  ;;  %v4595_v15 = vld [vmem:[%s7189_s0 + $0xf8] sm:$0xff]   ;;  %v4576_v17 = vld [vmem:[%s7189_s0 + $0x60] sm:$0xff]   ;;  %v4577_v18 = vld [vmem:[%s7189_s0 + $0x68] sm:$0xff]  }
   0x7   :  { %4292 = vmatprep.mubr.msk.bf16.mxu0 %vm280_vm0, %v4566_v3  ;;  %4345 = vmatmul.mubr.msk.bf16.vlgmr.msra.gmra.mxu1 %vm280_vm0, %v4593_v11  ;;  %v4575_v16 = vld [vmem:[%s7189_s0 + $0x58] sm:$0xff]   ;;  %v4578_v19 = vld [vmem:[%s7189_s0 + $0x70] sm:$0xff]   ;;  %v4580_v21 = vld [vmem:[%s7189_s0 + $0x80] sm:$0xff]  }
   0x8   :  { %4348 = vmatprep.mubr.msk.bf16.mxu1 %vm280_vm0, %v4594_v12  ;;  %v4579_v20 = vld [vmem:[%s7189_s0 + $0x78] sm:$0xff]   ;;  %v4581_v22 = vld [vmem:[%s7189_s0 + $0x88] sm:$0xff]   ;;  %v4582_v23 = vld [vmem:[%s7189_s0 + $0x90] sm:$0xff]  }
   0x9   :  { %v4583_v24 = vld [vmem:[%s7189_s0 + $0x98] sm:$0xff]   ;;  %v4584_v25 = vld [vmem:[%s7189_s0 + $0xa0] sm:$0xff]   ;;  %v4585_v26 = vld [vmem:[%s7189_s0 + $0xa8] sm:$0xff]  }
   0xa   :  { %v4586_v27 = vld [vmem:[%s7189_s0 + $0xb0] sm:$0xff]   ;;  %v4587_v28 = vld [vmem:[%s7189_s0 + $0xb8] sm:$0xff]   ;;  %v4588_v29 = vld [vmem:[%s7189_s0 + $0xc0] sm:$0xff]  }
   0xb   :  { %v4589_v30 = vld [vmem:[%s7189_s0 + $0xc8] sm:$0xff]   ;;  %v4590_v31 = vld [vmem:[%s7189_s0 + $0xd0] sm:$0xff]   ;;  %v4591_v32 = vld [vmem:[%s7189_s0 + $0xd8] sm:$0xff]  }
   0xe   :  { %4293 = vmatmul.mubr.msk.bf16.gmra.mxu0 %vm280_vm0, %v4567_v4 }
   0xf   :  { %4296 = vmatprep.mubr.msk.bf16.mxu0 %vm280_vm0, %v4568_v5  ;;  %4349 = vmatmul.mubr.msk.bf16.gmra.mxu1 %vm280_vm0, %v4595_v15 }
  0x16   :  { %4297 = vmatmul.mubr.msk.bf16.gmra.mxu0 %vm280_vm0, %v4569_v6 }
  0x17   :  { %4300 = vmatprep.mubr.msk.bf16.mxu0 %vm280_vm0, %v4570_v7 }
  0x1e   :  { %4301 = vmatmul.mubr.msk.bf16.gmra.mxu0 %vm280_vm0, %v4571_v8 }
  0x1f   :  { %4304 = vmatprep.mubr.msk.bf16.mxu0 %vm280_vm0, %v4572_v9 }
  0x26   :  { %4305 = vmatmul.mubr.msk.bf16.gmra.mxu0 %vm280_vm0, %v4573_v13 }
  0x27   :  { %4308 = vmatprep.mubr.msk.bf16.mxu0 %vm280_vm0, %v4574_v14 }
  0x2e   :  { %4309 = vmatmul.mubr.msk.bf16.gmra.mxu0 %vm280_vm0, %v4575_v16 }
  0x2f   :  { %4312 = vmatprep.mubr.msk.bf16.mxu0 %vm280_vm0, %v4576_v17 }
  0x36   :  { %4313 = vmatmul.mubr.msk.bf16.gmra.mxu0 %vm280_vm0, %v4577_v18 }
  0x37   :  { %4316 = vmatprep.mubr.msk.bf16.mxu0 %vm280_vm0, %v4578_v19 }
  0x3e   :  { %4317 = vmatmul.mubr.msk.bf16.gmra.mxu0 %vm280_vm0, %v4579_v20 }
  0x3f   :  { %4320 = vmatprep.mubr.msk.bf16.mxu0 %vm280_vm0, %v4580_v21 }
  0x46   :  { %4321 = vmatmul.mubr.msk.bf16.gmra.mxu0 %vm280_vm0, %v4581_v22 }
  0x47   :  { %4324 = vmatprep.mubr.msk.bf16.mxu0 %vm280_vm0, %v4582_v23 }
  0x4e   :  { %4325 = vmatmul.mubr.msk.bf16.gmra.mxu0 %vm280_vm0, %v4583_v24 }
  0x4f   :  { %4328 = vmatprep.mubr.msk.bf16.mxu0 %vm280_vm0, %v4584_v25 }
  0x56   :  { %4329 = vmatmul.mubr.msk.bf16.gmra.mxu0 %vm280_vm0, %v4585_v26 }
  0x57   :  { %4332 = vmatprep.mubr.msk.bf16.mxu0 %vm280_vm0, %v4586_v27 }
  0x5e   :  { %4333 = vmatmul.mubr.msk.bf16.gmra.mxu0 %vm280_vm0, %v4587_v28 }
  0x5f   :  { %4336 = vmatprep.mubr.msk.bf16.mxu0 %vm280_vm0, %v4588_v29 }
  0x66   :  { %4337 = vmatmul.mubr.msk.bf16.gmra.mxu0 %vm280_vm0, %v4589_v30 }
  0x67   :  { %4340 = vmatprep.mubr.msk.bf16.mxu0 %vm280_vm0, %v4590_v31 }
  0x6e   :  { %4341 = vmatmul.mubr.msk.bf16.gmra.mxu0 %vm280_vm0, %v4591_v32 }
  0xc6   :  { %v4820_v33 = vpop.f32.mrf.mxu0 }
  0xc7   :  { %v672_v41 = vsel %vm668_vm1, %v4820_v33, 0.0 }
  0xc8   :  { %v4822_v34 = vpop.f32.mrf.mxu0 }
  0xc9   :  { %v669_v37 = vsel %vm668_vm1, %v4822_v34, 0.0 }
  0xca   :  { %v4824_v35 = vpop.f32.mrf.mxu0 }
  0xcb   :  { %v674_v44 = vsel %vm668_vm1, %v4824_v35, 0.0 }
  0xcc   :  { %v4826_v36 = vpop.f32.mrf.mxu0 }
  0xcd   :  { %v670_v38 = vsel %vm668_vm1, %v4826_v36, 0.0 }
  0xce   :  { %v671_v39 = vadd.f32 %v670_v38, %v669_v37  ;;  %v4832_v40 = vpop.f32.mrf.mxu0 }
  0xcf   :  { %v680_v53 = vsel %vm668_vm1, %v4832_v40, 0.0 }
  0xd0   :  { %v673_v42 = vadd.f32 %v672_v41, %v671_v39  ;;  %v4836_v43 = vpop.f32.mrf.mxu0 }
  0xd1   :  { %v676_v47 = vsel %vm668_vm1, %v4836_v43, 0.0 }
  0xd2   :  { %v675_v45 = vadd.f32 %v674_v44, %v673_v42  ;;  %v4840_v46 = vpop.f32.mrf.mxu0 }
  0xd3   :  { %v682_v56 = vsel %vm668_vm1, %v4840_v46, 0.0 }
  0xd4   :  { %v677_v48 = vadd.f32 %v676_v47, %v675_v45  ;;  %v4844_v49 = vpop.f32.mrf.mxu0 }
  0xd5   :  { %v678_v50 = vsel %vm668_vm1, %v4844_v49, 0.0 }
  0xd6   :  { %v679_v51 = vadd.f32 %v678_v50, %v677_v48  ;;  %v4848_v52 = vpop.f32.mrf.mxu0 }
  0xd7   :  { %v688_v1 = vsel %vm668_vm1, %v4848_v52, 0.0 }
  0xd8   :  { %v681_v54 = vadd.f32 %v680_v53, %v679_v51  ;;  %v4852_v55 = vpop.f32.mrf.mxu0 }
  0xd9   :  { %v684_v59 = vsel %vm668_vm1, %v4852_v55, 0.0 }
  0xda   :  { %v683_v57 = vadd.f32 %v682_v56, %v681_v54  ;;  %v4856_v58 = vpop.f32.mrf.mxu0 }
  0xdb   :  { %v690_v4 = vsel %vm668_vm1, %v4856_v58, 0.0 }
  0xdc   :  { %v685_v60 = vadd.f32 %v684_v59, %v683_v57  ;;  %v4860_v61 = vpop.f32.mrf.mxu0 }
  0xdd   :  { %v686_v62 = vsel %vm668_vm1, %v4860_v61, 0.0 }
  0xde   :  { %v687_v63 = vadd.f32 %v686_v62, %v685_v60  ;;  %v4864_v0 = vpop.f32.mrf.mxu0 }
  0xdf   :  { %v696_v13 = vsel %vm668_vm1, %v4864_v0, 0.0 }
  0xe0   :  { %v689_v2 = vadd.f32 %v688_v1, %v687_v63  ;;  %v4868_v3 = vpop.f32.mrf.mxu0 }
  0xe1   :  { %v692_v7 = vsel %vm668_vm1, %v4868_v3, 0.0 }
  0xe2   :  { %v691_v5 = vadd.f32 %v690_v4, %v689_v2  ;;  %v4872_v6 = vpop.f32.mrf.mxu0 }
  0xe3   :  { %v698_v16 = vsel %vm668_vm1, %v4872_v6, 0.0 }
  0xe4   :  { %v693_v8 = vadd.f32 %v692_v7, %v691_v5  ;;  %v4876_v9 = vpop.f32.mrf.mxu0 }
  0xe5   :  { %v694_v10 = vsel %vm668_vm1, %v4876_v9, 0.0 }
  0xe6   :  { %v695_v11 = vadd.f32 %v694_v10, %v693_v8  ;;  %v4880_v12 = vpop.f32.mrf.mxu0 }
  0xe7   :  { %v704_v25 = vsel %vm668_vm1, %v4880_v12, 0.0 }
  0xe8   :  { %v697_v14 = vadd.f32 %v696_v13, %v695_v11  ;;  %v4884_v15 = vpop.f32.mrf.mxu0 }
  0xe9   :  { %v700_v19 = vsel %vm668_vm1, %v4884_v15, 0.0 }
  0xea   :  { %v699_v17 = vadd.f32 %v698_v16, %v697_v14  ;;  %v4888_v18 = vpop.f32.mrf.mxu0 }
  0xeb   :  { %v706_v28 = vsel %vm668_vm1, %v4888_v18, 0.0 }
  0xec   :  { %v701_v20 = vadd.f32 %v700_v19, %v699_v17  ;;  %v4892_v21 = vpop.f32.mrf.mxu0 }
  0xed   :  { %v702_v22 = vsel %vm668_vm1, %v4892_v21, 0.0 }
  0xee   :  { %v703_v23 = vadd.f32 %v702_v22, %v701_v20  ;;  %v4896_v24 = vpop.f32.mrf.mxu0 }
  0xef   :  { %v712_v42 = vsel %vm668_vm1, %v4896_v24, 0.0 }
  0xf0   :  { %v705_v26 = vadd.f32 %v704_v25, %v703_v23  ;;  %v4900_v27 = vpop.f32.mrf.mxu0 }
  0xf1   :  { %v708_v31 = vsel %vm668_vm1, %v4900_v27, 0.0 }
  0xf2   :  { %v707_v29 = vadd.f32 %v706_v28, %v705_v26  ;;  %v4904_v30 = vpop.f32.mrf.mxu0 }
  0xf3   :  { %v714_v47 = vsel %vm668_vm1, %v4904_v30, 0.0 }
  0xf4   :  { %v709_v32 = vadd.f32 %v708_v31, %v707_v29  ;;  %v4908_v37 = vpop.f32.mrf.mxu0 }
  0xf5   :  { %v710_v38 = vsel %vm668_vm1, %v4908_v37, 0.0 }
  0xf6   :  { %v711_v39 = vadd.f32 %v710_v38, %v709_v32  ;;  %v4912_v41 = vpop.f32.mrf.mxu0 }
  0xf7   :  { %v720_v60 = vsel %vm668_vm1, %v4912_v41, 0.0 }
  0xf8   :  { %v713_v44 = vadd.f32 %v712_v42, %v711_v39  ;;  %v4916_v45 = vpop.f32.mrf.mxu0 }
  0xf9   :  { %v716_v51 = vsel %vm668_vm1, %v4916_v45, 0.0 }
  0xfa   :  { %v715_v48 = vadd.f32 %v714_v47, %v713_v44  ;;  %v4920_v50 = vpop.f32.mrf.mxu0 }
  0xfb   :  { %v722_v1 = vsel %vm668_vm1, %v4920_v50, 0.0 }
  0xfc   :  { %v717_v53 = vadd.f32 %v716_v51, %v715_v48  ;;  %v4924_v54 = vpop.f32.mrf.mxu0 }
  0xfd   :  { %v718_v56 = vsel %vm668_vm1, %v4924_v54, 0.0 }
  0xfe   :  { %v719_v57 = vadd.f32 %v718_v56, %v717_v53  ;;  %v4928_v59 = vpop.f32.mrf.mxu0 }
  0xff   :  { %v728_v14 = vsel %vm668_vm1, %v4928_v59, 0.0 }
 0x100   :  { %v721_v62 = vadd.f32 %v720_v60, %v719_v57  ;;  %v4932_v63 = vpop.f32.mrf.mxu0 }
 0x101   :  { %v724_v5 = vsel %vm668_vm1, %v4932_v63, 0.0 }
 0x102   :  { %v723_v2 = vadd.f32 %v722_v1, %v721_v62  ;;  %v4936_v4 = vpop.f32.mrf.mxu0 }
 0x103   :  { %v730_v19 = vsel %vm668_vm1, %v4936_v4, 0.0 }
 0x104   :  { %v725_v7 = vadd.f32 %v724_v5, %v723_v2  ;;  %v4940_v8 = vpop.f32.mrf.mxu0 }
 0x105   :  { %v726_v10 = vsel %vm668_vm1, %v4940_v8, 0.0 }
 0x106   :  { %v727_v11 = vadd.f32 %v726_v10, %v725_v7  ;;  %v4944_v13 = vpop.f32.mrf.mxu0 }
 0x107   :  { %v736_v32 = vsel %vm668_vm1, %v4944_v13, 0.0 }
 0x108   :  { %v729_v16 = vadd.f32 %v728_v14, %v727_v11  ;;  %v4948_v17 = vpop.f32.mrf.mxu0 }
 0x109   :  { %v732_v23 = vsel %vm668_vm1, %v4948_v17, 0.0 }
 0x10a   :  { %v731_v20 = vadd.f32 %v730_v19, %v729_v16  ;;  %v4952_v22 = vpop.f32.mrf.mxu0 }
 0x10b   :  { %v738_v42 = vsel %vm668_vm1, %v4952_v22, 0.0 }
 0x10c   :  { %v733_v25 = vadd.f32 %v732_v23, %v731_v20  ;;  %v4956_v26 = vpop.f32.mrf.mxu0 }
 0x10d   :  { %v734_v28 = vsel %vm668_vm1, %v4956_v26, 0.0 }
 0x10e   :  { %v735_v29 = vadd.f32 %v734_v28, %v733_v25  ;;  %v4960_v31 = vpop.f32.mrf.mxu0 }
 0x10f   :  { %7245 = vst [vmem:[#allocation3_spill] sm:$0xff] %v4960_v31  ;;  %v744_v62 = vsel %vm668_vm1, %v4960_v31, 0.0 }
 0x110   :  { %v737_v38 = vadd.f32 %v736_v32, %v735_v29  ;;  %v4964_v39 = vpop.f32.mrf.mxu0 }
 0x111   :  { %v740_v48 = vsel %vm668_vm1, %v4964_v39, 0.0 }
 0x112   :  { %v739_v44 = vadd.f32 %v738_v42, %v737_v38  ;;  %v4968_v47 = vpop.f32.mrf.mxu0 }
 0x113   :  { %7246 = vst [vmem:[#allocation4_spill] sm:$0xff] %v4968_v47  ;;  %v746_v5 = vsel %vm668_vm1, %v4968_v47, 0.0 }
 0x114   :  { %v741_v51 = vadd.f32 %v740_v48, %v739_v44  ;;  %v4972_v53 = vpop.f32.mrf.mxu0 }
 0x115   :  { %7247 = vst [vmem:[#allocation5_spill] sm:$0xff] %v4972_v53  ;;  %v742_v56 = vsel %vm668_vm1, %v4972_v53, 0.0 }
 0x116   :  { %v743_v57 = vadd.f32 %v742_v56, %v741_v51  ;;  %v4976_v60 = vpop.f32.mrf.mxu0 }
 0x117   :  { %7248 = vst [vmem:[#allocation6_spill] sm:$0xff] %v4976_v60  ;;  %v752_v25 = vsel %vm668_vm1, %v4976_v60, 0.0 }
 0x118   :  { %v745_v1 = vadd.f32 %v744_v62, %v743_v57  ;;  %v4980_v2 = vpop.f32.mrf.mxu0 }
 0x119   :  { %7249 = vst [vmem:[#allocation7_spill] sm:$0xff] %v4980_v2  ;;  %v748_v11 = vsel %vm668_vm1, %v4980_v2, 0.0 }
 0x11a   :  { %v747_v7 = vadd.f32 %v746_v5, %v745_v1  ;;  %v4984_v10 = vpop.f32.mrf.mxu0  ;;  %v5005_v1 = vpop.f32.mrf.mxu1 }
 0x11b   :  { %7250 = vst [vmem:[#allocation8_spill] sm:$0xff] %v4984_v10  ;;  %v754_v32 = vsel %vm668_vm1, %v4984_v10, 0.0  ;;  %7255 = vst [vmem:[#allocation13_spill] sm:$0xff] %v5005_v1 }
 0x11c   :  { %v749_v14 = vadd.f32 %v748_v11, %v747_v7  ;;  %v4988_v16 = vpop.f32.mrf.mxu0 }
 0x11d   :  { %7251 = vst [vmem:[#allocation9_spill] sm:$0xff] %v4988_v16  ;;  %v750_v19 = vsel %vm668_vm1, %v4988_v16, 0.0 }
 0x11e   :  { %v751_v20 = vadd.f32 %v750_v19, %v749_v14  ;;  %v4992_v23 = vpop.f32.mrf.mxu0 }
 0x11f   :  { %7252 = vst [vmem:[#allocation10_spill] sm:$0xff] %v4992_v23  ;;  %v760_v5 = vsel %vm668_vm1, %v4992_v23, 0.0 }
 0x120   :  { %v753_v28 = vadd.f32 %v752_v25, %v751_v20  ;;  %v4996_v29 = vpop.f32.mrf.mxu0  ;;  %v5011_v25 = vpop.f32.mrf.mxu1 }
 0x121   :  { %7253 = vst [vmem:[#allocation11_spill] sm:$0xff] %v4996_v29  ;;  %v756_v44 = vsel %vm668_vm1, %v4996_v29, 0.0  ;;  %7256 = vst [vmem:[#allocation14_spill] sm:$0xff] %v5011_v25  ;;  %v780_v47 = vsel %vm668_vm1, %v5011_v25, 0.0 }
 0x122   :  { %v755_v38 = vadd.f32 %v754_v32, %v753_v28  ;;  %v5000_v42 = vpop.f32.mrf.mxu0  ;;  %v5015_v29 = vpop.f32.mrf.mxu1 }
 0x123   :  { %7254 = vst [vmem:[#allocation12_spill] sm:$0xff] %v5000_v42  ;;  %v762_v14 = vsel %vm668_vm1, %v5000_v42, 0.0  ;;  %7257 = vst [vmem:[#allocation15_spill] sm:$0xff] %v5015_v29 }
 0x124   :  { %v757_v48 = vadd.f32 %v756_v44, %v755_v38  ;;  %v590_v51 = vpop.f32.mrf.mxu0  ;;  %v5019_v10 = vpop.f32.mrf.mxu1 }
 0x125   :  { %v758_v56 = vsel %vm668_vm1, %v590_v51, 0.0  ;;  %7258 = vst [vmem:[#allocation16_spill] sm:$0xff] %v5019_v10 }
 0x126   :  { %v759_v57 = vadd.f32 %v758_v56, %v757_v48  ;;  %v4338_v62 = vpop.f32.mrf.mxu0  ;;  %v5026_v16 = vpop.f32.mrf.mxu1 }
 0x128   :  { %v761_v7 = vadd.f32 %v760_v5, %v759_v57  ;;  %v603_v11 = vpop.f32.mrf.mxu0  ;;  %v768_v57 = vsel %vm668_vm1, %v4338_v62, 0.0 }
 0x129   :  { %v764_v28 = vsel %vm668_vm1, %v603_v11, 0.0 }
 0x12a   :  { %v763_v19 = vadd.f32 %v762_v14, %v761_v7  ;;  %v4339_v20 = vpop.f32.mrf.mxu0 }
 0x12b   :  { %v770_v42 = vsel %vm668_vm1, %v4339_v20, 0.0 }
 0x12c   :  { %v765_v32 = vadd.f32 %v764_v28, %v763_v19  ;;  %v606_v38 = vpop.f32.mrf.mxu0 }
 0x12d   :  { %v766_v44 = vsel %vm668_vm1, %v606_v38, 0.0 }
 0x12e   :  { %v767_v48 = vadd.f32 %v766_v44, %v765_v32  ;;  %v4342_v56 = vpop.f32.mrf.mxu0 }
 0x130   :  { %v769_v5 = vadd.f32 %v768_v57, %v767_v48  ;;  %v619_v23 = vpop.f32.mrf.mxu0  ;;  %v776_v48 = vsel %vm668_vm1, %v4342_v56, 0.0 }
 0x131   :  { %v772_v60 = vsel %vm668_vm1, %v619_v23, 0.0 }
 0x132   :  { %v771_v7 = vadd.f32 %v770_v42, %v769_v5  ;;  %v4343_v14 = vpop.f32.mrf.mxu0  ;;  %v5030_v5 = vpop.f32.mrf.mxu1 }
 0x133   :  { %v778_v2 = vsel %vm668_vm1, %v4343_v14, 0.0  ;;  %7260 = vst [vmem:[#allocation18_spill] sm:$0xff] %v5030_v5 }
 0x134   :  { %v773_v19 = vadd.f32 %v772_v60, %v771_v7  ;;  %v5022_v28 = vpop.f32.mrf.mxu0  ;;  %v782_v7 = vsel %vm668_vm1, %v5019_v10, 0.0 }
 0x135   :  { %7259 = vst [vmem:[#allocation17_spill] sm:$0xff] %v5022_v28  ;;  %v774_v32 = vsel %vm668_vm1, %v5022_v28, 0.0  ;;  %v5036_v28 = vpop.f32.mrf.mxu1 }
 0x136   :  { %v775_v44 = vadd.f32 %v774_v32, %v773_v19  ;;  %v784_v19 = vsel %vm668_vm1, %v5005_v1, 0.0 }
 0x138   :  { %v777_v57 = vadd.f32 %v776_v48, %v775_v44  ;;  %v786_v44 = vsel %vm668_vm1, %v5015_v29, 0.0  ;;  %v5042_v48 = vpop.f32.mrf.mxu1 }
 0x13a   :  { %v779_v42 = vadd.f32 %v778_v2, %v777_v57  ;;  %v788_v57 = vsel %vm668_vm1, %v5030_v5, 0.0 }
 0x13c   :  { %v781_v60 = vadd.f32 %v780_v47, %v779_v42  ;;  %v790_v42 = vsel %vm668_vm1, %v5042_v48, 0.0 }
 0x13e   :  { %v783_v31 = vadd.f32 %v782_v7, %v781_v60  ;;  %v792_v7 = vsel %vm668_vm1, %v5026_v16, 0.0 }
 0x140   :  { %v785_v32 = vadd.f32 %v784_v19, %v783_v31  ;;  %v794_v31 = vsel %vm668_vm1, %v5036_v28, 0.0 }
 0x142   :  { %v787_v2 = vadd.f32 %v786_v44, %v785_v32 }
 0x144   :  { %v789_v47 = vadd.f32 %v788_v57, %v787_v2 }
 0x146   :  { %v791_v60 = vadd.f32 %v790_v42, %v789_v47 }
 0x148   :  { %v793_v10 = vadd.f32 %v792_v7, %v791_v60 }
 0x14a   :  { %v795_v19 = vadd.f32 %v794_v31, %v793_v10 }
 0x14c   :  { %v796_v29 = vrot.slane %v795_v19, 4 }
 0x14e   :  { %v797_v32 = vadd.f32 %v796_v29, %v795_v19 }
 0x150   :  { %v798_v44 = vrot.slane %v797_v32, 2 }
 0x152   :  { %v799_v1 = vadd.f32 %v798_v44, %v797_v32 }
 0x154   :  { %v800_v25 = vrot.slane %v799_v1, 1 }
 0x156   :  { %v801_v53 = vadd.f32 %v800_v25, %v799_v1 }
 0x158   :  { %v5052_v5 = vmul.f32 0.001953125, %v801_v53 }
 0x15a   :  { %v5055_v2 = vsub.f32 %v590_v51, %v5052_v5  ;;  %v5058_v57 = vsub.f32 %v603_v11, %v5052_v5  ;;  %v5061_v47 = vsub.f32 %v606_v38, %v5052_v5  ;;  %v5064_v42 = vsub.f32 %v4338_v62, %v5052_v5 }
 0x15b   :  { %v5067_v10 = vsub.f32 %v4339_v20, %v5052_v5  ;;  %v5070_v29 = vsub.f32 %v619_v23, %v5052_v5  ;;  %v5073_v53 = vsub.f32 %v4342_v56, %v5052_v5  ;;  %v5076_v51 = vsub.f32 %v4343_v14, %v5052_v5 }
 0x15c   :  { %7261 = vst [vmem:[#allocation19_spill] sm:$0xff] %v5055_v2  ;;  %v5080_v1 = vsub.f32 %v4822_v34, %v5052_v5  ;;  %v5084_v62 = vsub.f32 %v4826_v36, %v5052_v5  ;;  %v5088_v11 = vsub.f32 %v4820_v33, %v5052_v5  ;;  %v5092_v23 = vsub.f32 %v4824_v35, %v5052_v5 }
 0x15d   :  { %7262 = vst [vmem:[#allocation20_spill] sm:$0xff] %v5070_v29  ;;  %7263 = vst [vmem:[#allocation21_spill] sm:$0xff] %v5073_v53  ;;  %v5100_v34 = vsub.f32 %v4836_v43, %v5052_v5  ;;  %v5106_v33 = vsub.f32 %v4844_v49, %v5052_v5  ;;  %v5114_v60 = vsub.f32 %v4832_v40, %v5052_v5 }
 0x15e   :  { %7264 = vst [vmem:[#allocation22_spill] sm:$0xff] %v5076_v51  ;;  %v867_v20 = vmul.f32 %v5080_v1, %v5080_v1  ;;  %v868_v25 = vmul.f32 %v5084_v62, %v5084_v62  ;;  %v869_v36 = vmul.f32 %v5088_v11, %v5088_v11  ;;  %v870_v35 = vmul.f32 %v5092_v23, %v5092_v23 }
 0x15f   :  { %v871_v43 = vmul.f32 %v5100_v34, %v5100_v34  ;;  %v5121_v49 = vsub.f32 %v4840_v46, %v5052_v5  ;;  %v872_v19 = vmul.f32 %v5106_v33, %v5106_v33  ;;  %v5128_v40 = vsub.f32 %v4852_v55, %v5052_v5 }
 0x160   :  { %v931_v38 = vsel %vm668_vm1, %v867_v20, 0.0  ;;  %v932_v56 = vsel %vm668_vm1, %v868_v25, 0.0  ;;  %v934_v7 = vsel %vm668_vm1, %v869_v36, 0.0  ;;  %v936_v32 = vsel %vm668_vm1, %v870_v35, 0.0 }
 0x161   :  { %v933_v14 = vadd.f32 %v932_v56, %v931_v38  ;;  %v873_v20 = vmul.f32 %v5114_v60, %v5114_v60  ;;  %v938_v25 = vsel %vm668_vm1, %v871_v43, 0.0  ;;  %v5135_v46 = vsub.f32 %v4860_v61, %v5052_v5 }
 0x162   :  { %v874_v38 = vmul.f32 %v5121_v49, %v5121_v49  ;;  %v940_v35 = vsel %vm668_vm1, %v872_v19, 0.0  ;;  %v5142_v55 = vsub.f32 %v4848_v52, %v5052_v5  ;;  %v5149_v61 = vsub.f32 %v4856_v58, %v5052_v5 }
 0x163   :  { %v935_v31 = vadd.f32 %v934_v7, %v933_v14  ;;  %v875_v14 = vmul.f32 %v5128_v40, %v5128_v40  ;;  %v942_v43 = vsel %vm668_vm1, %v873_v20, 0.0  ;;  %v5156_v52 = vsub.f32 %v4868_v3, %v5052_v5 }
 0x164   :  { %v944_v19 = vsel %vm668_vm1, %v874_v38, 0.0  ;;  %v5163_v58 = vsub.f32 %v4876_v9, %v5052_v5  ;;  %v5170_v3 = vsub.f32 %v4864_v0, %v5052_v5  ;;  %v5177_v9 = vsub.f32 %v4872_v6, %v5052_v5 }
 0x165   :  { %v937_v44 = vadd.f32 %v936_v32, %v935_v31  ;;  %v876_v31 = vmul.f32 %v5135_v46, %v5135_v46  ;;  %v946_v20 = vsel %vm668_vm1, %v875_v14, 0.0  ;;  %v5184_v0 = vsub.f32 %v4884_v15, %v5052_v5 }
 0x166   :  { %v5191_v6 = vsub.f32 %v4892_v21, %v5052_v5  ;;  %v5198_v15 = vsub.f32 %v4880_v12, %v5052_v5  ;;  %v5205_v21 = vsub.f32 %v4888_v18, %v5052_v5  ;;  %v5212_v12 = vsub.f32 %v4900_v27, %v5052_v5 }
 0x167   :  { %v939_v36 = vadd.f32 %v938_v25, %v937_v44  ;;  %v877_v44 = vmul.f32 %v5142_v55, %v5142_v55  ;;  %v948_v38 = vsel %vm668_vm1, %v876_v31, 0.0  ;;  %v5219_v18 = vsub.f32 %v4908_v37, %v5052_v5 }
 0x168   :  { %v5226_v27 = vsub.f32 %v4896_v24, %v5052_v5  ;;  %v5233_v37 = vsub.f32 %v4904_v30, %v5052_v5  ;;  %v5240_v24 = vsub.f32 %v4916_v45, %v5052_v5  ;;  %v5247_v30 = vsub.f32 %v4924_v54, %v5052_v5 }
 0x169   :  { %v941_v56 = vadd.f32 %v940_v35, %v939_v36  ;;  %v878_v36 = vmul.f32 %v5149_v61, %v5149_v61  ;;  %v950_v14 = vsel %vm668_vm1, %v877_v44, 0.0  ;;  %v5254_v45 = vsub.f32 %v4912_v41, %v5052_v5 }
 0x16a   :  { %v5261_v54 = vsub.f32 %v4920_v50, %v5052_v5  ;;  %v5268_v41 = vsub.f32 %v4932_v63, %v5052_v5  ;;  %v5275_v50 = vsub.f32 %v4940_v8, %v5052_v5  ;;  %v5282_v63 = vsub.f32 %v4928_v59, %v5052_v5 }
 0x16b   :  { %v943_v7 = vadd.f32 %v942_v43, %v941_v56  ;;  %v879_v56 = vmul.f32 %v5156_v52, %v5156_v52  ;;  %v952_v31 = vsel %vm668_vm1, %v878_v36, 0.0  ;;  %v5289_v8 = vsub.f32 %v4936_v4, %v5052_v5 }
 0x16c   :  { %v5296_v59 = vsub.f32 %v4948_v17, %v5052_v5  ;;  %v5303_v4 = vsub.f32 %v4956_v26, %v5052_v5  ;;  %v5310_v17 = vsub.f32 %v4944_v13, %v5052_v5  ;;  %v5317_v26 = vsub.f32 %v4952_v22, %v5052_v5 }
 0x16d   :  { %v945_v32 = vadd.f32 %v944_v19, %v943_v7  ;;  %v880_v7 = vmul.f32 %v5163_v58, %v5163_v58  ;;  %v954_v44 = vsel %vm668_vm1, %v879_v56, 0.0  ;;  %v5324_v13 = vsub.f32 %v4964_v39, %v5052_v5 }
 0x16e   :  { %7265 = vst [vmem:[#allocation23_spill] sm:$0xff] %v5317_v26 }
 0x16f   :  { %v947_v25 = vadd.f32 %v946_v20, %v945_v32  ;;  %v881_v32 = vmul.f32 %v5170_v3, %v5170_v3  ;;  %v956_v36 = vsel %vm668_vm1, %v880_v7, 0.0  ;;  %7266 = vst [vmem:[#allocation24_spill] sm:$0xff] %v5324_v13 }
 0x171   :  { %v949_v35 = vadd.f32 %v948_v38, %v947_v25  ;;  %v882_v25 = vmul.f32 %v5177_v9, %v5177_v9  ;;  %v958_v56 = vsel %vm668_vm1, %v881_v32, 0.0 }
 0x173   :  { %v951_v43 = vadd.f32 %v950_v14, %v949_v35  ;;  %v883_v35 = vmul.f32 %v5184_v0, %v5184_v0  ;;  %v960_v7 = vsel %vm668_vm1, %v882_v25, 0.0 }
 0x175   :  { %v953_v19 = vadd.f32 %v952_v31, %v951_v43  ;;  %v884_v43 = vmul.f32 %v5191_v6, %v5191_v6  ;;  %v962_v32 = vsel %vm668_vm1, %v883_v35, 0.0 }
 0x177   :  { %v955_v20 = vadd.f32 %v954_v44, %v953_v19  ;;  %v885_v19 = vmul.f32 %v5198_v15, %v5198_v15  ;;  %v964_v25 = vsel %vm668_vm1, %v884_v43, 0.0 }
 0x179   :  { %v957_v38 = vadd.f32 %v956_v36, %v955_v20  ;;  %v886_v20 = vmul.f32 %v5205_v21, %v5205_v21  ;;  %v966_v35 = vsel %vm668_vm1, %v885_v19, 0.0 }
 0x17b   :  { %v959_v14 = vadd.f32 %v958_v56, %v957_v38  ;;  %v887_v38 = vmul.f32 %v5212_v12, %v5212_v12  ;;  %v968_v43 = vsel %vm668_vm1, %v886_v20, 0.0 }
 0x17d   :  { %v961_v31 = vadd.f32 %v960_v7, %v959_v14  ;;  %v888_v14 = vmul.f32 %v5219_v18, %v5219_v18  ;;  %v970_v19 = vsel %vm668_vm1, %v887_v38, 0.0 }
 0x17f   :  { %v963_v44 = vadd.f32 %v962_v32, %v961_v31  ;;  %v889_v31 = vmul.f32 %v5226_v27, %v5226_v27  ;;  %v972_v20 = vsel %vm668_vm1, %v888_v14, 0.0 }
 0x181   :  { %v965_v36 = vadd.f32 %v964_v25, %v963_v44  ;;  %v890_v44 = vmul.f32 %v5233_v37, %v5233_v37  ;;  %v974_v38 = vsel %vm668_vm1, %v889_v31, 0.0 }
 0x183   :  { %v967_v56 = vadd.f32 %v966_v35, %v965_v36  ;;  %v891_v36 = vmul.f32 %v5240_v24, %v5240_v24  ;;  %v976_v14 = vsel %vm668_vm1, %v890_v44, 0.0 }
 0x185   :  { %v969_v7 = vadd.f32 %v968_v43, %v967_v56  ;;  %v892_v56 = vmul.f32 %v5247_v30, %v5247_v30  ;;  %v978_v31 = vsel %vm668_vm1, %v891_v36, 0.0 }
 0x187   :  { %v971_v32 = vadd.f32 %v970_v19, %v969_v7  ;;  %v893_v7 = vmul.f32 %v5254_v45, %v5254_v45  ;;  %v980_v44 = vsel %vm668_vm1, %v892_v56, 0.0 }
 0x189   :  { %v973_v25 = vadd.f32 %v972_v20, %v971_v32  ;;  %v894_v32 = vmul.f32 %v5261_v54, %v5261_v54  ;;  %v982_v36 = vsel %vm668_vm1, %v893_v7, 0.0 }
 0x18b   :  { %v975_v35 = vadd.f32 %v974_v38, %v973_v25  ;;  %v895_v25 = vmul.f32 %v5268_v41, %v5268_v41  ;;  %v984_v56 = vsel %vm668_vm1, %v894_v32, 0.0 }
 0x18d   :  { %v977_v43 = vadd.f32 %v976_v14, %v975_v35  ;;  %v896_v35 = vmul.f32 %v5275_v50, %v5275_v50  ;;  %v986_v7 = vsel %vm668_vm1, %v895_v25, 0.0 }
 0x18f   :  { %v979_v19 = vadd.f32 %v978_v31, %v977_v43  ;;  %v897_v43 = vmul.f32 %v5282_v63, %v5282_v63  ;;  %v988_v32 = vsel %vm668_vm1, %v896_v35, 0.0 }
 0x191   :  { %v981_v20 = vadd.f32 %v980_v44, %v979_v19  ;;  %v898_v19 = vmul.f32 %v5289_v8, %v5289_v8  ;;  %v990_v25 = vsel %vm668_vm1, %v897_v43, 0.0 }
 0x193   :  { %v983_v38 = vadd.f32 %v982_v36, %v981_v20  ;;  %v899_v20 = vmul.f32 %v5296_v59, %v5296_v59  ;;  %v992_v35 = vsel %vm668_vm1, %v898_v19, 0.0 }
 0x195   :  { %v985_v14 = vadd.f32 %v984_v56, %v983_v38  ;;  %v900_v38 = vmul.f32 %v5303_v4, %v5303_v4  ;;  %v994_v43 = vsel %vm668_vm1, %v899_v20, 0.0 }
 0x197   :  { %v987_v31 = vadd.f32 %v986_v7, %v985_v14  ;;  %v901_v14 = vmul.f32 %v5310_v17, %v5310_v17  ;;  %v996_v19 = vsel %vm668_vm1, %v900_v38, 0.0 }
 0x199   :  { %v989_v44 = vadd.f32 %v988_v32, %v987_v31  ;;  %v7267_v31 = vld [vmem:[#allocation5_spill] sm:$0xff]  ;;  %v902_v32 = vmul.f32 %v5317_v26, %v5317_v26  ;;  %v998_v20 = vsel %vm668_vm1, %v901_v14, 0.0 }
 0x19a   :  { %v5331_v22 = vsub.f32 %v7267_v31, %v5052_v5 }
 0x19b   :  { %v991_v36 = vadd.f32 %v990_v25, %v989_v44  ;;  %v7269_v25 = vld [vmem:[#allocation3_spill] sm:$0xff]  ;;  %v1000_v38 = vsel %vm668_vm1, %v902_v32, 0.0 }
 0x19c   :  { %7268 = vst [vmem:[#allocation5_spill] sm:$0xff] %v5331_v22  ;;  %v5338_v39 = vsub.f32 %v7269_v25, %v5052_v5  ;;  %v904_v31 = vmul.f32 %v5331_v22, %v5331_v22 }
 0x19d   :  { %v993_v56 = vadd.f32 %v992_v35, %v991_v36  ;;  %v903_v36 = vmul.f32 %v5324_v13, %v5324_v13 }
 0x19e   :  { %7270 = vst [vmem:[#allocation3_spill] sm:$0xff] %v5338_v39  ;;  %v905_v13 = vmul.f32 %v5338_v39, %v5338_v39  ;;  %v1004_v32 = vsel %vm668_vm1, %v904_v31, 0.0 }
 0x19f   :  { %v995_v7 = vadd.f32 %v994_v43, %v993_v56  ;;  %v7271_v56 = vld [vmem:[#allocation4_spill] sm:$0xff]  ;;  %v1002_v14 = vsel %vm668_vm1, %v903_v36, 0.0 }
 0x1a0   :  { %v5345_v43 = vsub.f32 %v7271_v56, %v5052_v5  ;;  %v1006_v36 = vsel %vm668_vm1, %v905_v13, 0.0 }
 0x1a1   :  { %v997_v44 = vadd.f32 %v996_v19, %v995_v7  ;;  %v7273_v19 = vld [vmem:[#allocation7_spill] sm:$0xff] }
 0x1a2   :  { %7272 = vst [vmem:[#allocation4_spill] sm:$0xff] %v5345_v43  ;;  %v5352_v25 = vsub.f32 %v7273_v19, %v5052_v5  ;;  %v906_v22 = vmul.f32 %v5345_v43, %v5345_v43 }
 0x1a3   :  { %v999_v35 = vadd.f32 %v998_v20, %v997_v44  ;;  %v7275_v20 = vld [vmem:[#allocation9_spill] sm:$0xff] }
 0x1a4   :  { %7274 = vst [vmem:[#allocation7_spill] sm:$0xff] %v5352_v25  ;;  %v5359_v56 = vsub.f32 %v7275_v20, %v5052_v5  ;;  %v907_v39 = vmul.f32 %v5352_v25, %v5352_v25  ;;  %v1008_v31 = vsel %vm668_vm1, %v906_v22, 0.0  ;;  %v7282_v22 = vld [vmem:[#allocation10_spill] sm:$0xff] }
 0x1a5   :  { %v1001_v7 = vadd.f32 %v1000_v38, %v999_v35  ;;  %v7277_v38 = vld [vmem:[#allocation6_spill] sm:$0xff] }
 0x1a6   :  { %7276 = vst [vmem:[#allocation9_spill] sm:$0xff] %v5359_v56  ;;  %v5366_v19 = vsub.f32 %v7277_v38, %v5052_v5  ;;  %v908_v43 = vmul.f32 %v5359_v56, %v5359_v56  ;;  %v1010_v13 = vsel %vm668_vm1, %v907_v39, 0.0  ;;  %v7226_v56 = vmov 0.0  }
 0x1a7   :  { %v1003_v44 = vadd.f32 %v1002_v14, %v1001_v7  ;;  %v7278_v14 = vld [vmem:[#allocation8_spill] sm:$0xff]  ;;  %1272 = vst.msk [vmem:[#allocation2] sm:$0xff] %vm668_vm1, %v7226_v56  ;;  %1273 = vst.msk [vmem:[#allocation2 + $0x8] sm:$0xff] %vm668_vm1, %v7226_v56  ;;  %v5398_v39 = vsub.f32 %v7282_v22, %v5052_v5 }
 0x1a8   :  { %v5373_v20 = vsub.f32 %v7278_v14, %v5052_v5  ;;  %v909_v25 = vmul.f32 %v5366_v19, %v5366_v19  ;;  %v1012_v14 = vsel %vm668_vm1, %v908_v43, 0.0  ;;  %1276 = vst.msk [vmem:[#allocation2 + $0x1b0] sm:$0xff] %vm668_vm1, %v7226_v56  ;;  %1277 = vst.msk [vmem:[#allocation2 + $0x1b8] sm:$0xff] %vm668_vm1, %v7226_v56 }
 0x1a9   :  { %v1005_v35 = vadd.f32 %v1004_v32, %v1003_v44  ;;  %v7280_v32 = vld [vmem:[#allocation11_spill] sm:$0xff]  ;;  %1287 = vst.msk [vmem:[#allocation2] sm:$0x1] %vm1286_vm2, %v7226_v56  ;;  %1289 = vst.msk [vmem:[#allocation2 + $0x30] sm:$0x1] %vm1286_vm2, %v7226_v56 }
 0x1aa   :  { %7279 = vst [vmem:[#allocation6_spill] sm:$0xff] %v5373_v20  ;;  %v5380_v38 = vsub.f32 %v7280_v32, %v5052_v5  ;;  %1288 = vst.msk [vmem:[#allocation2 + $0x18] sm:$0x1] %vm1286_vm2, %v7226_v56 }
 0x1ab   :  { %v1007_v7 = vadd.f32 %v1006_v36, %v1005_v35  ;;  %v910_v36 = vmul.f32 %v5373_v20, %v5373_v20  ;;  %1290 = vst.msk [vmem:[#allocation2 + $0x48] sm:$0x1] %vm1286_vm2, %v7226_v56  ;;  %1291 = vst.msk [vmem:[#allocation2 + $0x60] sm:$0x1] %vm1286_vm2, %v7226_v56 }
 0x1ac   :  { %7281 = vst [vmem:[#allocation8_spill] sm:$0xff] %v5380_v38  ;;  %v911_v43 = vmul.f32 %v5380_v38, %v5380_v38  ;;  %1292 = vst.msk [vmem:[#allocation2 + $0x78] sm:$0x1] %vm1286_vm2, %v7226_v56 }
 0x1ad   :  { %v1009_v44 = vadd.f32 %v1008_v31, %v1007_v7  ;;  %v1014_v7 = vsel %vm668_vm1, %v909_v25, 0.0  ;;  %v4046_v31 = vld [vmem:[%s7190_s4 + $0x4] sm:$0xf]  ;;  %1293 = vst.msk [vmem:[#allocation2 + $0x90] sm:$0x1] %vm1286_vm2, %v7226_v56 }
 0x1ae   :  { %1294 = vst.msk [vmem:[#allocation2 + $0xa8] sm:$0x1] %vm1286_vm2, %v7226_v56  ;;  %1295 = vst.msk [vmem:[#allocation2 + $0xc0] sm:$0x1] %vm1286_vm2, %v7226_v56  ;;  %4552 = vmatprep.subr.msk.bf16.mxu1 %vm1530_vm3, %v4046_v31  ;;  %v1532_v32 = vsel %vm1530_vm3, %v4046_v31, 0 }
 0x1af   :  { %v1011_v35 = vadd.f32 %v1010_v13, %v1009_v44  ;;  %v4081_v44 = vld [vmem:[%s7190_s4 + $0x10] sm:$0xf]  ;;  %1296 = vst.msk [vmem:[#allocation2 + $0xd8] sm:$0x1] %vm1286_vm2, %v7226_v56  ;;  %1297 = vst.msk [vmem:[#allocation2 + $0xf0] sm:$0x1] %vm1286_vm2, %v7226_v56  ;;  %4353 = vmatpush3.bf16.msra.mxu1 %v1532_v32 }
 0x1b0   :  { %1298 = vst.msk [vmem:[#allocation2 + $0x108] sm:$0x1] %vm1286_vm2, %v7226_v56  ;;  %1299 = vst.msk [vmem:[#allocation2 + $0x120] sm:$0x1] %vm1286_vm2, %v7226_v56  ;;  %4556 = vmatprep.subr.msk.bf16.mxu0 %vm1530_vm3, %v4081_v44  ;;  %v2185_v13 = vsel %vm1530_vm3, %v4081_v44, 0  ;;  %v913_v44 = vmul.f32 %v5398_v39, %v5398_v39 }
 0x1b1   :  { %v1013_v26 = vadd.f32 %v1012_v14, %v1011_v35  ;;  %1300 = vst.msk [vmem:[#allocation2 + $0x138] sm:$0x1] %vm1286_vm2, %v7226_v56  ;;  %1301 = vst.msk [vmem:[#allocation2 + $0x150] sm:$0x1] %vm1286_vm2, %v7226_v56  ;;  %v5484_v35 = vld [vmem:[%s7190_s4] sm:$0xf]  ;;  %4425 = vmatpush3.bf16.msra.mxu0 %v2185_v13 }
 0x1b2   :  { %1302 = vst.msk [vmem:[#allocation2 + $0x168] sm:$0x1] %vm1286_vm2, %v7226_v56  ;;  %1303 = vst.msk [vmem:[#allocation2 + $0x180] sm:$0x1] %vm1286_vm2, %v7226_v56  ;;  %v7284_v14 = vld [vmem:[#allocation12_spill] sm:$0xff]  ;;  %4553 = vmatprep.subr.msk.bf16.mxu1 %vm1530_vm3, %v5484_v35  ;;  %v7285_v13 = vmov 0.0  }
 0x1b3   :  { %1305 = vst.msk [vmem:[#allocation2 + $0x1b0] sm:$0x1] %vm1286_vm2, %v7226_v56  ;;  %1306 = vst.msk [vmem:[#allocation2 + $0x1c8] sm:$0x1] %vm1286_vm2, %v7226_v56  ;;  %v1015_v25 = vadd.f32 %v1014_v7, %v1013_v26  ;;  %v5488_v22 = vsub.f32 %v7284_v14, %v5052_v5  ;;  %v912_v26 = vmul.f32 %v5055_v2, %v5055_v2  ;;  %v1016_v7 = vsel %vm668_vm1, %v910_v36, 0.0 }
 0x1b4   :  { %1307 = vst.msk [vmem:[#allocation2 + $0x1e0] sm:$0x1] %vm1286_vm2, %v7226_v56  ;;  %1308 = vst.msk [vmem:[#allocation2 + $0x1f8] sm:$0x1] %vm1286_vm2, %v7226_v56  ;;  %v915_v36 = vmul.f32 %v5058_v57, %v5058_v57 }
 0x1b5   :  { %1309 = vst.msk [vmem:[#allocation2 + $0x210] sm:$0x1] %vm1286_vm2, %v7226_v56  ;;  %1310 = vst.msk [vmem:[#allocation2 + $0x228] sm:$0x1] %vm1286_vm2, %v7226_v56  ;;  %v1017_v31 = vadd.f32 %v1016_v7, %v1015_v25  ;;  %v914_v14 = vmul.f32 %v5488_v22, %v5488_v22  ;;  %v1020_v20 = vsel %vm668_vm1, %v912_v26, 0.0  ;;  %v1022_v25 = vsel %vm668_vm1, %v913_v44, 0.0 }
 0x1b6   :  { %1311 = vst.msk [vmem:[#allocation2 + $0x240] sm:$0x1] %vm1286_vm2, %v7226_v56  ;;  %1312 = vst.msk [vmem:[#allocation2 + $0x258] sm:$0x1] %vm1286_vm2, %v7226_v56 }
 0x1b7   :  { %1313 = vst.msk [vmem:[#allocation2 + $0x270] sm:$0x1] %vm1286_vm2, %v7226_v56  ;;  %1314 = vst.msk [vmem:[#allocation2 + $0x288] sm:$0x1] %vm1286_vm2, %v7226_v56 }
 0x1b8   :  { %1315 = vst.msk [vmem:[#allocation2 + $0x2a0] sm:$0x1] %vm1286_vm2, %v7226_v56  ;;  %1316 = vst.msk [vmem:[#allocation2 + $0x2b8] sm:$0x1] %vm1286_vm2, %v7226_v56 }
 0x1b9   :  { %1317 = vst.msk [vmem:[#allocation2 + $0x2d0] sm:$0x1] %vm1286_vm2, %v7226_v56  ;;  %1318 = vst.msk [vmem:[#allocation2 + $0x2e8] sm:$0x1] %vm1286_vm2, %v7226_v56 }
 0x1ba   :  { %1319 = vst.msk [vmem:[#allocation2 + $0x300] sm:$0x1] %vm1286_vm2, %v7226_v56  ;;  %1320 = vst.msk [vmem:[#allocation2 + $0x318] sm:$0x1] %vm1286_vm2, %v7226_v56 }
 0x1bb   :  { %1321 = vst.msk [vmem:[#allocation2 + $0x330] sm:$0x1] %vm1286_vm2, %v7226_v56  ;;  %7283 = vst [vmem:[#allocation11_spill] sm:$0xff] %v5484_v35  ;;  %v1018_v56 = vsel %vm668_vm1, %v911_v43, 0.0  ;;  %v1024_v43 = vsel %vm668_vm1, %v914_v14, 0.0  ;;  %v919_v14 = vmul.f32 %v5070_v29, %v5070_v29  ;;  %v7289_v29 = vld [vmem:[#allocation16_spill] sm:$0xff] }
 0x1bc   :  { %v1019_v38 = vadd.f32 %v1018_v56, %v1017_v31  ;;  %1275 = vst.msk [vmem:[#allocation2 + $0x10] sm:$0x3] %vm1274_vm4, %v7285_v13  ;;  %1278 = vst.msk [vmem:[#allocation2 + $0x1c0] sm:$0x3] %vm1274_vm4, %v7285_v13  ;;  %v916_v56 = vmul.f32 %v5061_v47, %v5061_v47  ;;  %v7286_v31 = vld [vmem:[#allocation17_spill] sm:$0xff] }
 0x1bd   :  { %v5514_v44 = vsub.f32 %v7286_v31, %v5052_v5  ;;  %v7287_v31 = vld [vmem:[#allocation14_spill] sm:$0xff] }
 0x1be   :  { %v1021_v2 = vadd.f32 %v1020_v20, %v1019_v38  ;;  %v917_v20 = vmul.f32 %v5064_v42, %v5064_v42  ;;  %v1026_v38 = vsel %vm668_vm1, %v915_v36, 0.0  ;;  %v5527_v35 = vsub.f32 %v7287_v31, %v5052_v5 }
 0x1bf   :  { %v920_v36 = vmul.f32 %v5514_v44, %v5514_v44 }
 0x1c0   :  { %v1023_v32 = vadd.f32 %v1022_v25, %v1021_v2  ;;  %v918_v2 = vmul.f32 %v5067_v10, %v5067_v10  ;;  %v1028_v25 = vsel %vm668_vm1, %v916_v56, 0.0  ;;  %7288 = vst [vmem:[#allocation10_spill] sm:$0xff] %v5527_v35  ;;  %v921_v56 = vmul.f32 %v5073_v53, %v5073_v53 }
 0x1c1   :  { %v923_v31 = vmul.f32 %v5527_v35, %v5527_v35 }
 0x1c2   :  { %v1025_v7 = vadd.f32 %v1024_v43, %v1023_v32  ;;  %v1030_v32 = vsel %vm668_vm1, %v917_v20, 0.0  ;;  %v5534_v20 = vsub.f32 %v7289_v29, %v5052_v5 }
 0x1c4   :  { %v1027_v26 = vadd.f32 %v1026_v38, %v1025_v7  ;;  %v1032_v7 = vsel %vm668_vm1, %v918_v2, 0.0  ;;  %7290 = vst [vmem:[#allocation12_spill] sm:$0xff] %v5534_v20  ;;  %v1036_v2 = vsel %vm668_vm1, %v920_v36, 0.0 }
 0x1c6   :  { %v1029_v13 = vadd.f32 %v1028_v25, %v1027_v26  ;;  %v1034_v26 = vsel %vm668_vm1, %v919_v14, 0.0  ;;  %v1038_v14 = vsel %vm668_vm1, %v921_v56, 0.0 }
 0x1c8   :  { %v1031_v43 = vadd.f32 %v1030_v32, %v1029_v13  ;;  %v922_v13 = vmul.f32 %v5076_v51, %v5076_v51  ;;  %v924_v51 = vmul.f32 %v5534_v20, %v5534_v20 }
 0x1ca   :  { %v1033_v38 = vadd.f32 %v1032_v7, %v1031_v43  ;;  %v7291_v43 = vld [vmem:[#allocation13_spill] sm:$0xff]  ;;  %v1040_v36 = vsel %vm668_vm1, %v922_v13, 0.0  ;;  %v864_v13 = vsub.f32 %v5042_v48, %v5052_v5 }
 0x1cb   :  { %v5541_v7 = vsub.f32 %v7291_v43, %v5052_v5  ;;  %v7296_v43 = vld [vmem:[#allocation18_spill] sm:$0xff] }
 0x1cc   :  { %v1035_v25 = vadd.f32 %v1034_v26, %v1033_v38  ;;  %v7293_v26 = vld [vmem:[#allocation15_spill] sm:$0xff]  ;;  %v5560_v35 = vsub.f32 %v7296_v43, %v5052_v5  ;;  %v5574_v43 = vsub.f32 %v5026_v16, %v5052_v5  ;;  %v928_v48 = vmul.f32 %v864_v13, %v864_v13 }
 0x1cd   :  { %7292 = vst [vmem:[#allocation17_spill] sm:$0xff] %v5541_v7  ;;  %v5548_v29 = vsub.f32 %v7293_v26, %v5052_v5  ;;  %v925_v56 = vmul.f32 %v5541_v7, %v5541_v7  ;;  %v1044_v26 = vsel %vm668_vm1, %v924_v51, 0.0 }
 0x1ce   :  { %v1037_v32 = vadd.f32 %v1036_v2, %v1035_v25  ;;  %v5556_v2 = vld [vmem:[%s7190_s4 + $0x18] sm:$0xf]  ;;  %7297 = vst [vmem:[#allocation13_spill] sm:$0xff] %v5560_v35  ;;  %7298 = vst [vmem:[#allocation15_spill] sm:$0xff] %v5574_v43  ;;  %v929_v51 = vmul.f32 %v5574_v43, %v5574_v43 }
 0x1cf   :  { %7294 = vst [vmem:[#allocation14_spill] sm:$0xff] %v5548_v29  ;;  %7295 = vst [vmem:[#allocation16_spill] sm:$0xff] %v5556_v2  ;;  %4558 = vmatprep.subr.msk.bf16.mxu0 %vm1530_vm3, %v5556_v2  ;;  %v1046_v7 = vsel %vm668_vm1, %v925_v56, 0.0  ;;  %v1052_v56 = vsel %vm668_vm1, %v928_v48, 0.0  ;;  %v666_v48 = vld [vmem:[%s7191_s2] sm:$0x1] }
 0x1d0   :  { %v1039_v38 = vadd.f32 %v1038_v14, %v1037_v32  ;;  %v1042_v32 = vsel %vm668_vm1, %v923_v31, 0.0  ;;  %v927_v31 = vmul.f32 %v5560_v35, %v5560_v35 }
 0x1d2   :  { %v1041_v25 = vadd.f32 %v1040_v36, %v1039_v38  ;;  %v926_v38 = vmul.f32 %v5548_v29, %v5548_v29  ;;  %v1050_v16 = vsel %vm668_vm1, %v927_v31, 0.0 }
 0x1d4   :  { %v1043_v14 = vadd.f32 %v1042_v32, %v1041_v25  ;;  %v5581_v25 = vsub.f32 %v5036_v28, %v5052_v5  ;;  %v1048_v32 = vsel %vm668_vm1, %v926_v38, 0.0 }
 0x1d6   :  { %v1045_v36 = vadd.f32 %v1044_v26, %v1043_v14  ;;  %7299 = vst [vmem:[#allocation18_spill] sm:$0xff] %v5581_v25  ;;  %v930_v26 = vmul.f32 %v5581_v25, %v5581_v25 }
 0x1d8   :  { %v1047_v2 = vadd.f32 %v1046_v7, %v1045_v36  ;;  %v1054_v36 = vsel %vm668_vm1, %v929_v51, 0.0  ;;  %v1056_v5 = vsel %vm668_vm1, %v930_v26, 0.0 }
 0x1da   :  { %v1049_v29 = vadd.f32 %v1048_v32, %v1047_v2 }
 0x1dc   :  { %v1051_v14 = vadd.f32 %v1050_v16, %v1049_v29  ;;  %v1069_v16 = vlaneseq }
 0x1de   :  { %v1053_v7 = vadd.f32 %v1052_v56, %v1051_v14  ;;  %v1070_v25 = vshrl.u32 %v1069_v16, 7 }
 0x1e0   :  { %v1055_v28 = vadd.f32 %v1054_v36, %v1053_v7  ;;  %v5595_v51 = vsub.s32 0, %v1070_v25 }
 0x1e2   :  { %v1057_v35 = vadd.f32 %v1056_v5, %v1055_v28  ;;  %7300 = vst [vmem:[#allocation25_spill] sm:$0xff] %v5595_v51  ;;  %v7301_v5 = vld [vmem:[#allocation23_spill] sm:$0xff] }
 0x1e4   :  { %v1058_v38 = vrot.slane %v1057_v35, 4 }
 0x1e6   :  { %v1059_v2 = vadd.f32 %v1058_v38, %v1057_v35  ;;  %v5603_v35 = vld [vmem:[%s7192_s3] ss:$0 sm:$0xff]  ;;  %v7302_v38 = vld [vmem:[#allocation24_spill] sm:$0xff] }
 0x1e8   :  { %v1060_v32 = vrot.slane %v1059_v2, 2 }
 0x1ea   :  { %v1061_v20 = vadd.f32 %v1060_v32, %v1059_v2  ;;  %v7303_v2 = vld [vmem:[#allocation5_spill] sm:$0xff]  ;;  %v7304_v32 = vld [vmem:[#allocation3_spill] sm:$0xff] }
 0x1ec   :  { %v1062_v43 = vrot.slane %v1061_v20, 1 }
 0x1ee   :  { %v1063_v53 = vadd.f32 %v1062_v43, %v1061_v20 }
 0x1f0   :  { %v1064_v31 = vmul.f32 0.001953125, %v1063_v53 }
 0x1f2   :  { %v1065_v29 = vadd.f32 1e-05, %v1064_v31  ;;  %v7305_v31 = vld [vmem:[#allocation4_spill] sm:$0xff] }
 0x1f4   :  { %4605 = vrsqrt.f32 %v1065_v29  ;;  %v7306_v29 = vld [vmem:[#allocation7_spill] sm:$0xff] }
 0x201   :  { %v4606_v14 = vpop.eup %4605 }
 0x202   :  { %v1067_v26 = vmul.f32 %v4606_v14, %v666_v48  ;;  %v7307_v48 = vld [vmem:[#allocation9_spill] sm:$0xff] }
 0x204   :  { %v5598_v56 = vrot.slane %v1067_v26, %v5595_v51  ;;  %v7319_v51 = vld [vmem:[#allocation10_spill] sm:$0xff] }
 0x206   :  { %v1135_v53 = vmul.f32 %v5598_v56, %v864_v13  ;;  %v5608_v20 = vmul.f32 %v5598_v56, %v5080_v1  ;;  %v5612_v43 = vmul.f32 %v5598_v56, %v5084_v62  ;;  %v5616_v25 = vmul.f32 %v5598_v56, %v5088_v11 }
 0x207   :  { %v5620_v7 = vmul.f32 %v5598_v56, %v5092_v23  ;;  %v5624_v36 = vmul.f32 %v5598_v56, %v5100_v34  ;;  %v5628_v1 = vmul.f32 %v5598_v56, %v5106_v33  ;;  %v5632_v62 = vmul.f32 %v5598_v56, %v5114_v60 }
 0x208   :  { %v1205_v13 = vadd.f32 %v5603_v35, %v1135_v53  ;;  %v5637_v11 = vmul.f32 %v5598_v56, %v5121_v49  ;;  %v5641_v23 = vmul.f32 %v5598_v56, %v5128_v40  ;;  %v5645_v34 = vmul.f32 %v5598_v56, %v5135_v46  ;;  %v7308_v53 = vld [vmem:[#allocation6_spill] sm:$0xff] }
 0x209   :  { %v5649_v33 = vmul.f32 %v5598_v56, %v5142_v55  ;;  %v5653_v60 = vmul.f32 %v5598_v56, %v5149_v61  ;;  %v5657_v49 = vmul.f32 %v5598_v56, %v5156_v52  ;;  %v5661_v40 = vmul.f32 %v5598_v56, %v5163_v58 }
 0x20a   :  { %v1269_v28 = vmax.f32 %v1205_v13, 0.0  ;;  %v5665_v46 = vmul.f32 %v5598_v56, %v5170_v3  ;;  %v5669_v55 = vmul.f32 %v5598_v56, %v5177_v9  ;;  %v5673_v61 = vmul.f32 %v5598_v56, %v5184_v0 }
 0x20b   :  { %v5677_v52 = vmul.f32 %v5598_v56, %v5191_v6  ;;  %v5681_v58 = vmul.f32 %v5598_v56, %v5198_v15  ;;  %v5685_v3 = vmul.f32 %v5598_v56, %v5205_v21  ;;  %v5689_v9 = vmul.f32 %v5598_v56, %v5212_v12 }
 0x20c   :  { %1421 = vst.msk [vmem:[#allocation2 + $0x321] sm:$0xff] %vm668_vm1, %v1269_v28  ;;  %v5694_v0 = vmul.f32 %v5598_v56, %v5219_v18  ;;  %v5698_v6 = vmul.f32 %v5598_v56, %v5226_v27  ;;  %v5702_v15 = vmul.f32 %v5598_v56, %v5233_v37  ;;  %v5706_v21 = vmul.f32 %v5598_v56, %v5240_v24  ;;  %v7309_v28 = vld [vmem:[#allocation8_spill] sm:$0xff] }
 0x20d   :  { %v5710_v12 = vmul.f32 %v5598_v56, %v5247_v30  ;;  %v5714_v18 = vmul.f32 %v5598_v56, %v5254_v45  ;;  %v5718_v27 = vmul.f32 %v5598_v56, %v5261_v54  ;;  %v5722_v37 = vmul.f32 %v5598_v56, %v5268_v41 }
 0x20e   :  { %v5726_v24 = vmul.f32 %v5598_v56, %v5275_v50  ;;  %v5730_v30 = vmul.f32 %v5598_v56, %v5282_v63  ;;  %v5734_v45 = vmul.f32 %v5598_v56, %v5289_v8  ;;  %v5738_v54 = vmul.f32 %v5598_v56, %v5296_v59 }
 0x20f   :  { %v5742_v41 = vmul.f32 %v5598_v56, %v5303_v4  ;;  %v5746_v50 = vmul.f32 %v5598_v56, %v5310_v17  ;;  %v5750_v63 = vmul.f32 %v5598_v56, %v7301_v5  ;;  %v5754_v8 = vmul.f32 %v5598_v56, %v7302_v38  ;;  %v7310_v38 = vld [vmem:[#allocation19_spill] sm:$0xff] }
 0x210   :  { %v5758_v59 = vmul.f32 %v5598_v56, %v7303_v2  ;;  %v5762_v4 = vmul.f32 %v5598_v56, %v7304_v32  ;;  %v5766_v17 = vmul.f32 %v5598_v56, %v7305_v31  ;;  %v5770_v16 = vmul.f32 %v5598_v56, %v7306_v29 }
 0x211   :  { %v5774_v14 = vmul.f32 %v5598_v56, %v7307_v48  ;;  %v5778_v26 = vmul.f32 %v5598_v56, %v5366_v19  ;;  %v5782_v13 = vmul.f32 %v5598_v56, %v7308_v53  ;;  %v5786_v5 = vmul.f32 %v5598_v56, %v7309_v28  ;;  %v7312_v53 = vld [vmem:[#allocation20_spill] sm:$0xff]  ;;  %v7315_v28 = vld [vmem:[#allocation21_spill] sm:$0xff] }
 0x212   :  { %v5790_v2 = vmul.f32 %v5598_v56, %v7310_v38  ;;  %v5794_v32 = vmul.f32 %v5598_v56, %v5398_v39  ;;  %v5798_v19 = vmul.f32 %v5598_v56, %v5488_v22  ;;  %v5802_v31 = vmul.f32 %v5598_v56, %v5058_v57  ;;  %v7317_v38 = vld [vmem:[#allocation22_spill] sm:$0xff] }
 0x213   :  { %v5806_v29 = vmul.f32 %v5598_v56, %v5061_v47  ;;  %v5810_v48 = vmul.f32 %v5598_v56, %v5064_v42  ;;  %v5814_v39 = vmul.f32 %v5598_v56, %v5067_v10  ;;  %v5818_v22 = vmul.f32 %v5598_v56, %v7312_v53 }
 0x214   :  { %v5822_v57 = vmul.f32 %v5598_v56, %v5514_v44  ;;  %v5826_v47 = vmul.f32 %v5598_v56, %v7315_v28  ;;  %v5830_v42 = vmul.f32 %v5598_v56, %v7317_v38  ;;  %v5834_v10 = vmul.f32 %v5598_v56, %v7319_v51 }
 0x215   :  { %7311 = vst [vmem:[#allocation23_spill] sm:$0xff] %v5814_v39  ;;  %7313 = vst [vmem:[#allocation24_spill] sm:$0xff] %v5818_v22  ;;  %v7321_v39 = vld [vmem:[#allocation12_spill] sm:$0xff]  ;;  %v7322_v22 = vld [vmem:[#allocation17_spill] sm:$0xff] }
 0x216   :  { %7314 = vst [vmem:[#allocation5_spill] sm:$0xff] %v5822_v57  ;;  %7316 = vst [vmem:[#allocation3_spill] sm:$0xff] %v5826_v47  ;;  %v5838_v53 = vmul.f32 %v5598_v56, %v7321_v39  ;;  %v5842_v44 = vmul.f32 %v5598_v56, %v7322_v22  ;;  %v7323_v57 = vld [vmem:[#allocation14_spill] sm:$0xff]  ;;  %v7324_v47 = vld [vmem:[#allocation13_spill] sm:$0xff]  ;;  %v5862_v22 = vadd.f32 %v5603_v35, %v5608_v20 }
 0x217   :  { %7318 = vst [vmem:[#allocation4_spill] sm:$0xff] %v5830_v42  ;;  %7320 = vst [vmem:[#allocation7_spill] sm:$0xff] %v5834_v10  ;;  %v5846_v28 = vmul.f32 %v5598_v56, %v7323_v57  ;;  %v5850_v38 = vmul.f32 %v5598_v56, %v7324_v47  ;;  %v7325_v42 = vld [vmem:[#allocation15_spill] sm:$0xff]  ;;  %v7326_v10 = vld [vmem:[#allocation18_spill] sm:$0xff]  ;;  %v5866_v57 = vadd.f32 %v5603_v35, %v5612_v43 }
 0x218   :  { %v5854_v51 = vmul.f32 %v5598_v56, %v7325_v42  ;;  %v5858_v39 = vmul.f32 %v5598_v56, %v7326_v10  ;;  %v5870_v47 = vadd.f32 %v5603_v35, %v5616_v25  ;;  %v5874_v42 = vadd.f32 %v5603_v35, %v5620_v7 }
 0x219   :  { %v5878_v56 = vadd.f32 %v5603_v35, %v5624_v36  ;;  %v5882_v20 = vadd.f32 %v5603_v35, %v5628_v1  ;;  %v5886_v43 = vadd.f32 %v5603_v35, %v5632_v62  ;;  %v5890_v25 = vadd.f32 %v5603_v35, %v5637_v11 }
 0x21a   :  { %v5894_v7 = vadd.f32 %v5603_v35, %v5641_v23  ;;  %v5898_v36 = vadd.f32 %v5603_v35, %v5645_v34  ;;  %v5902_v1 = vadd.f32 %v5603_v35, %v5649_v33  ;;  %v5906_v62 = vadd.f32 %v5603_v35, %v5653_v60 }
 0x21b   :  { %v5910_v11 = vadd.f32 %v5603_v35, %v5657_v49  ;;  %v5914_v23 = vadd.f32 %v5603_v35, %v5661_v40  ;;  %v5918_v34 = vadd.f32 %v5603_v35, %v5665_v46  ;;  %v5922_v33 = vadd.f32 %v5603_v35, %v5669_v55 }
 0x21c   :  { %v5926_v60 = vadd.f32 %v5603_v35, %v5673_v61  ;;  %v5930_v49 = vadd.f32 %v5603_v35, %v5677_v52  ;;  %v5934_v40 = vadd.f32 %v5603_v35, %v5681_v58  ;;  %v5938_v46 = vadd.f32 %v5603_v35, %v5685_v3  ;;  %v7332_v10 = vld [vmem:[#allocation23_spill] sm:$0xff] }
 0x21d   :  { %v5942_v55 = vadd.f32 %v5603_v35, %v5689_v9  ;;  %v5946_v61 = vadd.f32 %v5603_v35, %v5694_v0  ;;  %v5950_v52 = vadd.f32 %v5603_v35, %v5698_v6  ;;  %v5954_v58 = vadd.f32 %v5603_v35, %v5702_v15 }
 0x21e   :  { %v5958_v3 = vadd.f32 %v5603_v35, %v5706_v21  ;;  %v5962_v9 = vadd.f32 %v5603_v35, %v5710_v12  ;;  %v5966_v0 = vadd.f32 %v5603_v35, %v5714_v18  ;;  %v5970_v6 = vadd.f32 %v5603_v35, %v5718_v27 }
 0x21f   :  { %v5974_v15 = vadd.f32 %v5603_v35, %v5722_v37  ;;  %v5978_v21 = vadd.f32 %v5603_v35, %v5726_v24  ;;  %v5982_v12 = vadd.f32 %v5603_v35, %v5730_v30  ;;  %v5986_v18 = vadd.f32 %v5603_v35, %v5734_v45 }
 0x220   :  { %v5990_v27 = vadd.f32 %v5603_v35, %v5738_v54  ;;  %v5994_v37 = vadd.f32 %v5603_v35, %v5742_v41  ;;  %v5998_v24 = vadd.f32 %v5603_v35, %v5746_v50  ;;  %v6002_v30 = vadd.f32 %v5603_v35, %v5750_v63 }
 0x221   :  { %v6006_v45 = vadd.f32 %v5603_v35, %v5754_v8  ;;  %v6010_v54 = vadd.f32 %v5603_v35, %v5758_v59  ;;  %v6014_v41 = vadd.f32 %v5603_v35, %v5762_v4  ;;  %v6018_v50 = vadd.f32 %v5603_v35, %v5766_v17 }
 0x222   :  { %v6022_v63 = vadd.f32 %v5603_v35, %v5770_v16  ;;  %v6026_v8 = vadd.f32 %v5603_v35, %v5774_v14  ;;  %v6030_v59 = vadd.f32 %v5603_v35, %v5778_v26  ;;  %v6034_v4 = vadd.f32 %v5603_v35, %v5782_v13 }
 0x223   :  { %v6038_v17 = vadd.f32 %v5603_v35, %v5786_v5  ;;  %v6042_v16 = vadd.f32 %v5603_v35, %v5790_v2  ;;  %v6046_v14 = vadd.f32 %v5603_v35, %v5794_v32  ;;  %v6050_v26 = vadd.f32 %v5603_v35, %v5798_v19 }
 0x224   :  { %v6054_v13 = vadd.f32 %v5603_v35, %v5802_v31  ;;  %v6058_v5 = vadd.f32 %v5603_v35, %v5806_v29  ;;  %v6062_v2 = vadd.f32 %v5603_v35, %v5810_v48  ;;  %v6066_v32 = vadd.f32 %v5603_v35, %v7332_v10 }
 0x225   :  { %7327 = vst [vmem:[#allocation9_spill] sm:$0xff] %v6046_v14  ;;  %7328 = vst [vmem:[#allocation6_spill] sm:$0xff] %v6050_v26  ;;  %v7333_v14 = vld [vmem:[#allocation24_spill] sm:$0xff]  ;;  %v7334_v26 = vld [vmem:[#allocation5_spill] sm:$0xff] }
 0x226   :  { %7329 = vst [vmem:[#allocation8_spill] sm:$0xff] %v6054_v13  ;;  %7330 = vst [vmem:[#allocation19_spill] sm:$0xff] %v6058_v5  ;;  %v6070_v19 = vadd.f32 %v5603_v35, %v7333_v14  ;;  %v6074_v31 = vadd.f32 %v5603_v35, %v7334_v26  ;;  %v7335_v13 = vld [vmem:[#allocation3_spill] sm:$0xff]  ;;  %v7336_v5 = vld [vmem:[#allocation4_spill] sm:$0xff]  ;;  %v6090_v14 = vadd.f32 %v5603_v35, %v5838_v53 }
 0x227   :  { %7331 = vst [vmem:[#allocation20_spill] sm:$0xff] %v6062_v2  ;;  %v6078_v29 = vadd.f32 %v5603_v35, %v7335_v13  ;;  %v6082_v48 = vadd.f32 %v5603_v35, %v7336_v5  ;;  %v7337_v2 = vld [vmem:[#allocation7_spill] sm:$0xff]  ;;  %v6094_v26 = vadd.f32 %v5603_v35, %v5842_v44  ;;  %v6098_v13 = vadd.f32 %v5603_v35, %v5846_v28 }
 0x228   :  { %v6086_v10 = vadd.f32 %v5603_v35, %v7337_v2  ;;  %7338 = vst [vmem:[#allocation21_spill] sm:$0xff] %v6090_v14  ;;  %v6102_v5 = vadd.f32 %v5603_v35, %v5850_v38  ;;  %v6106_v2 = vadd.f32 %v5603_v35, %v5854_v51  ;;  %v6110_v53 = vadd.f32 %v5603_v35, %v5858_v39 }
 0x229   :  { %7339 = vst [vmem:[#allocation22_spill] sm:$0xff] %v6094_v26  ;;  %7340 = vst [vmem:[#allocation10_spill] sm:$0xff] %v6098_v13  ;;  %v1208_v14 = vmax.f32 %v5862_v22, 0.0  ;;  %v1209_v44 = vmax.f32 %v5866_v57, 0.0  ;;  %v1210_v26 = vmax.f32 %v5870_v47, 0.0  ;;  %v1211_v28 = vmax.f32 %v5874_v42, 0.0 }
 0x22a   :  { %7341 = vst [vmem:[#allocation12_spill] sm:$0xff] %v6102_v5  ;;  %7342 = vst [vmem:[#allocation17_spill] sm:$0xff] %v6106_v2  ;;  %v1212_v13 = vmax.f32 %v5878_v56, 0.0  ;;  %v1213_v38 = vmax.f32 %v5882_v20, 0.0  ;;  %v1214_v5 = vmax.f32 %v5886_v43, 0.0  ;;  %v1215_v51 = vmax.f32 %v5890_v25, 0.0 }
 0x22b   :  { %v1216_v2 = vmax.f32 %v5894_v7, 0.0  ;;  %v1217_v35 = vmax.f32 %v5898_v36, 0.0  ;;  %v1218_v39 = vmax.f32 %v5902_v1, 0.0  ;;  %1360 = vst.msk [vmem:[#allocation2 + $0x19] sm:$0xff] %vm668_vm1, %v1208_v14  ;;  %1361 = vst.msk [vmem:[#allocation2 + $0x21] sm:$0xff] %vm668_vm1, %v1209_v44  ;;  %v1219_v22 = vmax.f32 %v5906_v62, 0.0 }
 0x22c   :  { %1362 = vst.msk [vmem:[#allocation2 + $0x31] sm:$0xff] %vm668_vm1, %v1210_v26  ;;  %v1220_v57 = vmax.f32 %v5910_v11, 0.0  ;;  %v1221_v47 = vmax.f32 %v5914_v23, 0.0  ;;  %v1222_v42 = vmax.f32 %v5918_v34, 0.0  ;;  %1363 = vst.msk [vmem:[#allocation2 + $0x39] sm:$0xff] %vm668_vm1, %v1211_v28  ;;  %v1223_v56 = vmax.f32 %v5922_v33, 0.0 }
 0x22d   :  { %1364 = vst.msk [vmem:[#allocation2 + $0x49] sm:$0xff] %vm668_vm1, %v1212_v13  ;;  %1365 = vst.msk [vmem:[#allocation2 + $0x51] sm:$0xff] %vm668_vm1, %v1213_v38  ;;  %v1224_v20 = vmax.f32 %v5926_v60, 0.0  ;;  %v1225_v43 = vmax.f32 %v5930_v49, 0.0  ;;  %v1226_v25 = vmax.f32 %v5934_v40, 0.0  ;;  %v1227_v7 = vmax.f32 %v5938_v46, 0.0 }
 0x22e   :  { %1366 = vst.msk [vmem:[#allocation2 + $0x61] sm:$0xff] %vm668_vm1, %v1214_v5  ;;  %1367 = vst.msk [vmem:[#allocation2 + $0x69] sm:$0xff] %vm668_vm1, %v1215_v51  ;;  %v1228_v36 = vmax.f32 %v5942_v55, 0.0  ;;  %v1229_v1 = vmax.f32 %v5946_v61, 0.0  ;;  %v1230_v62 = vmax.f32 %v5950_v52, 0.0  ;;  %v1231_v11 = vmax.f32 %v5954_v58, 0.0 }
 0x22f   :  { %1368 = vst.msk [vmem:[#allocation2 + $0x79] sm:$0xff] %vm668_vm1, %v1216_v2  ;;  %1369 = vst.msk [vmem:[#allocation2 + $0x81] sm:$0xff] %vm668_vm1, %v1217_v35  ;;  %v1232_v23 = vmax.f32 %v5958_v3, 0.0  ;;  %v1233_v34 = vmax.f32 %v5962_v9, 0.0  ;;  %v1234_v33 = vmax.f32 %v5966_v0, 0.0  ;;  %v1235_v60 = vmax.f32 %v5970_v6, 0.0 }
 0x230   :  { %1370 = vst.msk [vmem:[#allocation2 + $0x91] sm:$0xff] %vm668_vm1, %v1218_v39  ;;  %1371 = vst.msk [vmem:[#allocation2 + $0x99] sm:$0xff] %vm668_vm1, %v1219_v22  ;;  %v1236_v49 = vmax.f32 %v5974_v15, 0.0  ;;  %v1237_v40 = vmax.f32 %v5978_v21, 0.0  ;;  %v1238_v46 = vmax.f32 %v5982_v12, 0.0  ;;  %v1239_v55 = vmax.f32 %v5986_v18, 0.0 }
 0x231   :  { %1372 = vst.msk [vmem:[#allocation2 + $0xa9] sm:$0xff] %vm668_vm1, %v1220_v57  ;;  %1373 = vst.msk [vmem:[#allocation2 + $0xb1] sm:$0xff] %vm668_vm1, %v1221_v47  ;;  %v1240_v61 = vmax.f32 %v5990_v27, 0.0  ;;  %v1241_v52 = vmax.f32 %v5994_v37, 0.0  ;;  %v1242_v58 = vmax.f32 %v5998_v24, 0.0  ;;  %v1243_v3 = vmax.f32 %v6002_v30, 0.0 }
 0x232   :  { %1374 = vst.msk [vmem:[#allocation2 + $0xc1] sm:$0xff] %vm668_vm1, %v1222_v42  ;;  %1375 = vst.msk [vmem:[#allocation2 + $0xc9] sm:$0xff] %vm668_vm1, %v1223_v56  ;;  %v1244_v9 = vmax.f32 %v6006_v45, 0.0  ;;  %v1245_v0 = vmax.f32 %v6010_v54, 0.0  ;;  %v1246_v6 = vmax.f32 %v6014_v41, 0.0  ;;  %v1247_v15 = vmax.f32 %v6018_v50, 0.0 }
 0x233   :  { %1376 = vst.msk [vmem:[#allocation2 + $0xd9] sm:$0xff] %vm668_vm1, %v1224_v20  ;;  %1377 = vst.msk [vmem:[#allocation2 + $0xe1] sm:$0xff] %vm668_vm1, %v1225_v43  ;;  %v1248_v21 = vmax.f32 %v6022_v63, 0.0  ;;  %v1249_v12 = vmax.f32 %v6026_v8, 0.0  ;;  %v1250_v18 = vmax.f32 %v6030_v59, 0.0  ;;  %v1251_v27 = vmax.f32 %v6034_v4, 0.0 }
 0x234   :  { %1378 = vst.msk [vmem:[#allocation2 + $0xf1] sm:$0xff] %vm668_vm1, %v1226_v25  ;;  %1379 = vst.msk [vmem:[#allocation2 + $0xf9] sm:$0xff] %vm668_vm1, %v1227_v7  ;;  %v1252_v37 = vmax.f32 %v6038_v17, 0.0  ;;  %v1253_v24 = vmax.f32 %v6042_v16, 0.0  ;;  %v7343_v30 = vld [vmem:[#allocation9_spill] sm:$0xff]  ;;  %v7344_v8 = vld [vmem:[#allocation6_spill] sm:$0xff] }
 0x235   :  { %1380 = vst.msk [vmem:[#allocation2 + $0x109] sm:$0xff] %vm668_vm1, %v1228_v36  ;;  %1381 = vst.msk [vmem:[#allocation2 + $0x111] sm:$0xff] %vm668_vm1, %v1229_v1  ;;  %v1254_v45 = vmax.f32 %v7343_v30, 0.0  ;;  %v1465_v54 = vld [vmem:[#allocation2 + $0x1] ss:$2 sm:$0xff]  ;;  %v1255_v59 = vmax.f32 %v7344_v8, 0.0 }
 0x236   :  { %1382 = vst.msk [vmem:[#allocation2 + $0x121] sm:$0xff] %vm668_vm1, %v1230_v62  ;;  %1383 = vst.msk [vmem:[#allocation2 + $0x129] sm:$0xff] %vm668_vm1, %v1231_v11  ;;  %v1467_v41 = vld [vmem:[#allocation2 + $0x31] ss:$2 sm:$0xff]  ;;  %v7345_v4 = vld [vmem:[#allocation8_spill] sm:$0xff]  ;;  %v1259_v2 = vmax.f32 %v6066_v32, 0.0 }
 0x237   :  { %1384 = vst.msk [vmem:[#allocation2 + $0x139] sm:$0xff] %vm668_vm1, %v1232_v23  ;;  %1385 = vst.msk [vmem:[#allocation2 + $0x141] sm:$0xff] %vm668_vm1, %v1233_v34  ;;  %v2119_v50 = vld [vmem:[#allocation2 + $0x19] ss:$2 sm:$0xff]  ;;  %v2121_v63 = vld [vmem:[#allocation2 + $0x49] ss:$2 sm:$0xff]  ;;  %v1496_v25 = vpack.c.bf16 %v1467_v41, %v1465_v54 }
 0x238   :  { %1386 = vst.msk [vmem:[#allocation2 + $0x151] sm:$0xff] %vm668_vm1, %v1234_v33  ;;  %1387 = vst.msk [vmem:[#allocation2 + $0x159] sm:$0xff] %vm668_vm1, %v1235_v60  ;;  %v1256_v17 = vmax.f32 %v7345_v4, 0.0  ;;  %v7346_v14 = vld [vmem:[#allocation19_spill] sm:$0xff]  ;;  %v7347_v26 = vld [vmem:[#allocation20_spill] sm:$0xff]  ;;  %v1260_v44 = vmax.f32 %v6070_v19, 0.0  ;;  %v2150_v7 = vpack.c.bf16 %v2121_v63, %v2119_v50 }
 0x239   :  { %1388 = vst.msk [vmem:[#allocation2 + $0x169] sm:$0xff] %vm668_vm1, %v1236_v49  ;;  %1389 = vst.msk [vmem:[#allocation2 + $0x171] sm:$0xff] %vm668_vm1, %v1237_v40  ;;  %v1257_v16 = vmax.f32 %v7346_v14, 0.0  ;;  %v1258_v13 = vmax.f32 %v7347_v26, 0.0  ;;  %v1469_v5 = vld [vmem:[#allocation2 + $0x61] ss:$2 sm:$0xff]  ;;  %4354 = vmatprep.mubr.msk.bf16.mxu1 %vm668_vm1, %v1496_v25 }
 0x23a   :  { %1390 = vst.msk [vmem:[#allocation2 + $0x181] sm:$0xff] %vm668_vm1, %v1238_v46  ;;  %1391 = vst.msk [vmem:[#allocation2 + $0x189] sm:$0xff] %vm668_vm1, %v1239_v55  ;;  %v1261_v28 = vmax.f32 %v6074_v31, 0.0  ;;  %v1262_v38 = vmax.f32 %v6078_v29, 0.0  ;;  %v1471_v51 = vld [vmem:[#allocation2 + $0x91] ss:$2 sm:$0xff]  ;;  %4426 = vmatprep.mubr.msk.bf16.mxu0 %vm668_vm1, %v2150_v7 }
 0x23b   :  { %1392 = vst.msk [vmem:[#allocation2 + $0x1c9] sm:$0xff] %vm668_vm1, %v1240_v61  ;;  %1393 = vst.msk [vmem:[#allocation2 + $0x1d1] sm:$0xff] %vm668_vm1, %v1241_v52  ;;  %v1263_v35 = vmax.f32 %v6082_v48, 0.0  ;;  %v1264_v39 = vmax.f32 %v6086_v10, 0.0  ;;  %v7348_v32 = vld [vmem:[#allocation21_spill] sm:$0xff]  ;;  %v7349_v19 = vld [vmem:[#allocation22_spill] sm:$0xff] }
 0x23c   :  { %1394 = vst.msk [vmem:[#allocation2 + $0x1e1] sm:$0xff] %vm668_vm1, %v1242_v58  ;;  %1395 = vst.msk [vmem:[#allocation2 + $0x1e9] sm:$0xff] %vm668_vm1, %v1243_v3  ;;  %v1265_v22 = vmax.f32 %v7348_v32, 0.0  ;;  %v1266_v57 = vmax.f32 %v7349_v19, 0.0  ;;  %v2123_v31 = vld [vmem:[#allocation2 + $0x79] ss:$2 sm:$0xff] }
 0x23d   :  { %1396 = vst.msk [vmem:[#allocation2 + $0x1f9] sm:$0xff] %vm668_vm1, %v1244_v9  ;;  %1397 = vst.msk [vmem:[#allocation2 + $0x201] sm:$0xff] %vm668_vm1, %v1245_v0  ;;  %v7350_v29 = vld [vmem:[#allocation10_spill] sm:$0xff]  ;;  %v7351_v42 = vld [vmem:[#allocation12_spill] sm:$0xff]  ;;  %v1271_v10 = vmax.f32 %v6110_v53, 0.0  ;;  %v1497_v53 = vpack.c.bf16 %v1471_v51, %v1469_v5 }
 0x23e   :  { %1398 = vst.msk [vmem:[#allocation2 + $0x211] sm:$0xff] %vm668_vm1, %v1246_v6  ;;  %1399 = vst.msk [vmem:[#allocation2 + $0x219] sm:$0xff] %vm668_vm1, %v1247_v15  ;;  %v1267_v47 = vmax.f32 %v7350_v29, 0.0  ;;  %v1268_v56 = vmax.f32 %v7351_v42, 0.0  ;;  %v7352_v48 = vld [vmem:[#allocation17_spill] sm:$0xff]  ;;  %v7353_v23 = vld [vmem:[#allocation11_spill] sm:$0xff] }
 0x23f   :  { %1400 = vst.msk [vmem:[#allocation2 + $0x229] sm:$0xff] %vm668_vm1, %v1248_v21  ;;  %1401 = vst.msk [vmem:[#allocation2 + $0x231] sm:$0xff] %vm668_vm1, %v1249_v12  ;;  %v1270_v20 = vmax.f32 %v7352_v48, 0.0  ;;  %v2125_v43 = vld [vmem:[#allocation2 + $0xa9] ss:$2 sm:$0xff]  ;;  %v1656_v34 = vsel %vm1530_vm3, %v7353_v23, 0  ;;  %4355 = vmatmul.mubr.msk.bf16.vlgmr.msra.gmra.mxu1 %vm668_vm1, %v1497_v53 }
 0x240   :  { %1402 = vst.msk [vmem:[#allocation2 + $0x241] sm:$0xff] %vm668_vm1, %v1250_v18  ;;  %1403 = vst.msk [vmem:[#allocation2 + $0x249] sm:$0xff] %vm668_vm1, %v1251_v27  ;;  %v2151_v36 = vpack.c.bf16 %v2125_v43, %v2123_v31  ;;  %v1473_v1 = vld [vmem:[#allocation2 + $0xc1] ss:$2 sm:$0xff]  ;;  %v1475_v62 = vld [vmem:[#allocation2 + $0xf1] ss:$2 sm:$0xff]  ;;  %4371 = vmatpush3.bf16.msra.mxu1 %v1656_v34 }
 0x241   :  { %1404 = vst.msk [vmem:[#allocation2 + $0x259] sm:$0xff] %vm668_vm1, %v1252_v37  ;;  %1405 = vst.msk [vmem:[#allocation2 + $0x261] sm:$0xff] %vm668_vm1, %v1253_v24  ;;  %v2127_v11 = vld [vmem:[#allocation2 + $0xd9] ss:$2 sm:$0xff]  ;;  %v2129_v33 = vld [vmem:[#allocation2 + $0x109] ss:$2 sm:$0xff]  ;;  %v1498_v60 = vpack.c.bf16 %v1475_v62, %v1473_v1 }
 0x242   :  { %1406 = vst.msk [vmem:[#allocation2 + $0x271] sm:$0xff] %vm668_vm1, %v1254_v45  ;;  %1407 = vst.msk [vmem:[#allocation2 + $0x279] sm:$0xff] %vm668_vm1, %v1255_v59  ;;  %v7354_v49 = vld [vmem:[#allocation16_spill] sm:$0xff]  ;;  %4427 = vmatmul.mubr.msk.bf16.vlgmr.msra.gmra.mxu0 %vm668_vm1, %v2151_v36  ;;  %v2152_v46 = vpack.c.bf16 %v2129_v33, %v2127_v11  ;;  %v6254_v61 = vld [vmem:[%s7190_s4 + $0x20] sm:$0xf] }
 0x243   :  { %1408 = vst.msk [vmem:[#allocation2 + $0x289] sm:$0xff] %vm668_vm1, %v1256_v17  ;;  %1409 = vst.msk [vmem:[#allocation2 + $0x291] sm:$0xff] %vm668_vm1, %v1257_v16  ;;  %v2549_v40 = vsel %vm1530_vm3, %v7354_v49, 0  ;;  %v6249_v55 = vld [vmem:[%s7190_s4 + $0x8] sm:$0xf]  ;;  %4358 = vmatprep.mubr.msk.bf16.mxu1 %vm668_vm1, %v1498_v60  ;;  %v2913_v25 = vsel %vm1530_vm3, %v6254_v61, 0 }
 0x244   :  { %1410 = vst.msk [vmem:[#allocation2 + $0x2a1] sm:$0xff] %vm668_vm1, %v1258_v13  ;;  %1411 = vst.msk [vmem:[#allocation2 + $0x2a9] sm:$0xff] %vm668_vm1, %v1259_v2  ;;  %4430 = vmatprep.mubr.msk.bf16.mxu0 %vm668_vm1, %v2152_v46  ;;  %v1477_v52 = vld [vmem:[#allocation2 + $0x121] ss:$2 sm:$0xff]  ;;  %v1481_v58 = vld [vmem:[#allocation2 + $0x1b1] ss:$2 sm:$0xff]  ;;  %4461 = vmatpush3.bf16.msra.mxu0 %v2549_v40 }
 0x245   :  { %1412 = vst.msk [vmem:[#allocation2 + $0x2b9] sm:$0xff] %vm668_vm1, %v1260_v44  ;;  %1413 = vst.msk [vmem:[#allocation2 + $0x2c1] sm:$0xff] %vm668_vm1, %v1261_v28  ;;  %v1479_v3 = vld [vmem:[#allocation2 + $0x151] ss:$2 sm:$0xff]  ;;  %4554 = vmatprep.subr.msk.bf16.mxu1 %vm1530_vm3, %v6249_v55  ;;  %4560 = vmatprep.subr.msk.bf16.mxu0 %vm1530_vm3, %v6254_v61  ;;  %v1483_v6 = vld [vmem:[#allocation2 + $0x1e1] ss:$2 sm:$0xff] }
 0x246   :  { %1414 = vst.msk [vmem:[#allocation2 + $0x2d1] sm:$0xff] %vm668_vm1, %v1262_v38  ;;  %1415 = vst.msk [vmem:[#allocation2 + $0x2d9] sm:$0xff] %vm668_vm1, %v1263_v35  ;;  %v2131_v9 = vld [vmem:[#allocation2 + $0x139] ss:$2 sm:$0xff]  ;;  %v2133_v0 = vld [vmem:[#allocation2 + $0x169] ss:$2 sm:$0xff]  ;;  %v1499_v12 = vpack.c.bf16 %v1479_v3, %v1477_v52  ;;  %v1500_v27 = vpack.c.bf16 %v1483_v6, %v1481_v58 }
 0x247   :  { %1416 = vst.msk [vmem:[#allocation2 + $0x2e9] sm:$0xff] %vm668_vm1, %v1264_v39  ;;  %1417 = vst.msk [vmem:[#allocation2 + $0x2f1] sm:$0xff] %vm668_vm1, %v1265_v22  ;;  %v2135_v15 = vld [vmem:[#allocation2 + $0x1c9] ss:$2 sm:$0xff]  ;;  %v2137_v21 = vld [vmem:[#allocation2 + $0x1f9] ss:$2 sm:$0xff]  ;;  %v2153_v18 = vpack.c.bf16 %v2133_v0, %v2131_v9 }
 0x248   :  { %1418 = vst.msk [vmem:[#allocation2 + $0x301] sm:$0xff] %vm668_vm1, %v1266_v57  ;;  %1419 = vst.msk [vmem:[#allocation2 + $0x309] sm:$0xff] %vm668_vm1, %v1267_v47  ;;  %v2154_v37 = vpack.c.bf16 %v2137_v21, %v2135_v15  ;;  %4359 = vmatmul.mubr.msk.bf16.gmra.mxu1 %vm668_vm1, %v1499_v12  ;;  %v1485_v24 = vld [vmem:[#allocation2 + $0x211] ss:$2 sm:$0xff]  ;;  %v1487_v30 = vld [vmem:[#allocation2 + $0x241] ss:$2 sm:$0xff] }
 0x249   :  { %1420 = vst.msk [vmem:[#allocation2 + $0x319] sm:$0xff] %vm668_vm1, %v1268_v56  ;;  %1422 = vst.msk [vmem:[#allocation2 + $0x331] sm:$0xff] %vm668_vm1, %v1270_v20  ;;  %4362 = vmatprep.mubr.msk.bf16.mxu1 %vm668_vm1, %v1500_v27  ;;  %v2139_v45 = vld [vmem:[#allocation2 + $0x229] ss:$2 sm:$0xff]  ;;  %v2141_v54 = vld [vmem:[#allocation2 + $0x259] ss:$2 sm:$0xff]  ;;  %v1501_v59 = vpack.c.bf16 %v1487_v30, %v1485_v24 }
 0x24a   :  { %1423 = vst.msk [vmem:[#allocation2 + $0x339] sm:$0xff] %vm668_vm1, %v1271_v10  ;;  %4431 = vmatmul.mubr.msk.bf16.gmra.mxu0 %vm668_vm1, %v2153_v18  ;;  %v1489_v41 = vld [vmem:[#allocation2 + $0x271] ss:$2 sm:$0xff]  ;;  %v2155_v4 = vpack.c.bf16 %v2141_v54, %v2139_v45  ;;  %v1424_v26 = vld [vmem:[#allocation2] ss:$2 sm:$0xff]  ;;  %v1822_v20 = vsel %vm1530_vm3, %v6249_v55, 0 }
 0x24b   :  { %4434 = vmatprep.mubr.msk.bf16.mxu0 %vm668_vm1, %v2154_v37  ;;  %v1491_v50 = vld [vmem:[#allocation2 + $0x2a1] ss:$2 sm:$0xff]  ;;  %v1426_v44 = vld [vmem:[#allocation2 + $0x30] ss:$2 sm:$0xff]  ;;  %v2485_v38 = vld [vmem:[#allocation2 + $0x60] ss:$2 sm:$0xff] }
 0x24c   :  { %v2143_v63 = vld [vmem:[#allocation2 + $0x289] ss:$2 sm:$0xff]  ;;  %v2145_v8 = vld [vmem:[#allocation2 + $0x2b9] ss:$2 sm:$0xff]  ;;  %v1502_v17 = vpack.c.bf16 %v1491_v50, %v1489_v41  ;;  %v2483_v28 = vld [vmem:[#allocation2 + $0x30] ss:$2 sm:$0xff]  ;;  %v1455_v39 = vpack.c.bf16 %v1426_v44, %v1424_v26 }
 0x24d   :  { %v2156_v14 = vpack.c.bf16 %v2145_v8, %v2143_v63  ;;  %v1493_v16 = vld [vmem:[#allocation2 + $0x2d1] ss:$2 sm:$0xff]  ;;  %v2514_v32 = vpack.c.bf16 %v2485_v38, %v2483_v28  ;;  %v1428_v22 = vld [vmem:[#allocation2 + $0x60] ss:$2 sm:$0xff]  ;;  %v1430_v19 = vld [vmem:[#allocation2 + $0x90] ss:$2 sm:$0xff] }
 0x24e   :  { %v2147_v5 = vld [vmem:[#allocation2 + $0x2e9] ss:$2 sm:$0xff]  ;;  %v2487_v57 = vld [vmem:[#allocation2 + $0x90] ss:$2 sm:$0xff]  ;;  %v2489_v31 = vld [vmem:[#allocation2 + $0xc0] ss:$2 sm:$0xff]  ;;  %v1456_v48 = vpack.c.bf16 %v1430_v19, %v1428_v22 }
 0x24f   :  { %v1495_v13 = vld [vmem:[#allocation2 + $0x301] ss:$2 sm:$0xff]  ;;  %v1432_v29 = vld [vmem:[#allocation2 + $0xc0] ss:$2 sm:$0xff]  ;;  %v1434_v47 = vld [vmem:[#allocation2 + $0xf0] ss:$2 sm:$0xff]  ;;  %v2515_v10 = vpack.c.bf16 %v2489_v31, %v2487_v57 }
 0x250   :  { %4363 = vmatmul.mubr.msk.bf16.gmra.mxu1 %vm668_vm1, %v1501_v59  ;;  %v2149_v2 = vld [vmem:[#allocation2 + $0x319] ss:$2 sm:$0xff]  ;;  %v1503_v51 = vpack.c.bf16 %v1495_v13, %v1493_v16  ;;  %v2491_v42 = vld [vmem:[#allocation2 + $0xf0] ss:$2 sm:$0xff]  ;;  %v2493_v56 = vld [vmem:[#allocation2 + $0x120] ss:$2 sm:$0xff]  ;;  %v1457_v43 = vpack.c.bf16 %v1434_v47, %v1432_v29 }
 0x251   :  { %4366 = vmatprep.mubr.msk.bf16.mxu1 %vm668_vm1, %v1502_v17  ;;  %v2157_v35 = vpack.c.bf16 %v2149_v2, %v2147_v5  ;;  %v2516_v7 = vpack.c.bf16 %v2493_v56, %v2491_v42  ;;  %v6283_v53 = vld [vmem:[%s7190_s4 + $0xc] sm:$0xf]  ;;  %v1440_v1 = vld [vmem:[#allocation2 + $0x1b0] ss:$2 sm:$0xff] }
 0x252   :  { %4435 = vmatmul.mubr.msk.bf16.gmra.mxu0 %vm668_vm1, %v2155_v4  ;;  %v1436_v36 = vld [vmem:[#allocation2 + $0x120] ss:$2 sm:$0xff]  ;;  %v1438_v62 = vld [vmem:[#allocation2 + $0x150] ss:$2 sm:$0xff] }
 0x253   :  { %4438 = vmatprep.mubr.msk.bf16.mxu0 %vm668_vm1, %v2156_v14  ;;  %v2495_v11 = vld [vmem:[#allocation2 + $0x150] ss:$2 sm:$0xff]  ;;  %v2497_v23 = vld [vmem:[#allocation2 + $0x180] ss:$2 sm:$0xff]  ;;  %v1458_v49 = vpack.c.bf16 %v1438_v62, %v1436_v36 }
 0x254   :  { %v1442_v34 = vld [vmem:[#allocation2 + $0x1e0] ss:$2 sm:$0xff]  ;;  %v2501_v60 = vld [vmem:[#allocation2 + $0x210] ss:$2 sm:$0xff]  ;;  %v2517_v40 = vpack.c.bf16 %v2497_v23, %v2495_v11 }
 0x255   :  { %v2499_v33 = vld [vmem:[#allocation2 + $0x1e0] ss:$2 sm:$0xff]  ;;  %v1459_v46 = vpack.c.bf16 %v1442_v34, %v1440_v1  ;;  %v1444_v61 = vld [vmem:[#allocation2 + $0x210] ss:$2 sm:$0xff] }
 0x256   :  { %v2518_v55 = vpack.c.bf16 %v2501_v60, %v2499_v33  ;;  %v1446_v52 = vld [vmem:[#allocation2 + $0x240] ss:$2 sm:$0xff]  ;;  %v2505_v3 = vld [vmem:[#allocation2 + $0x270] ss:$2 sm:$0xff] }
 0x257   :  { %v2503_v58 = vld [vmem:[#allocation2 + $0x240] ss:$2 sm:$0xff]  ;;  %v1448_v9 = vld [vmem:[#allocation2 + $0x270] ss:$2 sm:$0xff]  ;;  %v1460_v21 = vpack.c.bf16 %v1446_v52, %v1444_v61 }
 0x258   :  { %4367 = vmatmul.mubr.msk.bf16.gmra.mxu1 %vm668_vm1, %v1503_v51  ;;  %v1450_v0 = vld [vmem:[#allocation2 + $0x2a0] ss:$2 sm:$0xff]  ;;  %v2509_v15 = vld [vmem:[#allocation2 + $0x2d0] ss:$2 sm:$0xff]  ;;  %v2519_v12 = vpack.c.bf16 %v2505_v3, %v2503_v58  ;;  %v2003_v51 = vsel %vm1530_vm3, %v6283_v53, 0 }
 0x259   :  { %4372 = vmatprep.mubr.msk.bf16.mxu1 %vm668_vm1, %v1455_v39  ;;  %v2507_v6 = vld [vmem:[#allocation2 + $0x2a0] ss:$2 sm:$0xff]  ;;  %v1461_v18 = vpack.c.bf16 %v1450_v0, %v1448_v9  ;;  %v1452_v37 = vld [vmem:[#allocation2 + $0x2d0] ss:$2 sm:$0xff] }
 0x25a   :  { %4439 = vmatmul.mubr.msk.bf16.gmra.mxu0 %vm668_vm1, %v2157_v35  ;;  %v2520_v27 = vpack.c.bf16 %v2509_v15, %v2507_v6  ;;  %v1756_v24 = vld [vmem:[#allocation2 + $0x2] ss:$2 sm:$0xff]  ;;  %v1758_v41 = vld [vmem:[#allocation2 + $0x32] ss:$2 sm:$0xff] }
 0x25b   :  { %4462 = vmatprep.mubr.msk.bf16.mxu0 %vm668_vm1, %v2514_v32  ;;  %v1454_v30 = vld [vmem:[#allocation2 + $0x300] ss:$2 sm:$0xff]  ;;  %v2513_v54 = vld [vmem:[#allocation2 + $0x330] ss:$2 sm:$0xff]  ;;  %v1787_v4 = vpack.c.bf16 %v1758_v41, %v1756_v24 }
 0x25c   :  { %v2511_v45 = vld [vmem:[#allocation2 + $0x300] ss:$2 sm:$0xff]  ;;  %v1462_v8 = vpack.c.bf16 %v1454_v30, %v1452_v37  ;;  %v4090_v32 = vld [vmem:[%s7190_s4 + $0x14] sm:$0xf]  ;;  %v4108_v30 = vld [vmem:[%s7190_s4 + $0x1c] sm:$0xf] }
 0x25d   :  { %v2847_v50 = vld [vmem:[#allocation2 + $0x32] ss:$2 sm:$0xff]  ;;  %v2849_v63 = vld [vmem:[#allocation2 + $0x62] ss:$2 sm:$0xff]  ;;  %v2521_v59 = vpack.c.bf16 %v2513_v54, %v2511_v45  ;;  %v2367_v37 = vsel %vm1530_vm3, %v4090_v32, 0 }
 0x25e   :  { %v2878_v17 = vpack.c.bf16 %v2849_v63, %v2847_v50  ;;  %v1760_v14 = vld [vmem:[#allocation2 + $0x62] ss:$2 sm:$0xff]  ;;  %v1762_v16 = vld [vmem:[#allocation2 + $0x92] ss:$2 sm:$0xff] }
 0x25f   :  { %v2851_v26 = vld [vmem:[#allocation2 + $0x92] ss:$2 sm:$0xff]  ;;  %v2853_v13 = vld [vmem:[#allocation2 + $0xc2] ss:$2 sm:$0xff]  ;;  %v1788_v38 = vpack.c.bf16 %v1762_v16, %v1760_v14 }
 0x260   :  { %4373 = vmatmul.mubr.msk.bf16.vlgmr.msra.gmra.mxu1 %vm668_vm1, %v1456_v48  ;;  %v1764_v5 = vld [vmem:[#allocation2 + $0xc2] ss:$2 sm:$0xff]  ;;  %v1766_v2 = vld [vmem:[#allocation2 + $0xf2] ss:$2 sm:$0xff]  ;;  %v2879_v35 = vpack.c.bf16 %v2853_v13, %v2851_v26 }
 0x261   :  { %4389 = vmatpush3.bf16.msra.mxu1 %v1822_v20  ;;  %4376 = vmatprep.mubr.msk.bf16.mxu1 %vm668_vm1, %v1457_v43  ;;  %v2855_v44 = vld [vmem:[#allocation2 + $0xf2] ss:$2 sm:$0xff]  ;;  %v2857_v28 = vld [vmem:[#allocation2 + $0x122] ss:$2 sm:$0xff]  ;;  %v1789_v39 = vpack.c.bf16 %v1766_v2, %v1764_v5 }
 0x262   :  { %4463 = vmatmul.mubr.msk.bf16.vlgmr.msra.gmra.mxu0 %vm668_vm1, %v2515_v10  ;;  %4555 = vmatprep.subr.msk.bf16.mxu1 %vm1530_vm3, %v6283_v53  ;;  %v2880_v22 = vpack.c.bf16 %v2857_v28, %v2855_v44  ;;  %v1768_v19 = vld [vmem:[#allocation2 + $0x122] ss:$2 sm:$0xff]  ;;  %v1772_v57 = vld [vmem:[#allocation2 + $0x1b2] ss:$2 sm:$0xff] }
 0x263   :  { %4466 = vmatprep.mubr.msk.bf16.mxu0 %vm668_vm1, %v2516_v7  ;;  %4497 = vmatpush3.bf16.msra.mxu0 %v2913_v25  ;;  %v1770_v31 = vld [vmem:[#allocation2 + $0x152] ss:$2 sm:$0xff]  ;;  %v2861_v47 = vld [vmem:[#allocation2 + $0x182] ss:$2 sm:$0xff] }
 0x264   :  { %v2859_v29 = vld [vmem:[#allocation2 + $0x152] ss:$2 sm:$0xff]  ;;  %v1774_v42 = vld [vmem:[#allocation2 + $0x1e2] ss:$2 sm:$0xff]  ;;  %v1790_v20 = vpack.c.bf16 %v1770_v31, %v1768_v19  ;;  %v2731_v19 = vsel %vm1530_vm3, %v4108_v30, 0 }
 0x265   :  { %v2863_v56 = vld [vmem:[#allocation2 + $0x1e2] ss:$2 sm:$0xff]  ;;  %v2865_v48 = vld [vmem:[#allocation2 + $0x212] ss:$2 sm:$0xff]  ;;  %v2881_v10 = vpack.c.bf16 %v2861_v47, %v2859_v29  ;;  %v1791_v43 = vpack.c.bf16 %v1774_v42, %v1772_v57 }
 0x266   :  { %v2882_v25 = vpack.c.bf16 %v2865_v48, %v2863_v56  ;;  %v1776_v7 = vld [vmem:[#allocation2 + $0x212] ss:$2 sm:$0xff]  ;;  %v1778_v53 = vld [vmem:[#allocation2 + $0x242] ss:$2 sm:$0xff] }
 0x267   :  { %v2867_v36 = vld [vmem:[#allocation2 + $0x242] ss:$2 sm:$0xff]  ;;  %v2869_v1 = vld [vmem:[#allocation2 + $0x272] ss:$2 sm:$0xff]  ;;  %v1792_v33 = vpack.c.bf16 %v1778_v53, %v1776_v7 }
 0x268   :  { %4377 = vmatmul.mubr.msk.bf16.gmra.mxu1 %vm668_vm1, %v1458_v49  ;;  %v1780_v62 = vld [vmem:[#allocation2 + $0x272] ss:$2 sm:$0xff]  ;;  %v1782_v11 = vld [vmem:[#allocation2 + $0x2a2] ss:$2 sm:$0xff]  ;;  %v2883_v60 = vpack.c.bf16 %v2869_v1, %v2867_v36 }
 0x269   :  { %4380 = vmatprep.mubr.msk.bf16.mxu1 %vm668_vm1, %v1459_v46  ;;  %v2871_v23 = vld [vmem:[#allocation2 + $0x2a2] ss:$2 sm:$0xff]  ;;  %v2873_v34 = vld [vmem:[#allocation2 + $0x2d2] ss:$2 sm:$0xff]  ;;  %v1793_v49 = vpack.c.bf16 %v1782_v11, %v1780_v62  ;;  %v2665_v62 = vld [vmem:[#allocation2 + $0x31] ss:$2 sm:$0xff] }
 0x26a   :  { %4467 = vmatmul.mubr.msk.bf16.gmra.mxu0 %vm668_vm1, %v2517_v40  ;;  %v2884_v40 = vpack.c.bf16 %v2873_v34, %v2871_v23  ;;  %v1784_v46 = vld [vmem:[#allocation2 + $0x2d2] ss:$2 sm:$0xff]  ;;  %v2875_v61 = vld [vmem:[#allocation2 + $0x302] ss:$2 sm:$0xff]  ;;  %v2667_v11 = vld [vmem:[#allocation2 + $0x61] ss:$2 sm:$0xff] }
 0x26b   :  { %4470 = vmatprep.mubr.msk.bf16.mxu0 %vm668_vm1, %v2518_v55  ;;  %v1786_v55 = vld [vmem:[#allocation2 + $0x302] ss:$2 sm:$0xff]  ;;  %v2877_v52 = vld [vmem:[#allocation2 + $0x332] ss:$2 sm:$0xff]  ;;  %v2696_v34 = vpack.c.bf16 %v2667_v11, %v2665_v62 }
 0x26c   :  { %v1937_v58 = vld [vmem:[#allocation2 + $0x18] ss:$2 sm:$0xff]  ;;  %v1939_v3 = vld [vmem:[#allocation2 + $0x48] ss:$2 sm:$0xff]  ;;  %v1794_v9 = vpack.c.bf16 %v1786_v55, %v1784_v46  ;;  %v2885_v0 = vpack.c.bf16 %v2877_v52, %v2875_v61  ;;  %v2677_v61 = vld [vmem:[#allocation2 + $0x151] ss:$2 sm:$0xff] }
 0x26d   :  { %v1968_v6 = vpack.c.bf16 %v1939_v3, %v1937_v58  ;;  %v1941_v15 = vld [vmem:[#allocation2 + $0x78] ss:$2 sm:$0xff]  ;;  %v1951_v54 = vld [vmem:[#allocation2 + $0x168] ss:$2 sm:$0xff]  ;;  %v2679_v52 = vld [vmem:[#allocation2 + $0x181] ss:$2 sm:$0xff] }
 0x26e   :  { %v1949_v45 = vld [vmem:[#allocation2 + $0x138] ss:$2 sm:$0xff]  ;;  %v1953_v41 = vld [vmem:[#allocation2 + $0x1c8] ss:$2 sm:$0xff]  ;;  %v2681_v58 = vld [vmem:[#allocation2 + $0x1e1] ss:$2 sm:$0xff] }
 0x26f   :  { %v1955_v50 = vld [vmem:[#allocation2 + $0x1f8] ss:$2 sm:$0xff]  ;;  %v1971_v63 = vpack.c.bf16 %v1951_v54, %v1949_v45  ;;  %v1965_v13 = vld [vmem:[#allocation2 + $0x2e8] ss:$2 sm:$0xff]  ;;  %v2683_v3 = vld [vmem:[#allocation2 + $0x211] ss:$2 sm:$0xff] }
 0x270   :  { %4381 = vmatmul.mubr.msk.bf16.gmra.mxu1 %vm668_vm1, %v1460_v21  ;;  %v1943_v21 = vld [vmem:[#allocation2 + $0xa8] ss:$2 sm:$0xff]  ;;  %v1963_v14 = vld [vmem:[#allocation2 + $0x2b8] ss:$2 sm:$0xff] }
 0x271   :  { %4384 = vmatprep.mubr.msk.bf16.mxu1 %vm668_vm1, %v1461_v18  ;;  %v1947_v18 = vld [vmem:[#allocation2 + $0x108] ss:$2 sm:$0xff]  ;;  %v1967_v5 = vld [vmem:[#allocation2 + $0x318] ss:$2 sm:$0xff] }
 0x272   :  { %4471 = vmatmul.mubr.msk.bf16.gmra.mxu0 %vm668_vm1, %v2519_v12  ;;  %v1945_v12 = vld [vmem:[#allocation2 + $0xd8] ss:$2 sm:$0xff]  ;;  %v1975_v28 = vpack.c.bf16 %v1967_v5, %v1965_v13 }
 0x273   :  { %4474 = vmatprep.mubr.msk.bf16.mxu0 %vm668_vm1, %v2520_v27  ;;  %v1969_v27 = vpack.c.bf16 %v1943_v21, %v1941_v15  ;;  %v1970_v24 = vpack.c.bf16 %v1947_v18, %v1945_v12  ;;  %v2301_v2 = vld [vmem:[#allocation2 + $0x1a] ss:$2 sm:$0xff]  ;;  %v2303_v44 = vld [vmem:[#allocation2 + $0x4a] ss:$2 sm:$0xff]  ;;  %v2687_v15 = vld [vmem:[#allocation2 + $0x271] ss:$2 sm:$0xff] }
 0x274   :  { %v2313_v31 = vld [vmem:[#allocation2 + $0x13a] ss:$2 sm:$0xff]  ;;  %v2315_v29 = vld [vmem:[#allocation2 + $0x16a] ss:$2 sm:$0xff]  ;;  %v2689_v21 = vld [vmem:[#allocation2 + $0x2a1] ss:$2 sm:$0xff] }
 0x275   :  { %v2317_v47 = vld [vmem:[#allocation2 + $0x1ca] ss:$2 sm:$0xff]  ;;  %v2319_v42 = vld [vmem:[#allocation2 + $0x1fa] ss:$2 sm:$0xff]  ;;  %v2335_v56 = vpack.c.bf16 %v2315_v29, %v2313_v31  ;;  %v2691_v12 = vld [vmem:[#allocation2 + $0x2d1] ss:$2 sm:$0xff] }
 0x276   :  { %v2336_v48 = vpack.c.bf16 %v2319_v42, %v2317_v47  ;;  %v2329_v36 = vld [vmem:[#allocation2 + $0x2ea] ss:$2 sm:$0xff]  ;;  %v2331_v1 = vld [vmem:[#allocation2 + $0x31a] ss:$2 sm:$0xff] }
 0x277   :  { %v2339_v23 = vpack.c.bf16 %v2331_v1, %v2329_v36 }
 0x278   :  { %4385 = vmatmul.mubr.msk.bf16.gmra.mxu1 %vm668_vm1, %v1462_v8  ;;  %v1972_v8 = vpack.c.bf16 %v1955_v50, %v1953_v41 }
 0x279   :  { %4390 = vmatprep.mubr.msk.bf16.mxu1 %vm668_vm1, %v1787_v4  ;;  %v1959_v4 = vld [vmem:[#allocation2 + $0x258] ss:$2 sm:$0xff] }
 0x27a   :  { %4475 = vmatmul.mubr.msk.bf16.gmra.mxu0 %vm668_vm1, %v2521_v59  ;;  %v1957_v59 = vld [vmem:[#allocation2 + $0x228] ss:$2 sm:$0xff] }
 0x27b   :  { %4498 = vmatprep.mubr.msk.bf16.mxu0 %vm668_vm1, %v2878_v17  ;;  %v1961_v17 = vld [vmem:[#allocation2 + $0x288] ss:$2 sm:$0xff]  ;;  %v1973_v16 = vpack.c.bf16 %v1959_v4, %v1957_v59 }
 0x27c   :  { %v1974_v26 = vpack.c.bf16 %v1963_v14, %v1961_v17 }
 0x280   :  { %4391 = vmatmul.mubr.msk.bf16.vlgmr.msra.gmra.mxu1 %vm668_vm1, %v1788_v38  ;;  %v2332_v38 = vpack.c.bf16 %v2303_v44, %v2301_v2 }
 0x281   :  { %4407 = vmatpush3.bf16.msra.mxu1 %v2003_v51  ;;  %4394 = vmatprep.mubr.msk.bf16.mxu1 %vm668_vm1, %v1789_v39  ;;  %v2305_v51 = vld [vmem:[#allocation2 + $0x7a] ss:$2 sm:$0xff] }
 0x282   :  { %4499 = vmatmul.mubr.msk.bf16.vlgmr.msra.gmra.mxu0 %vm668_vm1, %v2879_v35  ;;  %4557 = vmatprep.subr.msk.bf16.mxu1 %vm1530_vm3, %v4090_v32  ;;  %v2307_v35 = vld [vmem:[#allocation2 + $0xaa] ss:$2 sm:$0xff]  ;;  %v2309_v39 = vld [vmem:[#allocation2 + $0xda] ss:$2 sm:$0xff] }
 0x283   :  { %4502 = vmatprep.mubr.msk.bf16.mxu0 %vm668_vm1, %v2880_v22  ;;  %v2311_v32 = vld [vmem:[#allocation2 + $0x10a] ss:$2 sm:$0xff]  ;;  %v2333_v22 = vpack.c.bf16 %v2307_v35, %v2305_v51 }
 0x284   :  { %v2334_v57 = vpack.c.bf16 %v2311_v32, %v2309_v39 }
 0x288   :  { %4395 = vmatmul.mubr.msk.bf16.gmra.mxu1 %vm668_vm1, %v1790_v20  ;;  %v2321_v20 = vld [vmem:[#allocation2 + $0x22a] ss:$2 sm:$0xff] }
 0x289   :  { %4398 = vmatprep.mubr.msk.bf16.mxu1 %vm668_vm1, %v1791_v43  ;;  %v2325_v43 = vld [vmem:[#allocation2 + $0x28a] ss:$2 sm:$0xff] }
 0x28a   :  { %4503 = vmatmul.mubr.msk.bf16.gmra.mxu0 %vm668_vm1, %v2881_v10  ;;  %v2323_v10 = vld [vmem:[#allocation2 + $0x25a] ss:$2 sm:$0xff] }
 0x28b   :  { %4506 = vmatprep.mubr.msk.bf16.mxu0 %vm668_vm1, %v2882_v25  ;;  %v2327_v25 = vld [vmem:[#allocation2 + $0x2ba] ss:$2 sm:$0xff]  ;;  %v2337_v7 = vpack.c.bf16 %v2323_v10, %v2321_v20 }
 0x28c   :  { %v2338_v53 = vpack.c.bf16 %v2327_v25, %v2325_v43 }
 0x290   :  { %4399 = vmatmul.mubr.msk.bf16.gmra.mxu1 %vm668_vm1, %v1792_v33  ;;  %v2669_v33 = vld [vmem:[#allocation2 + $0x91] ss:$2 sm:$0xff] }
 0x291   :  { %4402 = vmatprep.mubr.msk.bf16.mxu1 %vm668_vm1, %v1793_v49  ;;  %v2673_v49 = vld [vmem:[#allocation2 + $0xf1] ss:$2 sm:$0xff] }
 0x292   :  { %4507 = vmatmul.mubr.msk.bf16.gmra.mxu0 %vm668_vm1, %v2883_v60  ;;  %v2671_v60 = vld [vmem:[#allocation2 + $0xc1] ss:$2 sm:$0xff] }
 0x293   :  { %4510 = vmatprep.mubr.msk.bf16.mxu0 %vm668_vm1, %v2884_v40  ;;  %v2675_v40 = vld [vmem:[#allocation2 + $0x121] ss:$2 sm:$0xff]  ;;  %v2697_v46 = vpack.c.bf16 %v2671_v60, %v2669_v33 }
 0x294   :  { %v2698_v55 = vpack.c.bf16 %v2675_v40, %v2673_v49 }
 0x298   :  { %4403 = vmatmul.mubr.msk.bf16.gmra.mxu1 %vm668_vm1, %v1794_v9  ;;  %v2699_v9 = vpack.c.bf16 %v2679_v52, %v2677_v61 }
 0x299   :  { %4408 = vmatprep.mubr.msk.bf16.mxu1 %vm668_vm1, %v1968_v6  ;;  %v2685_v6 = vld [vmem:[#allocation2 + $0x241] ss:$2 sm:$0xff] }
 0x29a   :  { %4511 = vmatmul.mubr.msk.bf16.gmra.mxu0 %vm668_vm1, %v2885_v0  ;;  %v2700_v0 = vpack.c.bf16 %v2683_v3, %v2681_v58  ;;  %v2701_v18 = vpack.c.bf16 %v2687_v15, %v2685_v6 }
 0x2a0   :  { %4409 = vmatmul.mubr.msk.bf16.vlgmr.msra.gmra.mxu1 %vm668_vm1, %v1969_v27  ;;  %v2702_v27 = vpack.c.bf16 %v2691_v12, %v2689_v21  ;;  %v4598_v21 = vld [vmem:[%s7194_s13 + $0x8] sm:$0xff]  }
 0x2a1   :  { %4443 = vmatpush3.bf16.msra.mxu1 %v2367_v37  ;;  %4412 = vmatprep.mubr.msk.bf16.mxu1 %vm668_vm1, %v1970_v24  ;;  %v2693_v37 = vld [vmem:[#allocation2 + $0x301] ss:$2 sm:$0xff]  ;;  %v2695_v24 = vld [vmem:[#allocation2 + $0x331] ss:$2 sm:$0xff] }
 0x2a2   :  { %4559 = vmatprep.subr.msk.bf16.mxu1 %vm1530_vm3, %v4108_v30  ;;  %v2703_v30 = vpack.c.bf16 %v2695_v24, %v2693_v37 }
 0x2a8   :  { %4413 = vmatmul.mubr.msk.bf16.gmra.mxu1 %vm668_vm1, %v1971_v63 }
 0x2a9   :  { %4416 = vmatprep.mubr.msk.bf16.mxu1 %vm668_vm1, %v1972_v8 }
 0x2b0   :  { %4417 = vmatmul.mubr.msk.bf16.gmra.mxu1 %vm668_vm1, %v1973_v16 }
 0x2b1   :  { %4420 = vmatprep.mubr.msk.bf16.mxu1 %vm668_vm1, %v1974_v26 }
 0x2b8   :  { %4421 = vmatmul.mubr.msk.bf16.gmra.mxu1 %vm668_vm1, %v1975_v28 }
 0x2b9   :  { %4444 = vmatprep.mubr.msk.bf16.mxu1 %vm668_vm1, %v2332_v38 }
 0x2c0   :  { %4445 = vmatmul.mubr.msk.bf16.vlgmr.msra.gmra.mxu1 %vm668_vm1, %v2333_v22 }
 0x2c1   :  { %4479 = vmatpush3.bf16.msra.mxu1 %v2731_v19  ;;  %4448 = vmatprep.mubr.msk.bf16.mxu1 %vm668_vm1, %v2334_v57 }
 0x2c8   :  { %4449 = vmatmul.mubr.msk.bf16.gmra.mxu1 %vm668_vm1, %v2335_v56 }
 0x2c9   :  { %4452 = vmatprep.mubr.msk.bf16.mxu1 %vm668_vm1, %v2336_v48 }
 0x2d0   :  { %4453 = vmatmul.mubr.msk.bf16.gmra.mxu1 %vm668_vm1, %v2337_v7 }
 0x2d1   :  { %4456 = vmatprep.mubr.msk.bf16.mxu1 %vm668_vm1, %v2338_v53 }
 0x2d8   :  { %4457 = vmatmul.mubr.msk.bf16.gmra.mxu1 %vm668_vm1, %v2339_v23 }
 0x2d9   :  { %4480 = vmatprep.mubr.msk.bf16.mxu1 %vm668_vm1, %v2696_v34 }
 0x2e0   :  { %4481 = vmatmul.mubr.msk.bf16.vlgmr.msra.gmra.mxu1 %vm668_vm1, %v2697_v46 }
 0x2e1   :  { %4484 = vmatprep.mubr.msk.bf16.mxu1 %vm668_vm1, %v2698_v55  ;;  %v4596_v55 = vld [vmem:[%s7193_s10] sm:$0xff]  }
 0x2e2   :  { %4532 = vmatprep.subr.bf16.mxu0 %v4596_v55 }
 0x2e3   :  { %4533 = vmatpush3.bf16.msra.mxu0 %v4596_v55 }
 0x2e8   :  { %4485 = vmatmul.mubr.msk.bf16.gmra.mxu1 %vm668_vm1, %v2699_v9 }
 0x2e9   :  { %4488 = vmatprep.mubr.msk.bf16.mxu1 %vm668_vm1, %v2700_v0  ;;  %v4597_v0 = vld [vmem:[%s7194_s13] sm:$0xff]  }
 0x2ea   :  { %4534 = vmatprep.mubr.msk.bf16.mxu0 %vm280_vm0, %v4597_v0 }
 0x2eb   :  { %4535 = vmatmul.mubr.msk.bf16.vlgmr.msra.gmra.mxu0 %vm280_vm0, %v4598_v21 }
 0x2f0   :  { %4489 = vmatmul.mubr.msk.bf16.gmra.mxu1 %vm668_vm1, %v2701_v18 }
 0x2f1   :  { %4492 = vmatprep.mubr.msk.bf16.mxu1 %vm668_vm1, %v2702_v27 }
 0x2f8   :  { %4493 = vmatmul.mubr.msk.bf16.gmra.mxu1 %vm668_vm1, %v2703_v30 }
 0x2ff   :  { %v4356_v45 = vpop.f32.mrf.mxu1 }
 0x301   :  { %v1568_v54 = vpop.f32.mrf.mxu1 }
 0x302   :  { %v6351_v41 = vpop.f32.mrf.mxu0 }
 0x303   :  { %v4357_v50 = vpop.f32.mrf.mxu1 }
 0x304   :  { %v6353_v8 = vpop.f32.mrf.mxu0 }
 0x305   :  { %v1571_v63 = vpop.f32.mrf.mxu1 }
 0x306   :  { %v6355_v17 = vpop.f32.mrf.mxu0 }
 0x308   :  { %v4360_v59 = vpop.f32.mrf.mxu1  ;;  %v6357_v26 = vpop.f32.mrf.mxu0 }
 0x30a   :  { %v1584_v4 = vpop.f32.mrf.mxu1  ;;  %v6359_v2 = vpop.f32.mrf.mxu0 }
 0x30c   :  { %v4361_v14 = vpop.f32.mrf.mxu1  ;;  %v6361_v38 = vpop.f32.mrf.mxu0 }
 0x30e   :  { %v1587_v16 = vpop.f32.mrf.mxu1  ;;  %v6363_v39 = vpop.f32.mrf.mxu0 }
 0x310   :  { %v4364_v13 = vpop.f32.mrf.mxu1  ;;  %v6365_v19 = vpop.f32.mrf.mxu0 }
 0x312   :  { %v1600_v5 = vpop.f32.mrf.mxu1  ;;  %v6367_v42 = vpop.f32.mrf.mxu0 }
 0x314   :  { %v4365_v44 = vpop.f32.mrf.mxu1  ;;  %v6369_v43 = vpop.f32.mrf.mxu0 }
 0x316   :  { %v1603_v28 = vpop.f32.mrf.mxu1  ;;  %v6371_v1 = vpop.f32.mrf.mxu0 }
 0x318   :  { %v4368_v51 = vpop.f32.mrf.mxu1  ;;  %v6373_v33 = vpop.f32.mrf.mxu0 }
 0x31a   :  { %v1616_v35 = vpop.f32.mrf.mxu1  ;;  %v6378_v61 = vpop.f32.mrf.mxu0 }
 0x31c   :  { %v4369_v32 = vpop.f32.mrf.mxu1  ;;  %v6383_v6 = vpop.f32.mrf.mxu0 }
 0x31d   :  { %7355 = vst [vmem:[#allocation14_spill] sm:$0xff] %v6383_v6 }
 0x31e   :  { %v1619_v22 = vpop.f32.mrf.mxu1  ;;  %v6390_v37 = vpop.f32.mrf.mxu0 }
 0x31f   :  { %7356 = vst [vmem:[#allocation13_spill] sm:$0xff] %v6390_v37 }
 0x320   :  { %v4374_v57 = vpop.f32.mrf.mxu1 }
 0x321   :  { %v1701_v31 = vadd.f32 %v4374_v57, %v4356_v45 }
 0x322   :  { %v1692_v29 = vpop.f32.mrf.mxu1 }
 0x323   :  { %v1693_v47 = vadd.f32 %v1692_v29, %v1568_v54  ;;  %v4599_v54 = vld [vmem:[%s7194_s13 + $0x10] sm:$0xff]  }
 0x324   :  { %v4375_v56 = vpop.f32.mrf.mxu1  ;;  %4538 = vmatprep.mubr.msk.bf16.mxu0 %vm280_vm0, %v4599_v54 }
 0x325   :  { %v1704_v48 = vadd.f32 %v4375_v56, %v4357_v50  ;;  %v4600_v50 = vld [vmem:[%s7194_s13 + $0x18] sm:$0xff]  }
 0x326   :  { %v1695_v20 = vpop.f32.mrf.mxu1  ;;  %4539 = vmatmul.mubr.msk.bf16.gmra.mxu0 %vm280_vm0, %v4600_v50 }
 0x327   :  { %v1696_v10 = vadd.f32 %v1695_v20, %v1571_v63 }
 0x328   :  { %v4378_v25 = vpop.f32.mrf.mxu1 }
 0x329   :  { %v1717_v7 = vadd.f32 %v4378_v25, %v4360_v59  ;;  %v6398_v59 = vpop.f32.mrf.mxu0 }
 0x32a   :  { %v1708_v53 = vpop.f32.mrf.mxu1  ;;  %7357 = vst [vmem:[#allocation15_spill] sm:$0xff] %v6398_v59 }
 0x32b   :  { %v1709_v36 = vadd.f32 %v1708_v53, %v1584_v4 }
 0x32c   :  { %v4379_v62 = vpop.f32.mrf.mxu1 }
 0x32d   :  { %v1720_v11 = vadd.f32 %v4379_v62, %v4361_v14 }
 0x32e   :  { %v1711_v23 = vpop.f32.mrf.mxu1 }
 0x32f   :  { %v1712_v34 = vadd.f32 %v1711_v23, %v1587_v16 }
 0x330   :  { %v4382_v60 = vpop.f32.mrf.mxu1 }
 0x331   :  { %v1733_v49 = vadd.f32 %v4382_v60, %v4364_v13 }
 0x332   :  { %v1724_v40 = vpop.f32.mrf.mxu1 }
 0x333   :  { %v1725_v46 = vadd.f32 %v1724_v40, %v1600_v5  ;;  %v6404_v5 = vpop.f32.mrf.mxu0 }
 0x334   :  { %v4383_v52 = vpop.f32.mrf.mxu1 }
 0x335   :  { %v1736_v58 = vadd.f32 %v4383_v52, %v4365_v44 }
 0x336   :  { %v1727_v3 = vpop.f32.mrf.mxu1 }
 0x337   :  { %v1728_v9 = vadd.f32 %v1727_v3, %v1603_v28 }
 0x338   :  { %v4386_v15 = vpop.f32.mrf.mxu1 }
 0x339   :  { %v1749_v12 = vadd.f32 %v4386_v15, %v4368_v51 }
 0x33a   :  { %v1740_v18 = vpop.f32.mrf.mxu1 }
 0x33b   :  { %v1741_v27 = vadd.f32 %v1740_v18, %v1616_v35 }
 0x33c   :  { %v4387_v24 = vpop.f32.mrf.mxu1 }
 0x33d   :  { %v1752_v30 = vadd.f32 %v4387_v24, %v4369_v32  ;;  %v6410_v32 = vpop.f32.mrf.mxu0 }
 0x33e   :  { %v1743_v45 = vpop.f32.mrf.mxu1 }
 0x33f   :  { %v1744_v63 = vadd.f32 %v1743_v45, %v1619_v22 }
 0x340   :  { %v4392_v4 = vpop.f32.mrf.mxu1 }
 0x341   :  { %v1923_v14 = vadd.f32 %v4392_v4, %v1701_v31  ;;  %v6414_v31 = vpop.f32.mrf.mxu0 }
 0x342   :  { %v1858_v16 = vpop.f32.mrf.mxu1 }
 0x343   :  { %v6402_v13 = vadd.f32 %v1858_v16, %v1693_v47 }
 0x344   :  { %v4393_v44 = vpop.f32.mrf.mxu1 }
 0x345   :  { %v6406_v28 = vadd.f32 %v4393_v44, %v1704_v48  ;;  %v6420_v48 = vpop.f32.mrf.mxu0 }
 0x346   :  { %v1861_v51 = vpop.f32.mrf.mxu1 }
 0x347   :  { %v6408_v35 = vadd.f32 %v1861_v51, %v1696_v10  ;;  %v6424_v40 = vpop.f32.mrf.mxu0 }
 0x348   :  { %v4396_v22 = vpop.f32.mrf.mxu1 }
 0x349   :  { %v1927_v57 = vadd.f32 %v4396_v22, %v1717_v7 }
 0x34a   :  { %v1874_v29 = vpop.f32.mrf.mxu1 }
 0x34b   :  { %v6412_v56 = vadd.f32 %v1874_v29, %v1709_v36 }
 0x34c   :  { %v4397_v20 = vpop.f32.mrf.mxu1 }
 0x34d   :  { %v6416_v47 = vadd.f32 %v4397_v20, %v1720_v11  ;;  %v6430_v11 = vpop.f32.mrf.mxu0 }
 0x34e   :  { %v1877_v25 = vpop.f32.mrf.mxu1 }
 0x34f   :  { %v6418_v53 = vadd.f32 %v1877_v25, %v1712_v34  ;;  %v6434_v21 = vpop.f32.mrf.mxu0 }
 0x350   :  { %v4400_v62 = vpop.f32.mrf.mxu1 }
 0x351   :  { %v1931_v10 = vadd.f32 %v4400_v62, %v1733_v49 }
 0x352   :  { %v1890_v23 = vpop.f32.mrf.mxu1 }
 0x353   :  { %v6422_v60 = vadd.f32 %v1890_v23, %v1725_v46 }
 0x354   :  { %v4401_v7 = vpop.f32.mrf.mxu1 }
 0x355   :  { %v6426_v36 = vadd.f32 %v4401_v7, %v1736_v58  ;;  %v6440_v58 = vpop.f32.mrf.mxu0 }
 0x356   :  { %v1893_v55 = vpop.f32.mrf.mxu1 }
 0x357   :  { %v6428_v52 = vadd.f32 %v1893_v55, %v1728_v9  ;;  %v4604_v55 = vld [vmem:[%s7194_s13 + $0x38] sm:$0xff]  }
 0x358   :  { %v4404_v3 = vpop.f32.mrf.mxu1 }
 0x359   :  { %v1935_v34 = vadd.f32 %v4404_v3, %v1749_v12  ;;  %v6445_v12 = vpop.f32.mrf.mxu0 }
 0x35a   :  { %v1906_v0 = vpop.f32.mrf.mxu1  ;;  %7360 = vst [vmem:[#allocation24_spill] sm:$0xff] %v6445_v12 }
 0x35b   :  { %v6432_v15 = vadd.f32 %v1906_v0, %v1741_v27  ;;  %v6447_v16 = vpop.f32.mrf.mxu0 }
 0x35c   :  { %v4405_v49 = vpop.f32.mrf.mxu1  ;;  %7361 = vst [vmem:[#allocation5_spill] sm:$0xff] %v6447_v16 }
 0x35d   :  { %v6436_v46 = vadd.f32 %v4405_v49, %v1752_v30 }
 0x35e   :  { %v1909_v18 = vpop.f32.mrf.mxu1 }
 0x35f   :  { %7358 = vst [vmem:[#allocation18_spill] sm:$0xff] %v6436_v46  ;;  %v6438_v24 = vadd.f32 %v1909_v18, %v1744_v63  ;;  %v4601_v63 = vld [vmem:[%s7194_s13 + $0x20] sm:$0xff]  }
 0x360   :  { %v4410_v45 = vpop.f32.mrf.mxu1  ;;  %4542 = vmatprep.mubr.msk.bf16.mxu0 %vm280_vm0, %v4601_v63 }
 0x361   :  { %7359 = vst [vmem:[#allocation23_spill] sm:$0xff] %v6438_v24  ;;  %v2104_v9 = vadd.f32 %v4410_v45, %v1923_v14  ;;  %v6458_v14 = vpop.f32.mrf.mxu0 }
 0x362   :  { %v2039_v54 = vpop.f32.mrf.mxu1  ;;  %7362 = vst [vmem:[#allocation3_spill] sm:$0xff] %v6458_v14 }
 0x363   :  { %v6443_v50 = vadd.f32 %v6351_v41, %v2104_v9  ;;  %v4602_v41 = vld [vmem:[%s7194_s13 + $0x28] sm:$0xff]   ;;  %v6462_v20 = vpop.f32.mrf.mxu0  ;;  %v2102_v12 = vadd.f32 %v2039_v54, %v6402_v13 }
 0x364   :  { %v4411_v27 = vpop.f32.mrf.mxu1  ;;  %4543 = vmatmul.mubr.msk.bf16.gmra.mxu0 %vm280_vm0, %v4602_v41  ;;  %7363 = vst [vmem:[#allocation4_spill] sm:$0xff] %v6462_v20 }
 0x365   :  { %v6475_v3 = vpop.f32.mrf.mxu0  ;;  %v2284_v16 = vadd.f32 %v6353_v8, %v2102_v12 }
 0x366   :  { %v2042_v4 = vpop.f32.mrf.mxu1  ;;  %7364 = vst [vmem:[#allocation7_spill] sm:$0xff] %v6475_v3 }
 0x367   :  { %v6483_v49 = vpop.f32.mrf.mxu0  ;;  %v2103_v46 = vadd.f32 %v2042_v4, %v6408_v35 }
 0x368   :  { %v4414_v44 = vpop.f32.mrf.mxu1  ;;  %7365 = vst [vmem:[#allocation9_spill] sm:$0xff] %v6483_v49 }
 0x369   :  { %v2108_v30 = vadd.f32 %v4414_v44, %v1927_v57  ;;  %v6490_v44 = vpop.f32.mrf.mxu0 }
 0x36a   :  { %v2055_v51 = vpop.f32.mrf.mxu1  ;;  %7367 = vst [vmem:[#allocation8_spill] sm:$0xff] %v6490_v44 }
 0x36b   :  { %v6453_v22 = vadd.f32 %v6359_v2, %v2108_v30  ;;  %v4603_v2 = vld [vmem:[%s7194_s13 + $0x30] sm:$0xff]   ;;  %v6496_v41 = vpop.f32.mrf.mxu0  ;;  %v2106_v13 = vadd.f32 %v2055_v51, %v6412_v56 }
 0x36c   :  { %v4415_v29 = vpop.f32.mrf.mxu1  ;;  %4546 = vmatprep.mubr.msk.bf16.mxu0 %vm280_vm0, %v4603_v2  ;;  %7370 = vst [vmem:[#allocation21_spill] sm:$0xff] %v6496_v41 }
 0x36d   :  { %4547 = vmatmul.mubr.msk.bf16.gmra.mxu0 %vm280_vm0, %v4604_v55  ;;  %v6498_v2 = vpop.f32.mrf.mxu0  ;;  %v2109_v4 = vadd.f32 %v4415_v29, %v6416_v47  ;;  %v2288_v56 = vadd.f32 %v6361_v38, %v2106_v13  ;;  %v3209_v29 = vld [vmem:[%s7195_s7] sm:$0xf] }
 0x36e   :  { %v2058_v57 = vpop.f32.mrf.mxu1  ;;  %4561 = vmatprep.subr.msk.bf16.mxu1 %vm1530_vm3, %v3209_v29 }
 0x370   :  { %v4418_v25 = vpop.f32.mrf.mxu1 }
 0x371   :  { %v2112_v62 = vadd.f32 %v4418_v25, %v1931_v10 }
 0x372   :  { %v6464_v23 = vpop.f32.mrf.mxu1 }
 0x373   :  { %v6470_v7 = vadd.f32 %v6367_v42, %v2112_v62 }
 0x374   :  { %v6477_v0 = vpop.f32.mrf.mxu1 }
 0x376   :  { %v6481_v10 = vpop.f32.mrf.mxu1 }
 0x378   :  { %v4422_v18 = vpop.f32.mrf.mxu1 }
 0x379   :  { %v2116_v45 = vadd.f32 %v4422_v18, %v1935_v34  ;;  %v2949_v34 = vpop.f32.mrf.mxu0 }
 0x37a   :  { %v6485_v42 = vpop.f32.mrf.mxu1 }
 0x37b   :  { %v6488_v9 = vadd.f32 %v6378_v61, %v2116_v45  ;;  %v6500_v59 = vpop.f32.mrf.mxu0 }
 0x37c   :  { %v6492_v30 = vpop.f32.mrf.mxu1 }
 0x37d   :  { %7366 = vst [vmem:[#allocation6_spill] sm:$0xff] %v6488_v9  ;;  %7368 = vst [vmem:[#allocation19_spill] sm:$0xff] %v6492_v30  ;;  %v2952_v44 = vpop.f32.mrf.mxu0  ;;  %v2105_v30 = vadd.f32 %v4411_v27, %v6406_v28 }
 0x37e   :  { %v6494_v63 = vpop.f32.mrf.mxu1 }
 0x37f   :  { %7369 = vst [vmem:[#allocation20_spill] sm:$0xff] %v6494_v63  ;;  %v6506_v20 = vpop.f32.mrf.mxu0 }
 0x380   :  { %v4446_v25 = vpop.f32.mrf.mxu1  ;;  %7372 = vst [vmem:[#allocation10_spill] sm:$0xff] %v6506_v20 }
 0x381   :  { %v6513_v6 = vpop.f32.mrf.mxu0  ;;  %v2468_v54 = vadd.f32 %v4446_v25, %v6443_v50  ;;  %v2113_v25 = vadd.f32 %v6477_v0, %v6426_v36 }
 0x382   :  { %v2403_v62 = vpop.f32.mrf.mxu1 }
 0x383   :  { %v2650_v50 = vadd.f32 %v6404_v5, %v2468_v54 }
 0x384   :  { %v4447_v55 = vpop.f32.mrf.mxu1 }
 0x386   :  { %v2406_v3 = vpop.f32.mrf.mxu1 }
 0x388   :  { %v4450_v18 = vpop.f32.mrf.mxu1 }
 0x389   :  { %v2472_v47 = vadd.f32 %v4450_v18, %v6453_v22 }
 0x38a   :  { %v2419_v49 = vpop.f32.mrf.mxu1 }
 0x38b   :  { %v2654_v18 = vadd.f32 %v6424_v40, %v2472_v47 }
 0x38c   :  { %v4451_v61 = vpop.f32.mrf.mxu1 }
 0x38e   :  { %v2422_v45 = vpop.f32.mrf.mxu1 }
 0x390   :  { %v6502_v9 = vpop.f32.mrf.mxu1 }
 0x391   :  { %7371 = vst [vmem:[#allocation22_spill] sm:$0xff] %v6502_v9  ;;  %v6522_v9 = vpop.f32.mrf.mxu0 }
 0x392   :  { %v6504_v37 = vpop.f32.mrf.mxu1 }
 0x393   :  { %v6532_v28 = vpop.f32.mrf.mxu0 }
 0x394   :  { %v6508_v41 = vpop.f32.mrf.mxu1 }
 0x395   :  { %7373 = vst [vmem:[#allocation12_spill] sm:$0xff] %v6508_v41  ;;  %v2466_v41 = vadd.f32 %v2403_v62, %v2284_v16  ;;  %v2107_v16 = vadd.f32 %v2058_v57, %v6418_v53  ;;  %v2291_v53 = vadd.f32 %v6363_v39, %v2109_v4 }
 0x396   :  { %v6510_v14 = vpop.f32.mrf.mxu1 }
 0x397   :  { %7374 = vst [vmem:[#allocation17_spill] sm:$0xff] %v6510_v14  ;;  %v2648_v12 = vadd.f32 %v6410_v32, %v2466_v41  ;;  %v2110_v32 = vadd.f32 %v6464_v23, %v6422_v60  ;;  %v2289_v38 = vadd.f32 %v6365_v19, %v2107_v16  ;;  %v2473_v23 = vadd.f32 %v4451_v61, %v2291_v53  ;;  %v7384_v53 = vld [vmem:[#allocation23_spill] sm:$0xff] }
 0x398   :  { %v6515_v63 = vpop.f32.mrf.mxu1 }
 0x399   :  { %7375 = vst [vmem:[#allocation11_spill] sm:$0xff] %v6515_v63  ;;  %v2287_v63 = vadd.f32 %v6355_v17, %v2105_v30  ;;  %v6539_v17 = vpop.f32.mrf.mxu0  ;;  %v2471_v39 = vadd.f32 %v2422_v45, %v2289_v38  ;;  %v7385_v38 = vld [vmem:[#allocation20_spill] sm:$0xff] }
 0x39a   :  { %v6517_v24 = vpop.f32.mrf.mxu1 }
 0x39b   :  { %7376 = vst [vmem:[#allocation16_spill] sm:$0xff] %v6517_v24  ;;  %v2285_v24 = vadd.f32 %v6357_v26, %v2103_v46  ;;  %v2469_v27 = vadd.f32 %v4447_v55, %v2287_v63  ;;  %v2470_v46 = vadd.f32 %v2419_v49, %v2288_v56  ;;  %v2981_v60 = vpop.f32.mrf.mxu0  ;;  %v2111_v55 = vadd.f32 %v6481_v10, %v6428_v52 }
 0x39c   :  { %v6524_v20 = vpop.f32.mrf.mxu1 }
 0x39d   :  { %v2467_v8 = vadd.f32 %v2406_v3, %v2285_v24  ;;  %v2651_v63 = vadd.f32 %v6414_v31, %v2469_v27  ;;  %v2652_v41 = vadd.f32 %v6430_v11, %v2470_v46  ;;  %v6574_v13 = vpop.f32.mrf.mxu0  ;;  %v2295_v27 = vadd.f32 %v6371_v1, %v2113_v25 }
 0x39e   :  { %v6526_v14 = vpop.f32.mrf.mxu1  ;;  %v7380_v1 = vld [vmem:[#allocation17_spill] sm:$0xff] }
 0x39f   :  { %v2649_v24 = vadd.f32 %v6420_v48, %v2467_v8  ;;  %v3235_v48 = vsel %vm1530_vm3, %v3209_v29, 0  ;;  %v2984_v56 = vpop.f32.mrf.mxu0  ;;  %v7386_v29 = vld [vmem:[#allocation14_spill] sm:$0xff] }
 0x3a0   :  { %v4482_v35 = vpop.f32.mrf.mxu1  ;;  %4515 = vmatpush3.bf16.msra.mxu1 %v3235_v48 }
 0x3a1   :  { %v2832_v30 = vadd.f32 %v4482_v35, %v2650_v50  ;;  %v2114_v35 = vadd.f32 %v6485_v42, %v6432_v15  ;;  %v7378_v50 = vld [vmem:[#allocation12_spill] sm:$0xff]  ;;  %v7379_v15 = vld [vmem:[#allocation5_spill] sm:$0xff]  ;;  %v4512_v25 = vpop.f32.mrf.mxu0 }
 0x3a2   :  { %v2767_v62 = vpop.f32.mrf.mxu1 }
 0x3a3   :  { %v2830_v51 = vadd.f32 %v2767_v62, %v2648_v12  ;;  %v6556_v19 = vadd.f32 %v6498_v2, %v2832_v30 }
 0x3a4   :  { %v4483_v26 = vpop.f32.mrf.mxu1 }
 0x3a5   :  { %v6551_v57 = vadd.f32 %v2949_v34, %v2830_v51  ;;  %v2833_v3 = vadd.f32 %v4483_v26, %v2651_v63  ;;  %v2292_v34 = vadd.f32 %v6369_v43, %v2110_v32  ;;  %v2655_v43 = vadd.f32 %v6434_v21, %v2473_v23  ;;  %v7377_v21 = vld [vmem:[#allocation22_spill] sm:$0xff]  ;;  %v7383_v32 = vld [vmem:[#allocation19_spill] sm:$0xff] }
 0x3a6   :  { %v2770_v5 = vpop.f32.mrf.mxu1  ;;  %v3033_v40 = vsel %vm668_vm1, %v6556_v19, 0.0  ;;  %v2476_v4 = vadd.f32 %v7377_v21, %v6470_v7 }
 0x3a7   :  { %v2831_v31 = vadd.f32 %v2770_v5, %v2649_v24  ;;  %v3030_v45 = vsel %vm668_vm1, %v6551_v57, 0.0  ;;  %v6570_v2 = vadd.f32 %v6500_v59, %v2833_v3  ;;  %v2474_v36 = vadd.f32 %v6504_v37, %v2292_v34  ;;  %v7382_v24 = vld [vmem:[#allocation18_spill] sm:$0xff] }
 0x3a8   :  { %v4486_v22 = vpop.f32.mrf.mxu1  ;;  %v2653_v59 = vadd.f32 %v6440_v58, %v2471_v39  ;;  %v2293_v37 = vadd.f32 %v6373_v33, %v2111_v55  ;;  %v2477_v58 = vadd.f32 %v7378_v50, %v2295_v27  ;;  %v7381_v33 = vld [vmem:[#allocation10_spill] sm:$0xff]  ;;  %v2117_v47 = vadd.f32 %v7383_v32, %v7382_v24  ;;  %v7387_v39 = vld [vmem:[#allocation24_spill] sm:$0xff]  ;;  %v7396_v32 = vld [vmem:[#allocation7_spill] sm:$0xff] }
 0x3a9   :  { %v6558_v49 = vadd.f32 %v2952_v44, %v2831_v31  ;;  %v2836_v10 = vadd.f32 %v4486_v22, %v2654_v18  ;;  %v3035_v16 = vsel %vm668_vm1, %v6570_v2, 0.0  ;;  %v2656_v42 = vadd.f32 %v7379_v15, %v2474_v36  ;;  %v7388_v55 = vld [vmem:[#allocation16_spill] sm:$0xff] }
 0x3aa   :  { %v2783_v61 = vpop.f32.mrf.mxu1  ;;  %v2475_v46 = vadd.f32 %v7380_v1, %v2293_v37  ;;  %v2115_v5 = vadd.f32 %v7385_v38, %v7384_v53  ;;  %v2296_v3 = vadd.f32 %v7386_v29, %v2114_v35  ;;  %v7393_v37 = vld [vmem:[#allocation6_spill] sm:$0xff] }
 0x3ab   :  { %v3031_v11 = vsel %vm668_vm1, %v6558_v49, 0.0  ;;  %v2834_v44 = vadd.f32 %v2783_v61, %v2652_v41  ;;  %v6596_v30 = vadd.f32 %v7381_v33, %v2836_v10  ;;  %v2658_v41 = vadd.f32 %v7387_v39, %v2476_v4  ;;  %v7389_v61 = vld [vmem:[#allocation3_spill] sm:$0xff] }
 0x3ac   :  { %v3032_v52 = vadd.f32 %v3031_v11, %v3030_v45  ;;  %v4487_v0 = vpop.f32.mrf.mxu1  ;;  %v2478_v34 = vadd.f32 %v7388_v55, %v2296_v3  ;;  %v2659_v45 = vadd.f32 %v7389_v61, %v2477_v58  ;;  %v7392_v10 = vld [vmem:[#allocation15_spill] sm:$0xff]  ;;  %v7395_v58 = vld [vmem:[#allocation9_spill] sm:$0xff] }
 0x3ad   :  { %v6581_v54 = vadd.f32 %v6513_v6, %v2834_v44  ;;  %v2837_v62 = vadd.f32 %v4487_v0, %v2655_v43  ;;  %v3041_v44 = vsel %vm668_vm1, %v6596_v30, 0.0  ;;  %v7391_v0 = vld [vmem:[#allocation13_spill] sm:$0xff] }
 0x3ae   :  { %v3034_v8 = vadd.f32 %v3033_v40, %v3032_v52  ;;  %v2786_v12 = vpop.f32.mrf.mxu1  ;;  %v2299_v40 = vadd.f32 %v7391_v0, %v2117_v47 }
 0x3af   :  { %v2835_v6 = vadd.f32 %v2786_v12, %v2653_v59  ;;  %v3037_v7 = vsel %vm668_vm1, %v6581_v54, 0.0  ;;  %v6609_v23 = vadd.f32 %v6522_v9, %v2837_v62  ;;  %v7390_v9 = vld [vmem:[#allocation4_spill] sm:$0xff]  ;;  %v2297_v59 = vadd.f32 %v7392_v10, %v2115_v5  ;;  %v2997_v62 = vpop.f32.mrf.mxu0 }
 0x3b0   :  { %v3036_v51 = vadd.f32 %v3035_v16, %v3034_v8  ;;  %v4490_v26 = vpop.f32.mrf.mxu1  ;;  %v2657_v43 = vadd.f32 %v7390_v9, %v2475_v46  ;;  %v7394_v8 = vld [vmem:[#allocation11_spill] sm:$0xff]  ;;  %v7397_v5 = vld [vmem:[#allocation8_spill] sm:$0xff] }
 0x3b1   :  { %v6601_v63 = vadd.f32 %v6532_v28, %v2835_v6  ;;  %v2840_v36 = vadd.f32 %v4490_v26, %v2658_v41  ;;  %v2480_v12 = vadd.f32 %v7394_v8, %v7393_v37  ;;  %v3043_v21 = vsel %vm668_vm1, %v6609_v23, 0.0  ;;  %v4513_v53 = vpop.f32.mrf.mxu0 }
 0x3b2   :  { %v3038_v31 = vadd.f32 %v3037_v7, %v3036_v51  ;;  %v2799_v48 = vpop.f32.mrf.mxu1  ;;  %v2660_v51 = vadd.f32 %v7395_v58, %v2478_v34  ;;  %v2479_v26 = vadd.f32 %v6526_v14, %v2297_v59 }
 0x3b3   :  { %v3039_v22 = vsel %vm668_vm1, %v6601_v63, 0.0  ;;  %v2838_v28 = vadd.f32 %v2799_v48, %v2656_v42  ;;  %v3022_v15 = vadd.f32 %v6539_v17, %v2840_v36  ;;  %v7398_v48 = vld [vmem:[#allocation21_spill] sm:$0xff]  ;;  %v3000_v55 = vpop.f32.mrf.mxu0 }
 0x3b4   :  { %v3040_v18 = vadd.f32 %v3039_v22, %v3038_v31  ;;  %v4491_v11 = vpop.f32.mrf.mxu1 }
 0x3b5   :  { %v6618_v52 = vadd.f32 %v2981_v60, %v2838_v28  ;;  %v2841_v4 = vadd.f32 %v4491_v11, %v2659_v45  ;;  %v2481_v60 = vadd.f32 %v6524_v20, %v2299_v40  ;;  %v2662_v20 = vadd.f32 %v7396_v32, %v2480_v12 }
 0x3b6   :  { %v3042_v35 = vadd.f32 %v3041_v44, %v3040_v18  ;;  %v2802_v27 = vpop.f32.mrf.mxu1  ;;  %v3049_v17 = vsel %vm668_vm1, %v3022_v15, 0.0 }
 0x3b7   :  { %v2839_v16 = vadd.f32 %v2802_v27, %v2657_v43  ;;  %v3045_v42 = vsel %vm668_vm1, %v6618_v52, 0.0  ;;  %v3023_v7 = vadd.f32 %v6574_v13, %v2841_v4  ;;  %v2663_v29 = vadd.f32 %v7397_v5, %v2481_v60 }
 0x3b8   :  { %v3044_v6 = vadd.f32 %v3043_v21, %v3042_v35  ;;  %v4494_v50 = vpop.f32.mrf.mxu1 }
 0x3b9   :  { %v3021_v1 = vadd.f32 %v2984_v56, %v2839_v16  ;;  %v2844_v3 = vadd.f32 %v4494_v50, %v2662_v20  ;;  %v2661_v56 = vadd.f32 %v7398_v48, %v2479_v26  ;;  %v3051_v13 = vsel %vm668_vm1, %v3023_v7, 0.0 }
 0x3ba   :  { %v3046_v46 = vadd.f32 %v3045_v42, %v3044_v6  ;;  %v2815_v33 = vpop.f32.mrf.mxu1 }
 0x3bb   :  { %v3047_v24 = vsel %vm668_vm1, %v3021_v1, 0.0  ;;  %v2842_v47 = vadd.f32 %v2815_v33, %v2660_v51  ;;  %v3026_v18 = vadd.f32 %v4512_v25, %v2844_v3 }
 0x3bc   :  { %v3048_v38 = vadd.f32 %v3047_v24, %v3046_v46  ;;  %v4495_v14 = vpop.f32.mrf.mxu1 }
 0x3bd   :  { %v3024_v31 = vadd.f32 %v2997_v62, %v2842_v47  ;;  %v2845_v41 = vadd.f32 %v4495_v14, %v2663_v29  ;;  %v3057_v43 = vsel %vm668_vm1, %v3026_v18, 0.0 }
 0x3be   :  { %v3050_v22 = vadd.f32 %v3049_v17, %v3048_v38  ;;  %v2818_v39 = vpop.f32.mrf.mxu1 }
 0x3bf   :  { %v2843_v28 = vadd.f32 %v2818_v39, %v2661_v56  ;;  %v3053_v61 = vsel %vm668_vm1, %v3024_v31, 0.0  ;;  %v3027_v44 = vadd.f32 %v4513_v53, %v2845_v41 }
 0x3c0   :  { %v3052_v34 = vadd.f32 %v3051_v13, %v3050_v22 }
 0x3c1   :  { %v3025_v45 = vadd.f32 %v3000_v55, %v2843_v28  ;;  %v3059_v40 = vsel %vm668_vm1, %v3027_v44, 0.0 }
 0x3c2   :  { %v3054_v11 = vadd.f32 %v3053_v61, %v3052_v34 }
 0x3c3   :  { %v3055_v36 = vsel %vm668_vm1, %v3025_v45, 0.0 }
 0x3c4   :  { %v3056_v9 = vadd.f32 %v3055_v36, %v3054_v11 }
 0x3c6   :  { %v3058_v0 = vadd.f32 %v3057_v43, %v3056_v9 }
 0x3c8   :  { %v3060_v10 = vadd.f32 %v3059_v40, %v3058_v0 }
 0x3ca   :  { %v3061_v59 = vrot.slane %v3060_v10, 4 }
 0x3cc   :  { %v3062_v35 = vadd.f32 %v3061_v59, %v3060_v10 }
 0x3ce   :  { %v3063_v27 = vrot.slane %v3062_v35, 2 }
 0x3d0   :  { %v3064_v37 = vadd.f32 %v3063_v27, %v3062_v35 }
 0x3d2   :  { %v3065_v8 = vrot.slane %v3064_v37, 1 }
 0x3d4   :  { %v3066_v25 = vadd.f32 %v3065_v8, %v3064_v37 }
 0x3d6   :  { %v3067_v12 = vmul.f32 0.0078125, %v3066_v25 }
 0x3d8   :  { %v6645_v21 = vsub.f32 %v6551_v57, %v3067_v12  ;;  %v6648_v4 = vsub.f32 %v6558_v49, %v3067_v12  ;;  %v6651_v16 = vsub.f32 %v6556_v19, %v3067_v12  ;;  %v6654_v62 = vsub.f32 %v6570_v2, %v3067_v12 }
 0x3d9   :  { %v6657_v60 = vsub.f32 %v6581_v54, %v3067_v12  ;;  %v6660_v6 = vsub.f32 %v6601_v63, %v3067_v12  ;;  %v6663_v50 = vsub.f32 %v6596_v30, %v3067_v12  ;;  %v6666_v57 = vsub.f32 %v6609_v23, %v3067_v12 }
 0x3da   :  { %v6669_v49 = vsub.f32 %v6618_v52, %v3067_v12  ;;  %v6671_v19 = vsub.f32 %v3021_v1, %v3067_v12  ;;  %v6673_v58 = vsub.f32 %v3022_v15, %v3067_v12  ;;  %v6675_v2 = vsub.f32 %v3023_v7, %v3067_v12 }
 0x3db   :  { %v6677_v54 = vsub.f32 %v3024_v31, %v3067_v12  ;;  %v6679_v51 = vsub.f32 %v3025_v45, %v3067_v12  ;;  %v6681_v63 = vsub.f32 %v3026_v18, %v3067_v12  ;;  %v6683_v30 = vsub.f32 %v3027_v44, %v3067_v12 }
 0x3dc   :  { %v3084_v23 = vmul.f32 %v6645_v21, %v6645_v21  ;;  %v3085_v52 = vmul.f32 %v6648_v4, %v6648_v4  ;;  %v3086_v26 = vmul.f32 %v6651_v16, %v6651_v16  ;;  %v3087_v15 = vmul.f32 %v6654_v62, %v6654_v62 }
 0x3dd   :  { %v3088_v33 = vmul.f32 %v6657_v60, %v6657_v60  ;;  %v3089_v32 = vmul.f32 %v6660_v6, %v6660_v6  ;;  %v3090_v53 = vmul.f32 %v6663_v50, %v6663_v50  ;;  %v3091_v29 = vmul.f32 %v6666_v57, %v6666_v57 }
 0x3de   :  { %v3100_v42 = vsel %vm668_vm1, %v3084_v23, 0.0  ;;  %v3101_v1 = vsel %vm668_vm1, %v3085_v52, 0.0  ;;  %v3103_v7 = vsel %vm668_vm1, %v3086_v26, 0.0  ;;  %v3105_v20 = vsel %vm668_vm1, %v3087_v15, 0.0 }
 0x3df   :  { %v3102_v46 = vadd.f32 %v3101_v1, %v3100_v42  ;;  %v3107_v38 = vsel %vm668_vm1, %v3088_v33, 0.0  ;;  %v3109_v14 = vsel %vm668_vm1, %v3089_v32, 0.0  ;;  %v3092_v3 = vmul.f32 %v6669_v49, %v6669_v49  ;;  %v3028_v33 = vld [vmem:[%s7196_s5] sm:$0x1]  ;;  %v7399_v32 = vld [vmem:[#allocation25_spill] sm:$0xff] }
 0x3e0   :  { %v3111_v31 = vsel %vm668_vm1, %v3090_v53, 0.0  ;;  %v3093_v56 = vmul.f32 %v6671_v19, %v6671_v19  ;;  %v3113_v22 = vsel %vm668_vm1, %v3091_v29, 0.0  ;;  %v3094_v13 = vmul.f32 %v6673_v58, %v6673_v58 }
 0x3e1   :  { %v3104_v24 = vadd.f32 %v3103_v7, %v3102_v46  ;;  %v3115_v41 = vsel %vm668_vm1, %v3092_v3, 0.0  ;;  %v3095_v55 = vmul.f32 %v6675_v2, %v6675_v2  ;;  %v3096_v61 = vmul.f32 %v6677_v54, %v6677_v54 }
 0x3e2   :  { %v3117_v34 = vsel %vm668_vm1, %v3093_v56, 0.0  ;;  %v3119_v45 = vsel %vm668_vm1, %v3094_v13, 0.0  ;;  %v3097_v44 = vmul.f32 %v6679_v51, %v6679_v51  ;;  %v3098_v43 = vmul.f32 %v6681_v63, %v6681_v63 }
 0x3e3   :  { %v3106_v47 = vadd.f32 %v3105_v20, %v3104_v24  ;;  %v3121_v36 = vsel %vm668_vm1, %v3095_v55, 0.0  ;;  %v3123_v0 = vsel %vm668_vm1, %v3096_v61, 0.0  ;;  %v3099_v10 = vmul.f32 %v6683_v30, %v6683_v30 }
 0x3e4   :  { %v3125_v59 = vsel %vm668_vm1, %v3097_v44, 0.0  ;;  %v3127_v27 = vsel %vm668_vm1, %v3098_v43, 0.0 }
 0x3e5   :  { %v3108_v5 = vadd.f32 %v3107_v38, %v3106_v47  ;;  %v3129_v8 = vsel %vm668_vm1, %v3099_v10, 0.0  ;;  %v4126_v47 = vld [vmem:[%s7197_s6] ss:$0 sm:$0xff] }
 0x3e7   :  { %v3110_v17 = vadd.f32 %v3109_v14, %v3108_v5 }
 0x3e9   :  { %v3112_v48 = vadd.f32 %v3111_v31, %v3110_v17 }
 0x3eb   :  { %v3114_v39 = vadd.f32 %v3113_v22, %v3112_v48 }
 0x3ed   :  { %v3116_v28 = vadd.f32 %v3115_v41, %v3114_v39 }
 0x3ef   :  { %v3118_v18 = vadd.f32 %v3117_v34, %v3116_v28 }
 0x3f1   :  { %v3120_v11 = vadd.f32 %v3119_v45, %v3118_v18 }
 0x3f3   :  { %v3122_v9 = vadd.f32 %v3121_v36, %v3120_v11 }
 0x3f5   :  { %v3124_v40 = vadd.f32 %v3123_v0, %v3122_v9 }
 0x3f7   :  { %v3126_v35 = vadd.f32 %v3125_v59, %v3124_v40 }
 0x3f9   :  { %v3128_v37 = vadd.f32 %v3127_v27, %v3126_v35 }
 0x3fb   :  { %v3130_v25 = vadd.f32 %v3129_v8, %v3128_v37 }
 0x3fd   :  { %v3131_v12 = vrot.slane %v3130_v25, 4 }
 0x3ff   :  { %v3132_v23 = vadd.f32 %v3131_v12, %v3130_v25 }
 0x401   :  { %v3133_v52 = vrot.slane %v3132_v23, 2 }
 0x403   :  { %v3134_v26 = vadd.f32 %v3133_v52, %v3132_v23 }
 0x405   :  { %v3135_v15 = vrot.slane %v3134_v26, 1 }
 0x407   :  { %v3136_v42 = vadd.f32 %v3135_v15, %v3134_v26 }
 0x409   :  { %v3137_v1 = vmul.f32 0.0078125, %v3136_v42 }
 0x40b   :  { %v3138_v46 = vadd.f32 1e-05, %v3137_v1 }
 0x40d   :  { %4607 = vrsqrt.f32 %v3138_v46 }
 0x41a   :  { %v4608_v7 = vpop.eup %4607 }
 0x41b   :  { %v3140_v24 = vmul.f32 %v4608_v7, %v3028_v33 }
 0x41d   :  { %v3145_v20 = vrot.slane %v3140_v24, %v7399_v32 }
 0x41f   :  { %v3160_v53 = vmul.f32 %v3145_v20, %v6679_v51  ;;  %v3147_v38 = vmul.f32 %v3145_v20, %v6645_v21  ;;  %v3148_v5 = vmul.f32 %v3145_v20, %v6648_v4  ;;  %v3149_v29 = vmul.f32 %v3145_v20, %v6651_v16 }
 0x420   :  { %v3150_v14 = vmul.f32 %v3145_v20, %v6654_v62  ;;  %v3151_v17 = vmul.f32 %v3145_v20, %v6657_v60  ;;  %v3152_v3 = vmul.f32 %v3145_v20, %v6660_v6  ;;  %v3153_v31 = vmul.f32 %v3145_v20, %v6663_v50 }
 0x421   :  { %v3182_v48 = vadd.f32 %v4126_v47, %v3160_v53  ;;  %v3169_v56 = vadd.f32 %v4126_v47, %v3147_v38  ;;  %v3170_v22 = vadd.f32 %v4126_v47, %v3148_v5  ;;  %v3171_v39 = vadd.f32 %v4126_v47, %v3149_v29 }
 0x422   :  { %v3172_v13 = vadd.f32 %v4126_v47, %v3150_v14  ;;  %v3173_v51 = vadd.f32 %v4126_v47, %v3151_v17  ;;  %v3174_v41 = vadd.f32 %v4126_v47, %v3152_v3  ;;  %v3154_v21 = vmul.f32 %v3145_v20, %v6666_v57 }
 0x423   :  { %v3198_v4 = vmax.f32 %v3182_v48, 0.0  ;;  %v3185_v28 = vmax.f32 %v3169_v56, 0.0  ;;  %v3186_v16 = vmax.f32 %v3170_v22, 0.0  ;;  %v3187_v55 = vmax.f32 %v3171_v39, 0.0 }
 0x424   :  { %v3188_v62 = vmax.f32 %v3172_v13, 0.0  ;;  %v3189_v34 = vmax.f32 %v3173_v51, 0.0  ;;  %v3190_v60 = vmax.f32 %v3174_v41, 0.0  ;;  %v3175_v18 = vadd.f32 %v4126_v47, %v3153_v31 }
 0x425   :  { %v3201_v6 = vpack.c.bf16 %v3186_v16, %v3185_v28  ;;  %v3176_v61 = vadd.f32 %v4126_v47, %v3154_v21  ;;  %v3155_v50 = vmul.f32 %v3145_v20, %v6669_v49  ;;  %v3156_v45 = vmul.f32 %v3145_v20, %v6671_v19 }
 0x426   :  { %v3202_v11 = vpack.c.bf16 %v3188_v62, %v3187_v55  ;;  %v3203_v44 = vpack.c.bf16 %v3190_v60, %v3189_v34  ;;  %v3191_v36 = vmax.f32 %v3175_v18, 0.0  ;;  %v3157_v9 = vmul.f32 %v3145_v20, %v6673_v58 }
 0x427   :  { %4516 = vmatprep.mubr.msk.bf16.mxu1 %vm668_vm1, %v3201_v6  ;;  %v3192_v57 = vmax.f32 %v3176_v61, 0.0  ;;  %v3177_v43 = vadd.f32 %v4126_v47, %v3155_v50  ;;  %v3178_v0 = vadd.f32 %v4126_v47, %v3156_v45  ;;  %v3158_v40 = vmul.f32 %v3145_v20, %v6675_v2 }
 0x428   :  { %4517 = vmatmul.mubr.msk.bf16.vlgmr.msra.gmra.mxu1 %vm668_vm1, %v3202_v11  ;;  %v3179_v10 = vadd.f32 %v4126_v47, %v3157_v9  ;;  %v3159_v59 = vmul.f32 %v3145_v20, %v6677_v54  ;;  %v3161_v49 = vmul.f32 %v3145_v20, %v6681_v63  ;;  %v3162_v19 = vmul.f32 %v3145_v20, %v6683_v30  ;;  %v4536_v30 = vpop.f32.mrf.mxu0 }
 0x429   :  { %4520 = vmatprep.mubr.msk.bf16.mxu1 %vm668_vm1, %v3203_v44  ;;  %v3204_v35 = vpack.c.bf16 %v3192_v57, %v3191_v36  ;;  %v3193_v58 = vmax.f32 %v3177_v43, 0.0  ;;  %v3194_v27 = vmax.f32 %v3178_v0, 0.0  ;;  %v3180_v37 = vadd.f32 %v4126_v47, %v3158_v40 }
 0x42a   :  { %v3195_v8 = vmax.f32 %v3179_v10, 0.0  ;;  %v3181_v25 = vadd.f32 %v4126_v47, %v3159_v59  ;;  %v3183_v12 = vadd.f32 %v4126_v47, %v3161_v49  ;;  %v3184_v23 = vadd.f32 %v4126_v47, %v3162_v19  ;;  %v3614_v46 = vpop.f32.mrf.mxu0 }
 0x42b   :  { %v3205_v2 = vpack.c.bf16 %v3194_v27, %v3193_v58  ;;  %v3196_v52 = vmax.f32 %v3180_v37, 0.0  ;;  %v3679_v24 = vsel %vm3336_vm5, %v3614_v46, 0.0  ;;  %v3682_v38 = vsel %vm3336_vm5, %v4536_v30, 0.0 }
 0x42c   :  { %v3197_v26 = vmax.f32 %v3181_v25, 0.0  ;;  %v3199_v15 = vmax.f32 %v3183_v12, 0.0  ;;  %v3200_v42 = vmax.f32 %v3184_v23, 0.0  ;;  %v4537_v33 = vpop.f32.mrf.mxu0 }
 0x42d   :  { %v3206_v54 = vpack.c.bf16 %v3196_v52, %v3195_v8  ;;  %v3684_v14 = vsel %vm3336_vm5, %v4537_v33, 0.0 }
 0x42e   :  { %v3207_v1 = vpack.c.bf16 %v3198_v4, %v3197_v26  ;;  %v3208_v63 = vpack.c.bf16 %v3200_v42, %v3199_v15  ;;  %v3617_v7 = vpop.f32.mrf.mxu0 }
 0x42f   :  { %v3680_v20 = vsel %vm3336_vm5, %v3617_v7, 0.0 }
 0x430   :  { %4521 = vmatmul.mubr.msk.bf16.gmra.mxu1 %vm668_vm1, %v3204_v35  ;;  %v6766_v47 = vpop.f32.mrf.mxu0  ;;  %v3681_v53 = vadd.f32 %v3680_v20, %v3679_v24 }
 0x431   :  { %4524 = vmatprep.mubr.msk.bf16.mxu1 %vm668_vm1, %v3205_v2  ;;  %v3690_v51 = vsel %vm3336_vm5, %v6766_v47, 0.0 }
 0x432   :  { %v3630_v5 = vpop.f32.mrf.mxu0  ;;  %v3683_v29 = vadd.f32 %v3682_v38, %v3681_v53 }
 0x433   :  { %v3686_v31 = vsel %vm3336_vm5, %v3630_v5, 0.0 }
 0x434   :  { %v6770_v17 = vpop.f32.mrf.mxu0  ;;  %v3685_v3 = vadd.f32 %v3684_v14, %v3683_v29 }
 0x435   :  { %v3692_v4 = vsel %vm3336_vm5, %v6770_v17, 0.0 }
 0x436   :  { %v3633_v48 = vpop.f32.mrf.mxu0  ;;  %v3687_v56 = vadd.f32 %v3686_v31, %v3685_v3 }
 0x437   :  { %v3688_v22 = vsel %vm3336_vm5, %v3633_v48, 0.0 }
 0x438   :  { %4525 = vmatmul.mubr.msk.bf16.gmra.mxu1 %vm668_vm1, %v3206_v54  ;;  %v6774_v39 = vpop.f32.mrf.mxu0  ;;  %v3689_v13 = vadd.f32 %v3688_v22, %v3687_v56 }
 0x439   :  { %4528 = vmatprep.mubr.msk.bf16.mxu1 %vm668_vm1, %v3207_v1  ;;  %v3698_v61 = vsel %vm3336_vm5, %v6774_v39, 0.0 }
 0x43a   :  { %v6778_v41 = vpop.f32.mrf.mxu0  ;;  %v3691_v21 = vadd.f32 %v3690_v51, %v3689_v13 }
 0x43b   :  { %v3694_v55 = vsel %vm3336_vm5, %v6778_v41, 0.0 }
 0x43c   :  { %v6782_v28 = vpop.f32.mrf.mxu0  ;;  %v3693_v16 = vadd.f32 %v3692_v4, %v3691_v21 }
 0x43d   :  { %v3700_v11 = vsel %vm3336_vm5, %v6782_v28, 0.0 }
 0x43e   :  { %v6786_v62 = vpop.f32.mrf.mxu0  ;;  %v3695_v34 = vadd.f32 %v3694_v55, %v3693_v16 }
 0x43f   :  { %v3696_v60 = vsel %vm3336_vm5, %v6786_v62, 0.0 }
 0x440   :  { %4529 = vmatmul.mubr.msk.bf16.gmra.mxu1 %vm668_vm1, %v3208_v63  ;;  %v6790_v18 = vpop.f32.mrf.mxu0  ;;  %v3697_v6 = vadd.f32 %v3696_v60, %v3695_v34 }
 0x441   :  { %v3706_v10 = vsel %vm3336_vm5, %v6790_v18, 0.0 }
 0x442   :  { %v6794_v50 = vpop.f32.mrf.mxu0  ;;  %v3699_v45 = vadd.f32 %v3698_v61, %v3697_v6 }
 0x443   :  { %v3702_v9 = vsel %vm3336_vm5, %v6794_v50, 0.0 }
 0x444   :  { %v6798_v44 = vpop.f32.mrf.mxu0  ;;  %v3701_v36 = vadd.f32 %v3700_v11, %v3699_v45 }
 0x445   :  { %v3708_v49 = vsel %vm3336_vm5, %v6798_v44, 0.0 }
 0x446   :  { %v6802_v57 = vpop.f32.mrf.mxu0  ;;  %v3703_v43 = vadd.f32 %v3702_v9, %v3701_v36 }
 0x447   :  { %v3704_v0 = vsel %vm3336_vm5, %v6802_v57, 0.0 }
 0x448   :  { %v3705_v40 = vadd.f32 %v3704_v0, %v3703_v43 }
 0x44a   :  { %v3707_v59 = vadd.f32 %v3706_v10, %v3705_v40 }
 0x44c   :  { %v3709_v19 = vadd.f32 %v3708_v49, %v3707_v59 }
 0x44e   :  { %v3710_v35 = vrot.slane %v3709_v19, 4 }
 0x450   :  { %v3711_v58 = vadd.f32 %v3710_v35, %v3709_v19 }
 0x452   :  { %v3712_v27 = vrot.slane %v3711_v58, 2 }
 0x454   :  { %v3713_v37 = vadd.f32 %v3712_v27, %v3711_v58 }
 0x456   :  { %v3714_v8 = vrot.slane %v3713_v37, 1 }
 0x458   :  { %v3715_v25 = vadd.f32 %v3714_v8, %v3713_v37 }
 0x45a   :  { %v6810_v12 = vmul.f32 0.0078125, %v3715_v25 }
 0x45c   :  { %v6813_v23 = vsub.f32 %v3614_v46, %v6810_v12  ;;  %v6816_v2 = vsub.f32 %v3617_v7, %v6810_v12  ;;  %v6819_v52 = vsub.f32 %v4536_v30, %v6810_v12  ;;  %v6826_v42 = vsub.f32 %v4537_v33, %v6810_v12 }
 0x45d   :  { %v6833_v30 = vsub.f32 %v3630_v5, %v6810_v12  ;;  %v6843_v38 = vsub.f32 %v3633_v48, %v6810_v12  ;;  %v6858_v48 = vsub.f32 %v6766_v47, %v6810_v12  ;;  %v6873_v47 = vsub.f32 %v6770_v17, %v6810_v12 }
 0x45e   :  { %v3733_v26 = vmul.f32 %v6813_v23, %v6813_v23  ;;  %v3734_v15 = vmul.f32 %v6816_v2, %v6816_v2  ;;  %v3735_v54 = vmul.f32 %v6819_v52, %v6819_v52  ;;  %v3736_v7 = vmul.f32 %v6826_v42, %v6826_v42 }
 0x45f   :  { %v3737_v29 = vmul.f32 %v6833_v30, %v6833_v30  ;;  %v3738_v13 = vmul.f32 %v6843_v38, %v6843_v38  ;;  %v3739_v61 = vmul.f32 %v6858_v48, %v6858_v48  ;;  %v6888_v17 = vsub.f32 %v6778_v41, %v6810_v12 }
 0x460   :  { %v3749_v1 = vsel %vm3336_vm5, %v3733_v26, 0.0  ;;  %v3750_v63 = vsel %vm3336_vm5, %v3734_v15, 0.0  ;;  %v3752_v24 = vsel %vm3336_vm5, %v3735_v54, 0.0  ;;  %v3754_v14 = vsel %vm3336_vm5, %v3736_v7, 0.0 }
 0x461   :  { %v3751_v46 = vadd.f32 %v3750_v63, %v3749_v1  ;;  %v3756_v51 = vsel %vm3336_vm5, %v3737_v29, 0.0  ;;  %v3758_v45 = vsel %vm3336_vm5, %v3738_v13, 0.0  ;;  %v3740_v59 = vmul.f32 %v6873_v47, %v6873_v47 }
 0x462   :  { %v3760_v49 = vsel %vm3336_vm5, %v3739_v61, 0.0  ;;  %v6903_v41 = vsub.f32 %v6786_v62, %v6810_v12  ;;  %v3741_v26 = vmul.f32 %v6888_v17, %v6888_v17  ;;  %v6918_v62 = vsub.f32 %v6774_v39, %v6810_v12 }
 0x463   :  { %v3753_v53 = vadd.f32 %v3752_v24, %v3751_v46  ;;  %v3762_v15 = vsel %vm3336_vm5, %v3740_v59, 0.0  ;;  %v6933_v39 = vsub.f32 %v6782_v28, %v6810_v12  ;;  %v6948_v28 = vsub.f32 %v6794_v50, %v6810_v12 }
 0x464   :  { %v3742_v29 = vmul.f32 %v6903_v41, %v6903_v41 }
 0x465   :  { %v3755_v31 = vadd.f32 %v3754_v14, %v3753_v53  ;;  %v3764_v14 = vsel %vm3336_vm5, %v3741_v26, 0.0  ;;  %v3745_v50 = vmul.f32 %v6948_v28, %v6948_v28 }
 0x467   :  { %v3757_v60 = vadd.f32 %v3756_v51, %v3755_v31 }
 0x469   :  { %v3759_v40 = vadd.f32 %v3758_v45, %v3757_v60  ;;  %v3766_v60 = vsel %vm3336_vm5, %v3742_v29, 0.0 }
 0x46b   :  { %v3761_v8 = vadd.f32 %v3760_v49, %v3759_v40 }
 0x46d   :  { %v3763_v24 = vadd.f32 %v3762_v15, %v3761_v8 }
 0x4e8   :  { %v6838_v20 = vpop.f32.mrf.mxu1 }
 0x4e9   :  { %v3340_v16 = vsel %vm3336_vm5, %v6838_v20, 0.0 }
 0x4ea   :  { %v6840_v33 = vpop.f32.mrf.mxu1 }
 0x4eb   :  { %v3337_v56 = vsel %vm3336_vm5, %v6840_v33, 0.0 }
 0x4ec   :  { %v6848_v5 = vpop.f32.mrf.mxu1 }
 0x4ed   :  { %v3342_v6 = vsel %vm3336_vm5, %v6848_v5, 0.0 }
 0x4ee   :  { %v6850_v3 = vpop.f32.mrf.mxu1 }
 0x4ef   :  { %v3338_v22 = vsel %vm3336_vm5, %v6850_v3, 0.0 }
 0x4f0   :  { %v3339_v21 = vadd.f32 %v3338_v22, %v3337_v56  ;;  %v6863_v4 = vpop.f32.mrf.mxu1 }
 0x4f1   :  { %v3348_v58 = vsel %vm3336_vm5, %v6863_v4, 0.0 }
 0x4f2   :  { %v3341_v55 = vadd.f32 %v3340_v16, %v3339_v21  ;;  %v6867_v34 = vpop.f32.mrf.mxu1  ;;  %v3765_v21 = vadd.f32 %v3764_v14, %v3763_v24 }
 0x4f3   :  { %v3344_v9 = vsel %vm3336_vm5, %v6867_v34, 0.0 }
 0x4f4   :  { %v3343_v11 = vadd.f32 %v3342_v6, %v3341_v55  ;;  %v6878_v36 = vpop.f32.mrf.mxu1  ;;  %v3743_v55 = vmul.f32 %v6918_v62, %v6918_v62 }
 0x4f5   :  { %v3350_v25 = vsel %vm3336_vm5, %v6878_v36, 0.0 }
 0x4f6   :  { %v3345_v43 = vadd.f32 %v3344_v9, %v3343_v11  ;;  %v6882_v0 = vpop.f32.mrf.mxu1  ;;  %v3768_v59 = vsel %vm3336_vm5, %v3743_v55, 0.0 }
 0x4f7   :  { %v3346_v10 = vsel %vm3336_vm5, %v6882_v0, 0.0 }
 0x4f8   :  { %v3347_v19 = vadd.f32 %v3346_v10, %v3345_v43  ;;  %v6893_v35 = vpop.f32.mrf.mxu1  ;;  %v3767_v43 = vadd.f32 %v3766_v60, %v3765_v21  ;;  %v3744_v10 = vmul.f32 %v6933_v39, %v6933_v39 }
 0x4f9   :  { %v3356_v22 = vsel %vm3336_vm5, %v6893_v35, 0.0 }
 0x4fa   :  { %v3349_v27 = vadd.f32 %v3348_v58, %v3347_v19  ;;  %v6897_v37 = vpop.f32.mrf.mxu1  ;;  %v3770_v26 = vsel %vm3336_vm5, %v3744_v10, 0.0 }
 0x4fb   :  { %v3352_v63 = vsel %vm3336_vm5, %v6897_v37, 0.0 }
 0x4fc   :  { %v3351_v54 = vadd.f32 %v3350_v25, %v3349_v27  ;;  %v6908_v1 = vpop.f32.mrf.mxu1  ;;  %v3769_v27 = vadd.f32 %v3768_v59, %v3767_v43  ;;  %v6959_v25 = vsub.f32 %v6802_v57, %v6810_v12 }
 0x4fd   :  { %v3358_v16 = vsel %vm3336_vm5, %v6908_v1, 0.0 }
 0x4fe   :  { %v3353_v46 = vadd.f32 %v3352_v63, %v3351_v54  ;;  %v6912_v7 = vpop.f32.mrf.mxu1  ;;  %v3771_v63 = vadd.f32 %v3770_v26, %v3769_v27  ;;  %v3746_v24 = vmul.f32 %v6959_v25, %v6959_v25 }
 0x4ff   :  { %v3354_v53 = vsel %vm3336_vm5, %v6912_v7, 0.0 }
 0x500   :  { %v3355_v31 = vadd.f32 %v3354_v53, %v3353_v46  ;;  %v6923_v56 = vpop.f32.mrf.mxu1  ;;  %v6966_v46 = vsub.f32 %v6790_v18, %v6810_v12  ;;  %v3772_v53 = vsel %vm3336_vm5, %v3745_v50, 0.0 }
 0x501   :  { %v3364_v19 = vsel %vm3336_vm5, %v6923_v56, 0.0  ;;  %v3773_v14 = vadd.f32 %v3772_v53, %v3771_v63 }
 0x502   :  { %v3357_v13 = vadd.f32 %v3356_v22, %v3355_v31  ;;  %v6927_v51 = vpop.f32.mrf.mxu1  ;;  %v6973_v31 = vsub.f32 %v6798_v44, %v6810_v12  ;;  %v3747_v22 = vmul.f32 %v6966_v46, %v6966_v46 }
 0x503   :  { %v3360_v45 = vsel %vm3336_vm5, %v6927_v51, 0.0 }
 0x504   :  { %v3359_v6 = vadd.f32 %v3358_v16, %v3357_v13  ;;  %v6938_v61 = vpop.f32.mrf.mxu1  ;;  %v3774_v13 = vsel %vm3336_vm5, %v3746_v24, 0.0  ;;  %v3748_v55 = vmul.f32 %v6973_v31, %v6973_v31  ;;  %v3776_v60 = vsel %vm3336_vm5, %v3747_v22, 0.0 }
 0x505   :  { %v3366_v8 = vsel %vm3336_vm5, %v6938_v61, 0.0  ;;  %v3775_v16 = vadd.f32 %v3774_v13, %v3773_v14 }
 0x506   :  { %v3361_v11 = vadd.f32 %v3360_v45, %v3359_v6  ;;  %v6942_v9 = vpop.f32.mrf.mxu1  ;;  %v3778_v43 = vsel %vm3336_vm5, %v3748_v55, 0.0 }
 0x507   :  { %v3362_v40 = vsel %vm3336_vm5, %v6942_v9, 0.0 }
 0x508   :  { %v3363_v49 = vadd.f32 %v3362_v40, %v3361_v11  ;;  %v3777_v11 = vadd.f32 %v3776_v60, %v3775_v16 }
 0x50a   :  { %v3365_v58 = vadd.f32 %v3364_v19, %v3363_v49  ;;  %v3779_v10 = vadd.f32 %v3778_v43, %v3777_v11 }
 0x50c   :  { %v3367_v15 = vadd.f32 %v3366_v8, %v3365_v58 }
 0x50e   :  { %v3368_v54 = vrot.slane %v3367_v15, 4 }
 0x510   :  { %v3369_v29 = vadd.f32 %v3368_v54, %v3367_v15 }
 0x512   :  { %v3370_v57 = vrot.slane %v3369_v29, 2 }
 0x514   :  { %v3371_v21 = vadd.f32 %v3370_v57, %v3369_v29 }
 0x516   :  { %v3372_v18 = vrot.slane %v3371_v21, 1 }
 0x518   :  { %v3373_v6 = vadd.f32 %v3372_v18, %v3371_v21 }
 0x51a   :  { %v3374_v45 = vmul.f32 0.0078125, %v3373_v6 }
 0x51c   :  { %v6983_v44 = vsub.f32 %v6840_v33, %v3374_v45  ;;  %v6986_v12 = vsub.f32 %v6850_v3, %v3374_v45  ;;  %v6989_v40 = vsub.f32 %v6838_v20, %v3374_v45  ;;  %v6992_v59 = vsub.f32 %v6848_v5, %v3374_v45 }
 0x51d   :  { %v6999_v58 = vsub.f32 %v6867_v34, %v3374_v45  ;;  %v3780_v3 = vrot.slane %v3779_v10, 4  ;;  %v7004_v20 = vsub.f32 %v6882_v0, %v3374_v45  ;;  %v7011_v26 = vsub.f32 %v6863_v4, %v3374_v45 }
 0x51e   :  { %v3391_v49 = vmul.f32 %v6983_v44, %v6983_v44  ;;  %v3392_v19 = vmul.f32 %v6986_v12, %v6986_v12  ;;  %v3393_v33 = vmul.f32 %v6989_v40, %v6989_v40  ;;  %v3394_v5 = vmul.f32 %v6992_v59, %v6992_v59 }
 0x51f   :  { %v3395_v34 = vmul.f32 %v6999_v58, %v6999_v58  ;;  %v3781_v63 = vadd.f32 %v3780_v3, %v3779_v10  ;;  %v7017_v0 = vsub.f32 %v6878_v36, %v3374_v45  ;;  %v3396_v24 = vmul.f32 %v7004_v20, %v7004_v20 }
 0x520   :  { %v3407_v27 = vsel %vm3336_vm5, %v3391_v49, 0.0  ;;  %v3408_v8 = vsel %vm3336_vm5, %v3392_v19, 0.0  ;;  %v3410_v15 = vsel %vm3336_vm5, %v3393_v33, 0.0  ;;  %v3412_v53 = vsel %vm3336_vm5, %v3394_v5, 0.0 }
 0x521   :  { %v3409_v50 = vadd.f32 %v3408_v8, %v3407_v27  ;;  %v7023_v57 = vsub.f32 %v6897_v37, %v3374_v45  ;;  %v3397_v4 = vmul.f32 %v7011_v26, %v7011_v26  ;;  %v3414_v14 = vsel %vm3336_vm5, %v3395_v34, 0.0 }
 0x522   :  { %v3782_v13 = vrot.slane %v3781_v63, 2  ;;  %v7029_v21 = vsub.f32 %v6912_v7, %v3374_v45  ;;  %v3398_v36 = vmul.f32 %v7017_v0, %v7017_v0  ;;  %v3416_v18 = vsel %vm3336_vm5, %v3396_v24, 0.0 }
 0x523   :  { %v3411_v54 = vadd.f32 %v3410_v15, %v3409_v50  ;;  %v7035_v55 = vsub.f32 %v6893_v35, %v3374_v45  ;;  %v3399_v37 = vmul.f32 %v7023_v57, %v7023_v57  ;;  %v3418_v60 = vsel %vm3336_vm5, %v3397_v4, 0.0 }
 0x524   :  { %v3783_v11 = vadd.f32 %v3782_v13, %v3781_v63  ;;  %v7041_v43 = vsub.f32 %v6908_v1, %v3374_v45  ;;  %v3400_v7 = vmul.f32 %v7029_v21, %v7029_v21  ;;  %v3420_v10 = vsel %vm3336_vm5, %v3398_v36, 0.0 }
 0x525   :  { %v3413_v29 = vadd.f32 %v3412_v53, %v3411_v54  ;;  %v7047_v19 = vsub.f32 %v6927_v51, %v3374_v45  ;;  %v3401_v35 = vmul.f32 %v7035_v55, %v7035_v55  ;;  %v3422_v33 = vsel %vm3336_vm5, %v3399_v37, 0.0 }
 0x526   :  { %v3784_v5 = vrot.slane %v3783_v11, 1  ;;  %v7053_v27 = vsub.f32 %v6942_v9, %v3374_v45  ;;  %v3402_v1 = vmul.f32 %v7041_v43, %v7041_v43  ;;  %v3424_v8 = vsel %vm3336_vm5, %v3400_v7, 0.0 }
 0x527   :  { %v3415_v22 = vadd.f32 %v3414_v14, %v3413_v29  ;;  %v7059_v34 = vsub.f32 %v6923_v56, %v3374_v45  ;;  %v3403_v51 = vmul.f32 %v7047_v19, %v7047_v19  ;;  %v3426_v15 = vsel %vm3336_vm5, %v3401_v35, 0.0 }
 0x528   :  { %v3785_v63 = vadd.f32 %v3784_v5, %v3783_v11  ;;  %v7065_v24 = vsub.f32 %v6938_v61, %v3374_v45  ;;  %v3404_v9 = vmul.f32 %v7053_v27, %v7053_v27  ;;  %v3428_v53 = vsel %vm3336_vm5, %v3402_v1, 0.0  ;;  %v3677_v5 = vld [vmem:[%s7198_s11] sm:$0x1] }
 0x529   :  { %v3417_v16 = vadd.f32 %v3416_v18, %v3415_v22  ;;  %v3405_v56 = vmul.f32 %v7059_v34, %v7059_v34  ;;  %v3430_v4 = vsel %vm3336_vm5, %v3403_v51, 0.0 }
 0x52a   :  { %v3786_v22 = vmul.f32 0.0078125, %v3785_v63  ;;  %v3406_v13 = vmul.f32 %v7065_v24, %v7065_v24  ;;  %v3432_v36 = vsel %vm3336_vm5, %v3404_v9, 0.0 }
 0x52b   :  { %v3419_v6 = vadd.f32 %v3418_v60, %v3417_v16  ;;  %v3434_v45 = vsel %vm3336_vm5, %v3405_v56, 0.0 }
 0x52c   :  { %v3787_v16 = vadd.f32 1e-05, %v3786_v22  ;;  %v3436_v37 = vsel %vm3336_vm5, %v3406_v13, 0.0 }
 0x52d   :  { %v3421_v49 = vadd.f32 %v3420_v10, %v3419_v6 }
 0x52e   :  { %4609 = vrsqrt.f32 %v3787_v16 }
 0x52f   :  { %v3423_v3 = vadd.f32 %v3422_v33, %v3421_v49 }
 0x531   :  { %v3425_v50 = vadd.f32 %v3424_v8, %v3423_v3 }
 0x533   :  { %v3427_v54 = vadd.f32 %v3426_v15, %v3425_v50 }
 0x535   :  { %v3429_v29 = vadd.f32 %v3428_v53, %v3427_v54  ;;  %v4153_v54 = vld [vmem:[%s7199_s12] ss:$0 sm:$0xff] }
 0x537   :  { %v3431_v14 = vadd.f32 %v3430_v4, %v3429_v29 }
 0x539   :  { %v3433_v61 = vadd.f32 %v3432_v36, %v3431_v14  ;;  %v3334_v14 = vld [vmem:[%s7200_s8] sm:$0x1] }
 0x53b   :  { %v3435_v18 = vadd.f32 %v3434_v45, %v3433_v61  ;;  %v4610_v3 = vpop.eup %4609 }
 0x53c   :  { %v3789_v8 = vmul.f32 %v4610_v3, %v3677_v5 }
 0x53d   :  { %v3437_v60 = vadd.f32 %v3436_v37, %v3435_v18 }
 0x53e   :  { %v3794_v50 = vrot.slane %v3789_v8, %v7399_v32 }
 0x53f   :  { %v3438_v6 = vrot.slane %v3437_v60, 4 }
 0x540   :  { %v3796_v51 = vmul.f32 %v3794_v50, %v6813_v23  ;;  %v3797_v15 = vmul.f32 %v3794_v50, %v6816_v2  ;;  %v3798_v63 = vmul.f32 %v3794_v50, %v6819_v52  ;;  %v3799_v9 = vmul.f32 %v3794_v50, %v6826_v42 }
 0x541   :  { %v3439_v11 = vadd.f32 %v3438_v6, %v3437_v60  ;;  %v3800_v53 = vmul.f32 %v3794_v50, %v6833_v30  ;;  %v3801_v29 = vmul.f32 %v3794_v50, %v6843_v38  ;;  %v3802_v56 = vmul.f32 %v3794_v50, %v6858_v48 }
 0x542   :  { %v3803_v4 = vmul.f32 %v3794_v50, %v6873_v47  ;;  %v3804_v23 = vmul.f32 %v3794_v50, %v6888_v17  ;;  %v3805_v2 = vmul.f32 %v3794_v50, %v6903_v41  ;;  %v3806_v52 = vmul.f32 %v3794_v50, %v6918_v62 }
 0x543   :  { %v3440_v7 = vrot.slane %v3439_v11, 2  ;;  %v3807_v42 = vmul.f32 %v3794_v50, %v6933_v39  ;;  %v3808_v30 = vmul.f32 %v3794_v50, %v6948_v28  ;;  %v3809_v38 = vmul.f32 %v3794_v50, %v6959_v25 }
 0x544   :  { %v3810_v48 = vmul.f32 %v3794_v50, %v6966_v46  ;;  %v3811_v47 = vmul.f32 %v3794_v50, %v6973_v31  ;;  %v3818_v17 = vadd.f32 %v4153_v54, %v3796_v51  ;;  %v3819_v13 = vadd.f32 %v4153_v54, %v3797_v15 }
 0x545   :  { %v3441_v10 = vadd.f32 %v3440_v7, %v3439_v11  ;;  %v3820_v41 = vadd.f32 %v4153_v54, %v3798_v63  ;;  %v3821_v36 = vadd.f32 %v4153_v54, %v3799_v9  ;;  %v3822_v61 = vadd.f32 %v4153_v54, %v3800_v53 }
 0x546   :  { %v3823_v18 = vadd.f32 %v4153_v54, %v3801_v29  ;;  %v3824_v16 = vadd.f32 %v4153_v54, %v3802_v56  ;;  %v3825_v62 = vadd.f32 %v4153_v54, %v3803_v4  ;;  %v3826_v37 = vadd.f32 %v4153_v54, %v3804_v23 }
 0x547   :  { %v3442_v49 = vrot.slane %v3441_v10, 1  ;;  %v3827_v39 = vadd.f32 %v4153_v54, %v3805_v2  ;;  %v3828_v60 = vadd.f32 %v4153_v54, %v3806_v52  ;;  %v3829_v28 = vadd.f32 %v4153_v54, %v3807_v42 }
 0x548   :  { %v3830_v6 = vadd.f32 %v4153_v54, %v3808_v30  ;;  %v3831_v11 = vadd.f32 %v4153_v54, %v3809_v38  ;;  %v3832_v46 = vadd.f32 %v4153_v54, %v3810_v48  ;;  %v3833_v7 = vadd.f32 %v4153_v54, %v3811_v47 }
 0x549   :  { %v3443_v35 = vadd.f32 %v3442_v49, %v3441_v10 }
 0x54b   :  { %v3444_v33 = vmul.f32 0.0078125, %v3443_v35 }
 0x54d   :  { %v3445_v1 = vadd.f32 1e-05, %v3444_v33  ;;  %v4135_v33 = vld [vmem:[%s7201_s9] ss:$0 sm:$0xff] }
 0x54f   :  { %4611 = vrsqrt.f32 %v3445_v1 }
 0x55c   :  { %v4612_v22 = vpop.eup %4611 }
 0x55d   :  { %v3447_v45 = vmul.f32 %v4612_v22, %v3334_v14 }
 0x55f   :  { %v3452_v25 = vrot.slane %v3447_v45, %v7399_v32 }
 0x561   :  { %v3454_v31 = vmul.f32 %v3452_v25, %v6983_v44  ;;  %v3455_v10 = vmul.f32 %v3452_v25, %v6986_v12  ;;  %v3456_v49 = vmul.f32 %v3452_v25, %v6989_v40  ;;  %v3457_v35 = vmul.f32 %v3452_v25, %v6992_v59 }
 0x562   :  { %v3458_v3 = vmul.f32 %v3452_v25, %v6999_v58  ;;  %v3459_v32 = vmul.f32 %v3452_v25, %v7004_v20  ;;  %v3460_v5 = vmul.f32 %v3452_v25, %v7011_v26  ;;  %v3461_v1 = vmul.f32 %v3452_v25, %v7017_v0 }
 0x563   :  { %v3462_v44 = vmul.f32 %v3452_v25, %v7023_v57  ;;  %v3463_v12 = vmul.f32 %v3452_v25, %v7029_v21  ;;  %v3464_v40 = vmul.f32 %v3452_v25, %v7035_v55  ;;  %v3465_v59 = vmul.f32 %v3452_v25, %v7041_v43 }
 0x564   :  { %v3466_v8 = vmul.f32 %v3452_v25, %v7047_v19  ;;  %v3467_v50 = vmul.f32 %v3452_v25, %v7053_v27  ;;  %v3468_v58 = vmul.f32 %v3452_v25, %v7059_v34  ;;  %v3469_v20 = vmul.f32 %v3452_v25, %v7065_v24 }
 0x565   :  { %v3476_v51 = vadd.f32 %v4135_v33, %v3454_v31  ;;  %v3477_v26 = vadd.f32 %v4135_v33, %v3455_v10  ;;  %v3478_v15 = vadd.f32 %v4135_v33, %v3456_v49  ;;  %v3479_v0 = vadd.f32 %v4135_v33, %v3457_v35 }
 0x566   :  { %v3480_v54 = vadd.f32 %v4135_v33, %v3458_v3  ;;  %v3481_v57 = vadd.f32 %v4135_v33, %v3459_v32  ;;  %v3482_v63 = vadd.f32 %v4135_v33, %v3460_v5  ;;  %v3483_v21 = vadd.f32 %v4135_v33, %v3461_v1 }
 0x567   :  { %v3484_v9 = vadd.f32 %v4135_v33, %v3462_v44  ;;  %v3485_v55 = vadd.f32 %v4135_v33, %v3463_v12  ;;  %v3486_v53 = vadd.f32 %v4135_v33, %v3464_v40  ;;  %v3487_v43 = vadd.f32 %v4135_v33, %v3465_v59 }
 0x568   :  { %v3488_v29 = vadd.f32 %v4135_v33, %v3466_v8  ;;  %v3489_v19 = vadd.f32 %v4135_v33, %v3467_v50  ;;  %v3490_v56 = vadd.f32 %v4135_v33, %v3468_v58  ;;  %v3491_v27 = vadd.f32 %v4135_v33, %v3469_v20 }
 0x569   :  { %v3834_v4 = vadd.f32 %v3818_v17, %v3476_v51  ;;  %v3835_v34 = vadd.f32 %v3819_v13, %v3477_v26  ;;  %v3836_v23 = vadd.f32 %v3820_v41, %v3478_v15  ;;  %v3837_v24 = vadd.f32 %v3821_v36, %v3479_v0 }
 0x56a   :  { %v3838_v2 = vadd.f32 %v3822_v61, %v3480_v54  ;;  %v3839_v14 = vadd.f32 %v3823_v18, %v3481_v57  ;;  %v3840_v52 = vadd.f32 %v3824_v16, %v3482_v63  ;;  %v3841_v42 = vadd.f32 %v3825_v62, %v3483_v21 }
 0x56b   :  { %v3842_v30 = vadd.f32 %v3826_v37, %v3484_v9  ;;  %v3843_v38 = vadd.f32 %v3827_v39, %v3485_v55  ;;  %v3844_v22 = vadd.f32 %v3828_v60, %v3486_v53  ;;  %v3845_v48 = vadd.f32 %v3829_v28, %v3487_v43 }
 0x56c   :  { %v3846_v47 = vadd.f32 %v3830_v6, %v3488_v29  ;;  %v3847_v45 = vadd.f32 %v3831_v11, %v3489_v19  ;;  %v3848_v25 = vadd.f32 %v3832_v46, %v3490_v56  ;;  %v3849_v31 = vadd.f32 %v3833_v7, %v3491_v27 }
 0x56d   :  { %v3850_v10 = vmax.f32 %v3834_v4, 0.0  ;;  %v3851_v49 = vmax.f32 %v3835_v34, 0.0  ;;  %v3852_v35 = vmax.f32 %v3836_v23, 0.0  ;;  %v3853_v33 = vmax.f32 %v3837_v24, 0.0 }
 0x56e   :  { %v3854_v17 = vmax.f32 %v3838_v2, 0.0  ;;  %v3855_v13 = vmax.f32 %v3839_v14, 0.0  ;;  %v3856_v41 = vmax.f32 %v3840_v52, 0.0  ;;  %v3857_v36 = vmax.f32 %v3841_v42, 0.0 }
 0x56f   :  { %v3858_v61 = vmax.f32 %v3842_v30, 0.0  ;;  %v3859_v18 = vmax.f32 %v3843_v38, 0.0  ;;  %v3860_v16 = vmax.f32 %v3844_v22, 0.0  ;;  %v3861_v62 = vmax.f32 %v3845_v48, 0.0  ;;  %3866 = vst.msk [vmem:[%s7202_s14] sm:$0xff] %vm3336_vm5, %v3850_v10  ;;  %3867 = vst.msk [vmem:[%s7202_s14 + $0x8] sm:$0xff] %vm3336_vm5, %v3851_v49 }
 0x570   :  { %3868 = vst.msk [vmem:[%s7202_s14 + $0x10] sm:$0xff] %vm3336_vm5, %v3852_v35  ;;  %3869 = vst.msk [vmem:[%s7202_s14 + $0x18] sm:$0xff] %vm3336_vm5, %v3853_v33  ;;  %v3862_v37 = vmax.f32 %v3846_v47, 0.0  ;;  %v3863_v39 = vmax.f32 %v3847_v45, 0.0  ;;  %v3864_v60 = vmax.f32 %v3848_v25, 0.0  ;;  %v3865_v28 = vmax.f32 %v3849_v31, 0.0 }
 0x571   :  { %3870 = vst.msk [vmem:[%s7202_s14 + $0x20] sm:$0xff] %vm3336_vm5, %v3854_v17  ;;  %3871 = vst.msk [vmem:[%s7202_s14 + $0x28] sm:$0xff] %vm3336_vm5, %v3855_v13 }
 0x572   :  { %3872 = vst.msk [vmem:[%s7202_s14 + $0x30] sm:$0xff] %vm3336_vm5, %v3856_v41  ;;  %3873 = vst.msk [vmem:[%s7202_s14 + $0x38] sm:$0xff] %vm3336_vm5, %v3857_v36 }
 0x573   :  { %3874 = vst.msk [vmem:[%s7202_s14 + $0x40] sm:$0xff] %vm3336_vm5, %v3858_v61  ;;  %3875 = vst.msk [vmem:[%s7202_s14 + $0x48] sm:$0xff] %vm3336_vm5, %v3859_v18 }
 0x574   :  { %3876 = vst.msk [vmem:[%s7202_s14 + $0x50] sm:$0xff] %vm3336_vm5, %v3860_v16  ;;  %3877 = vst.msk [vmem:[%s7202_s14 + $0x58] sm:$0xff] %vm3336_vm5, %v3861_v62 }
 0x575   :  { %3878 = vst.msk [vmem:[%s7202_s14 + $0x60] sm:$0xff] %vm3336_vm5, %v3862_v37  ;;  %3879 = vst.msk [vmem:[%s7202_s14 + $0x68] sm:$0xff] %vm3336_vm5, %v3863_v39 }
 0x576   :  { %3880 = vst.msk [vmem:[%s7202_s14 + $0x70] sm:$0xff] %vm3336_vm5, %v3864_v60  ;;  %3881 = vst.msk [vmem:[%s7202_s14 + $0x78] sm:$0xff] %vm3336_vm5, %v3865_v28 }

</bundles_post_ra>
